<compile_context>
chip_gen: v7x
topology: tpu7x:2x2x1
jax: 0.10.0
libtpu: 0.0.40
codegen_flags: <defaults>
</compile_context>

<pallas_src>
import math

import numpy as np
import jax
import jax.numpy as jnp
from jax.experimental import pallas as pl
from jax.experimental.pallas import tpu as pltpu


def _round_up(x: int, m: int) -> int:
    return ((x + m - 1) // m) * m


# Order in which kernel-native weights are passed to the kernel.
_WEIGHT_KEYS = (
    "w1e", "b1", "w2e", "b2",
    "wl1x", "wl1c", "bl1",
    "wf1x", "wf1c", "wf1h", "bf1",
    "wf2", "bf2", "wf3", "bf3", "wf4", "bf4",
)


# ---------------------------------------------------------------------------
# Fused forward kernel: one batch tile of TM rows per grid step
# ---------------------------------------------------------------------------
def _critic_fused_kernel(
    xflat_ref,   # (TM, 42)   flattened board, compute dtype
    w1e_ref,     # (42, 768)  conv1 expanded to dense (cols = (h1*4+w1)*64 + oc)
    b1_ref,      # (1, 768)   conv1 bias tiled over 12 positions, f32
    w2e_ref,     # (768, 384) conv2 expanded to dense (cols = (ho*3+wo)*64 + oc)
    b2_ref,      # (1, 384)   conv2 bias tiled over 6 positions, f32
    wl1x_ref,    # (42, 256)  linear_layers[0], pixel part of the concat
    wl1c_ref,    # (384, 256) linear_layers[0], conv-feature part (rows s*64+c)
    bl1_ref,     # (1, 256)   f32
    wf1x_ref,    # (42, 256)  final_layers[0], pixel part
    wf1c_ref,    # (384, 256) final_layers[0], conv-feature part
    wf1h_ref,    # (256, 256) folded lin branch: wl2 @ wf1_l
    bf1_ref,     # (1, 256)   f32 (includes bl2 @ wf1_l)
    wf2_ref,     # (256, 128)
    bf2_ref,     # (1, 128)   f32
    wf3_ref,     # (128, 64)
    bf3_ref,     # (1, 64)    f32
    wf4_ref,     # (64, 8)    column 0 = Linear(64,1) weight, rest zero
    bf4_ref,     # (1, 8)     f32, column 0 = Linear(64,1) bias
    out_ref,     # (TM, 8)    f32, column 0 = critic value
):
    cd = w1e_ref.dtype          # MXU operand dtype (bf16 recommended, f32 ok)
    f32 = jnp.float32

    def mm(a, w_ref):
        return jnp.dot(a, w_ref[...], preferred_element_type=f32)

    xf = xflat_ref[...]                                         # (TM, 42), cd

    # conv2d_layers[0:2]: Conv2d(1,64,4)+ReLU as one matmul -> (TM, 12*64) slab
    c1 = jnp.maximum(mm(xf, w1e_ref) + b1_ref[...], 0.0).astype(cd)
    # conv2d_layers[2:]: Conv2d(64,64,2)+Flatten+ReLU as one matmul -> (TM, 6*64)
    c2 = jnp.maximum(mm(c1, w2e_ref) + b2_ref[...], 0.0).astype(cd)

    # linear_layers[0:2]: Linear(426,256)+ReLU on cat(x_flat, conv_feat) (split-K)
    h1 = jnp.maximum(mm(xf, wl1x_ref) + mm(c2, wl1c_ref) + bl1_ref[...],
                     0.0).astype(cd)

    # final_layers[0:2]: Linear(554,256)+ReLU on cat(x_flat, conv_feat, lin);
    # the lin branch (Linear 256->128) is algebraically folded into wf1h/bf1.
    f = jnp.maximum(mm(xf, wf1x_ref) + mm(c2, wf1c_ref) + mm(h1, wf1h_ref)
                    + bf1_ref[...], 0.0).astype(cd)
    # final_layers[2:6]: 256->128 ReLU, 128->64 ReLU
    f = jnp.maximum(mm(f, wf2_ref) + bf2_ref[...], 0.0).astype(cd)
    f = jnp.maximum(mm(f, wf3_ref) + bf3_ref[...], 0.0).astype(cd)
    # final_layers[6]: Linear(64,1); lane 0 is the value, 7 zero-padded lanes.
    out_ref[...] = mm(f, wf4_ref) + bf4_ref[...]


# ---------------------------------------------------------------------------
# Parameter init in raw PyTorch layouts (kaiming weights, zero biases, zeroed
# final layer — mirrors CriticResNet.__init__)
# ---------------------------------------------------------------------------
def _kaiming(key, shape, fan_in):
    return jax.random.normal(key, shape, jnp.float32) * math.sqrt(2.0 / fan_in)


def init_raw_params(key):
    ks = jax.random.split(key, 8)
    return {
        "conv1_w": _kaiming(ks[0], (64, 1, 4, 4), 16),
        "conv1_b": jnp.zeros((64,), jnp.float32),
        "conv2_w": _kaiming(ks[1], (64, 64, 2, 2), 256),
        "conv2_b": jnp.zeros((64,), jnp.float32),
        "lin1_w": _kaiming(ks[2], (256, 426), 426),
        "lin1_b": jnp.zeros((256,), jnp.float32),
        "lin2_w": _kaiming(ks[3], (128, 256), 256),
        "lin2_b": jnp.zeros((128,), jnp.float32),
        "fin1_w": _kaiming(ks[4], (256, 554), 554),
        "fin1_b": jnp.zeros((256,), jnp.float32),
        "fin2_w": _kaiming(ks[5], (128, 256), 256),
        "fin2_b": jnp.zeros((128,), jnp.float32),
        "fin3_w": _kaiming(ks[6], (64, 128), 128),
        "fin3_b": jnp.zeros((64,), jnp.float32),
        "fin4_w": jnp.zeros((1, 64), jnp.float32),   # zero-init final layer
        "fin4_b": jnp.zeros((1,), jnp.float32),
    }


# ---------------------------------------------------------------------------
# Re-layout raw (PyTorch-style) weights into kernel-native layouts, ONCE.
# ---------------------------------------------------------------------------
def prepare_params(raw, compute_dtype=jnp.bfloat16):
    g = lambda k: np.asarray(raw[k], np.float32)
    c1w, c1b = g("conv1_w"), g("conv1_b")
    c2w, c2b = g("conv2_w"), g("conv2_b")
    l1w, l1b = g("lin1_w"), g("lin1_b")
    l2w, l2b = g("lin2_w"), g("lin2_b")
    f1w, f1b = g("fin1_w"), g("fin1_b")
    f2w, f2b = g("fin2_w"), g("fin2_b")
    f3w, f3b = g("fin3_w"), g("fin3_b")
    f4w, f4b = g("fin4_w"), g("fin4_b")

    # conv1 (1->64, 4x4 on 6x7, output 3x4) as a dense (42, 768) matrix:
    #   W1e[(h1+ki)*7 + (w1+kj), (h1*4+w1)*64 + oc] = conv1_w[oc, 0, ki, kj]
    w1e = np.zeros((42, 12 * 64), np.float32)
    for h1 in range(3):
        for w1 in range(4):
            s = h1 * 4 + w1
            for ki in range(4):
                for kj in range(4):
                    w1e[(h1 + ki) * 7 + (w1 + kj), s * 64:(s + 1) * 64] = \
                        c1w[:, 0, ki, kj]
    b1e = np.tile(c1b, 12)[None, :]                       # (1, 768)

    # conv2 (64->64, 2x2 on 3x4, output 2x3) as a dense (768, 384) matrix:
    #   W2e[((ho+ki)*4+(wo+kj))*64 + ci, (ho*3+wo)*64 + oc] = conv2_w[oc, ci, ki, kj]
    w2e = np.zeros((12 * 64, 6 * 64), np.float32)
    for ho in range(2):
        for wo in range(3):
            s2 = ho * 3 + wo
            for ki in range(2):
                for kj in range(2):
                    s1 = (ho + ki) * 4 + (wo + kj)
                    w2e[s1 * 64:(s1 + 1) * 64, s2 * 64:(s2 + 1) * 64] = \
                        c2w[:, :, ki, kj].T               # (ci, oc)
    b2e = np.tile(c2b, 6)[None, :]                        # (1, 384)

    # PyTorch flatten of conv2 output is channel-major (col = c*6 + h*3 + w);
    # our slab is position-major (row = (h*3+w)*64 + c).  Re-order the
    # conv-feature slice of the consuming weights accordingly.
    def conv_cols_to_slab(w_cols):                        # (out, 384) -> (384, out)
        return w_cols.reshape(-1, 64, 6).transpose(2, 1, 0).reshape(384, -1)

    wl1x = l1w[:, :42].T
    wl1c = conv_cols_to_slab(l1w[:, 42:])
    bl1 = l1b[None, :]

    wf1x = f1w[:, :42].T
    wf1c = conv_cols_to_slab(f1w[:, 42:426])
    wf1l = f1w[:, 426:].T                                 # (128, 256)
    # Fold linear_layers[2] (Linear 256->128, no nonlinearity before fin1):
    #   lin @ wf1_l = h1 @ (wl2 @ wf1_l) + bl2 @ wf1_l
    wf1h = l2w.T @ wf1l                                   # (256, 256), exact f32
    bf1 = (f1b + l2b @ wf1l)[None, :]

    wf2, bf2 = f2w.T, f2b[None, :]
    wf3, bf3 = f3w.T, f3b[None, :]
    wf4 = np.zeros((64, 8), np.float32)
    wf4[:, 0] = f4w[0]
    bf4 = np.zeros((1, 8), np.float32)
    bf4[0, 0] = f4b[0]

    cd, f32 = compute_dtype, jnp.float32
    return {
        "w1e": jnp.asarray(w1e, cd), "b1": jnp.asarray(b1e, f32),
        "w2e": jnp.asarray(w2e, cd), "b2": jnp.asarray(b2e, f32),
        "wl1x": jnp.asarray(wl1x, cd), "wl1c": jnp.asarray(wl1c, cd),
        "bl1": jnp.asarray(bl1, f32),
        "wf1x": jnp.asarray(wf1x, cd), "wf1c": jnp.asarray(wf1c, cd),
        "wf1h": jnp.asarray(wf1h, cd), "bf1": jnp.asarray(bf1, f32),
        "wf2": jnp.asarray(wf2, cd), "bf2": jnp.asarray(bf2, f32),
        "wf3": jnp.asarray(wf3, cd), "bf3": jnp.asarray(bf3, f32),
        "wf4": jnp.asarray(wf4, cd), "bf4": jnp.asarray(bf4, f32),
    }


# ---------------------------------------------------------------------------
# Forward wrapper: one pallas_call, grid over batch tiles only
# ---------------------------------------------------------------------------
def critic_resnet_forward(x, kparams, *, tile_m=512):
    assert x.ndim == 4 and x.shape[1:] == (1, 6, 7), x.shape
    N = x.shape[0]
    cd = kparams["w1e"].dtype

    n8 = _round_up(max(N, 1), 8)
    if n8 <= 256:
        TM = n8                                   # tiny batch: single grid step
    elif n8 <= 2 * tile_m:
        TM = _round_up((n8 + 1) // 2, 8)          # >= 2 steps (v7x megacore)
    else:
        TM = _round_up(tile_m, 8)
    Npad = _round_up(n8, TM)

    # Only wrapper-side work: flatten (torch .flatten(start_dim=1) order),
    # pad the batch once, cast to the compute dtype.
    xflat = jnp.pad(x.reshape(N, 42), ((0, Npad - N), (0, 0))).astype(cd)

    weights = [kparams[k] for k in _WEIGHT_KEYS]

    def _const_spec(a):
        nd = a.ndim
        return pl.BlockSpec(a.shape, lambda b, _nd=nd: (0,) * _nd)

    grid = (Npad // TM,)
    in_specs = [pl.BlockSpec((TM, 42), lambda b: (b, 0))] + \
               [_const_spec(w) for w in weights]

    out = pl.pallas_call(
        _critic_fused_kernel,
        out_shape=jax.ShapeDtypeStruct((Npad, 8), jnp.float32),
        grid_spec=pltpu.PrefetchScalarGridSpec(
            num_scalar_prefetch=0,
            grid=grid,
            in_specs=in_specs,
            out_specs=pl.BlockSpec((TM, 8), lambda b: (b, 0)),
        ),
        compiler_params=pltpu.CompilerParams(
            dimension_semantics=("parallel",),
            vmem_limit_bytes=32 * 1024 * 1024,
        ),
    )(xflat, *weights)

    return out[:N, :1]


# ---------------------------------------------------------------------------
# Faithful jnp reference of the PyTorch forward (raw weights) — self-test
# ---------------------------------------------------------------------------
def _reference_forward(x, raw):
    hp = jax.lax.Precision.HIGHEST
    N = x.shape[0]
    x = x.astype(jnp.float32)
    xflat = x.reshape(N, 42)

    c1 = jax.lax.conv_general_dilated(
        x, raw["conv1_w"], (1, 1), "VALID",
        dimension_numbers=("NCHW", "OIHW", "NCHW"), precision=hp)
    c1 = jax.nn.relu(c1 + raw["conv1_b"][None, :, None, None])
    c2 = jax.lax.conv_general_dilated(
        c1, raw["conv2_w"], (1, 1), "VALID",
        dimension_numbers=("NCHW", "OIHW", "NCHW"), precision=hp)
    conv_feat = jax.nn.relu(
        (c2 + raw["conv2_b"][None, :, None, None]).reshape(N, 384))

    conv_out = jnp.concatenate([xflat, conv_feat], axis=1)          # (N, 426)
    h = jax.nn.relu(jnp.dot(conv_out, raw["lin1_w"].T, precision=hp)
                    + raw["lin1_b"])
    lin = jnp.dot(h, raw["lin2_w"].T, precision=hp) + raw["lin2_b"]
    lin_out = jnp.concatenate([conv_out, lin], axis=1)              # (N, 554)

    f = jax.nn.relu(jnp.dot(lin_out, raw["fin1_w"].T, precision=hp) + raw["fin1_b"])
    f = jax.nn.relu(jnp.dot(f, raw["fin2_w"].T, precision=hp) + raw["fin2_b"])
    f = jax.nn.relu(jnp.dot(f, raw["fin3_w"].T, precision=hp) + raw["fin3_b"])
    return jnp.dot(f, raw["fin4_w"].T, precision=hp) + raw["fin4_b"]


if __name__ == "__main__":
    key = jax.random.PRNGKey(0)
    k_x, k_p = jax.random.split(key)

    # Input shape implied by the module: (batch, 1, 6, 7) -> 42 + 64*2*3 = 426
    x = jax.random.normal(k_x, (2, 1, 6, 7), jnp.float32)

    raw = init_raw_params(k_p)
    fwd = jax.jit(critic_resnet_forward)

    # Self-check in f32 (with a non-zero final layer so the comparison is
    # non-trivial) against the faithful jnp reference of the PyTorch forward.
    chk_raw = dict(raw)
    k_w4, k_b4 = jax.random.split(jax.random.PRNGKey(1))
    chk_raw["fin4_w"] = jax.random.normal(k_w4, (1, 64), jnp.float32) * 0.1
    chk_raw["fin4_b"] = jax.random.normal(k_b4, (1,), jnp.float32) * 0.1
    kp32 = prepare_params(chk_raw, compute_dtype=jnp.float32)
    y_pal = jax.block_until_ready(fwd(x, kp32))
    y_ref = jax.block_until_ready(_reference_forward(x, chk_raw))
    assert y_pal.shape == (2, 1), y_pal.shape
    assert bool(jnp.allclose(y_pal, y_ref, atol=2e-3, rtol=2e-3)), (y_pal, y_ref)

    # Production path: bf16 weights / MXU operands, f32 accumulation (the
    # original module zero-initializes the final layer).
    kp = prepare_params(raw, compute_dtype=jnp.bfloat16)
    y = jax.block_until_ready(fwd(x, kp))
    assert y.shape == (2, 1), y.shape
    assert bool(jnp.all(jnp.isfinite(y)))
    print("KERNEL_OK")
</pallas_src>

<mosaic_0001>
module attributes {stable_mosaic.version = 11 : i64} {
  func.func @_critic_fused_kernel(%arg0: i32, %arg1: memref<8x42xf32, #tpu.memory_space<vmem>>, %arg2: memref<42x768xf32, #tpu.memory_space<vmem>>, %arg3: memref<1x768xf32, #tpu.memory_space<vmem>>, %arg4: memref<768x384xf32, #tpu.memory_space<vmem>>, %arg5: memref<1x384xf32, #tpu.memory_space<vmem>>, %arg6: memref<42x256xf32, #tpu.memory_space<vmem>>, %arg7: memref<384x256xf32, #tpu.memory_space<vmem>>, %arg8: memref<1x256xf32, #tpu.memory_space<vmem>>, %arg9: memref<42x256xf32, #tpu.memory_space<vmem>>, %arg10: memref<384x256xf32, #tpu.memory_space<vmem>>, %arg11: memref<256x256xf32, #tpu.memory_space<vmem>>, %arg12: memref<1x256xf32, #tpu.memory_space<vmem>>, %arg13: memref<256x128xf32, #tpu.memory_space<vmem>>, %arg14: memref<1x128xf32, #tpu.memory_space<vmem>>, %arg15: memref<128x64xf32, #tpu.memory_space<vmem>>, %arg16: memref<1x64xf32, #tpu.memory_space<vmem>>, %arg17: memref<64x8xf32, #tpu.memory_space<vmem>>, %arg18: memref<1x8xf32, #tpu.memory_space<vmem>>, %arg19: memref<8x8xf32, #tpu.memory_space<vmem>>) attributes {dimension_semantics = [#tpu.dimension_semantics<parallel>], iteration_bounds = array<i64: 1>, scalar_prefetch = 0 : i64, scratch_operands = 0 : i64, tpu.core_type = #tpu.core_type<tc>, window_params = [{transform_indices = @transform_0, window_bounds = array<i64: 8, 42>}, {pipeline_mode = #tpu.pipeline_mode<synchronous>, transform_indices = @transform_1, window_bounds = array<i64: 42, 768>}, {pipeline_mode = #tpu.pipeline_mode<synchronous>, transform_indices = @transform_2, window_bounds = array<i64: 1, 768>}, {pipeline_mode = #tpu.pipeline_mode<synchronous>, transform_indices = @transform_3, window_bounds = array<i64: 768, 384>}, {pipeline_mode = #tpu.pipeline_mode<synchronous>, transform_indices = @transform_4, window_bounds = array<i64: 1, 384>}, {pipeline_mode = #tpu.pipeline_mode<synchronous>, transform_indices = @transform_5, window_bounds = array<i64: 42, 256>}, {pipeline_mode = #tpu.pipeline_mode<synchronous>, transform_indices = @transform_6, window_bounds = array<i64: 384, 256>}, {pipeline_mode = #tpu.pipeline_mode<synchronous>, transform_indices = @transform_7, window_bounds = array<i64: 1, 256>}, {pipeline_mode = #tpu.pipeline_mode<synchronous>, transform_indices = @transform_8, window_bounds = array<i64: 42, 256>}, {pipeline_mode = #tpu.pipeline_mode<synchronous>, transform_indices = @transform_9, window_bounds = array<i64: 384, 256>}, {pipeline_mode = #tpu.pipeline_mode<synchronous>, transform_indices = @transform_10, window_bounds = array<i64: 256, 256>}, {pipeline_mode = #tpu.pipeline_mode<synchronous>, transform_indices = @transform_11, window_bounds = array<i64: 1, 256>}, {pipeline_mode = #tpu.pipeline_mode<synchronous>, transform_indices = @transform_12, window_bounds = array<i64: 256, 128>}, {pipeline_mode = #tpu.pipeline_mode<synchronous>, transform_indices = @transform_13, window_bounds = array<i64: 1, 128>}, {pipeline_mode = #tpu.pipeline_mode<synchronous>, transform_indices = @transform_14, window_bounds = array<i64: 128, 64>}, {pipeline_mode = #tpu.pipeline_mode<synchronous>, transform_indices = @transform_15, window_bounds = array<i64: 1, 64>}, {pipeline_mode = #tpu.pipeline_mode<synchronous>, transform_indices = @transform_16, window_bounds = array<i64: 64, 8>}, {pipeline_mode = #tpu.pipeline_mode<synchronous>, transform_indices = @transform_17, window_bounds = array<i64: 1, 8>}, {transform_indices = @transform_18, window_bounds = array<i64: 8, 8>}]} {
    %c0 = arith.constant 0 : index
    %c0_0 = arith.constant 0 : index
    %0 = vector.load %arg1[%c0, %c0_0] : memref<8x42xf32, #tpu.memory_space<vmem>>, vector<8x42xf32>
    %c0_1 = arith.constant 0 : index
    %c0_2 = arith.constant 0 : index
    %1 = vector.load %arg2[%c0_1, %c0_2] : memref<42x768xf32, #tpu.memory_space<vmem>>, vector<42x768xf32>
    %cst = arith.constant dense<0.000000e+00> : vector<8x768xf32>
    %2 = tpu.matmul %0, %1, %cst {dimension_numbers = #tpu.dot_dimension_numbers<[1], [0], [0], [1], [0, 0, 1, 1], [], []>} : vector<8x42xf32>, vector<42x768xf32>, vector<8x768xf32> -> vector<8x768xf32>
    %c0_3 = arith.constant 0 : index
    %c0_4 = arith.constant 0 : index
    %3 = vector.load %arg3[%c0_3, %c0_4] : memref<1x768xf32, #tpu.memory_space<vmem>>, vector<1x768xf32>
    %4 = vector.broadcast %3 : vector<1x768xf32> to vector<8x768xf32>
    %5 = arith.addf %2, %4 : vector<8x768xf32>
    %cst_5 = arith.constant 0.000000e+00 : f32
    %6 = vector.broadcast %cst_5 : f32 to vector<8x768xf32>
    %7 = arith.maximumf %5, %6 : vector<8x768xf32>
    %c0_6 = arith.constant 0 : index
    %c0_7 = arith.constant 0 : index
    %8 = vector.load %arg4[%c0_6, %c0_7] : memref<768x384xf32, #tpu.memory_space<vmem>>, vector<768x384xf32>
    %cst_8 = arith.constant dense<0.000000e+00> : vector<8x384xf32>
    %9 = tpu.matmul %7, %8, %cst_8 {dimension_numbers = #tpu.dot_dimension_numbers<[1], [0], [0], [1], [0, 0, 1, 1], [], []>} : vector<8x768xf32>, vector<768x384xf32>, vector<8x384xf32> -> vector<8x384xf32>
    %c0_9 = arith.constant 0 : index
    %c0_10 = arith.constant 0 : index
    %10 = vector.load %arg5[%c0_9, %c0_10] : memref<1x384xf32, #tpu.memory_space<vmem>>, vector<1x384xf32>
    %11 = vector.broadcast %10 : vector<1x384xf32> to vector<8x384xf32>
    %12 = arith.addf %9, %11 : vector<8x384xf32>
    %cst_11 = arith.constant 0.000000e+00 : f32
    %13 = vector.broadcast %cst_11 : f32 to vector<8x384xf32>
    %14 = arith.maximumf %12, %13 : vector<8x384xf32>
    %c0_12 = arith.constant 0 : index
    %c0_13 = arith.constant 0 : index
    %15 = vector.load %arg6[%c0_12, %c0_13] : memref<42x256xf32, #tpu.memory_space<vmem>>, vector<42x256xf32>
    %cst_14 = arith.constant dense<0.000000e+00> : vector<8x256xf32>
    %16 = tpu.matmul %0, %15, %cst_14 {dimension_numbers = #tpu.dot_dimension_numbers<[1], [0], [0], [1], [0, 0, 1, 1], [], []>} : vector<8x42xf32>, vector<42x256xf32>, vector<8x256xf32> -> vector<8x256xf32>
    %c0_15 = arith.constant 0 : index
    %c0_16 = arith.constant 0 : index
    %17 = vector.load %arg7[%c0_15, %c0_16] : memref<384x256xf32, #tpu.memory_space<vmem>>, vector<384x256xf32>
    %cst_17 = arith.constant dense<0.000000e+00> : vector<8x256xf32>
    %18 = tpu.matmul %14, %17, %cst_17 {dimension_numbers = #tpu.dot_dimension_numbers<[1], [0], [0], [1], [0, 0, 1, 1], [], []>} : vector<8x384xf32>, vector<384x256xf32>, vector<8x256xf32> -> vector<8x256xf32>
    %19 = arith.addf %16, %18 : vector<8x256xf32>
    %c0_18 = arith.constant 0 : index
    %c0_19 = arith.constant 0 : index
    %20 = vector.load %arg8[%c0_18, %c0_19] : memref<1x256xf32, #tpu.memory_space<vmem>>, vector<1x256xf32>
    %21 = vector.broadcast %20 : vector<1x256xf32> to vector<8x256xf32>
    %22 = arith.addf %19, %21 : vector<8x256xf32>
    %cst_20 = arith.constant 0.000000e+00 : f32
    %23 = vector.broadcast %cst_20 : f32 to vector<8x256xf32>
    %24 = arith.maximumf %22, %23 : vector<8x256xf32>
    %c0_21 = arith.constant 0 : index
    %c0_22 = arith.constant 0 : index
    %25 = vector.load %arg9[%c0_21, %c0_22] : memref<42x256xf32, #tpu.memory_space<vmem>>, vector<42x256xf32>
    %cst_23 = arith.constant dense<0.000000e+00> : vector<8x256xf32>
    %26 = tpu.matmul %0, %25, %cst_23 {dimension_numbers = #tpu.dot_dimension_numbers<[1], [0], [0], [1], [0, 0, 1, 1], [], []>} : vector<8x42xf32>, vector<42x256xf32>, vector<8x256xf32> -> vector<8x256xf32>
    %c0_24 = arith.constant 0 : index
    %c0_25 = arith.constant 0 : index
    %27 = vector.load %arg10[%c0_24, %c0_25] : memref<384x256xf32, #tpu.memory_space<vmem>>, vector<384x256xf32>
    %cst_26 = arith.constant dense<0.000000e+00> : vector<8x256xf32>
    %28 = tpu.matmul %14, %27, %cst_26 {dimension_numbers = #tpu.dot_dimension_numbers<[1], [0], [0], [1], [0, 0, 1, 1], [], []>} : vector<8x384xf32>, vector<384x256xf32>, vector<8x256xf32> -> vector<8x256xf32>
    %29 = arith.addf %26, %28 : vector<8x256xf32>
    %c0_27 = arith.constant 0 : index
    %c0_28 = arith.constant 0 : index
    %30 = vector.load %arg11[%c0_27, %c0_28] : memref<256x256xf32, #tpu.memory_space<vmem>>, vector<256x256xf32>
    %cst_29 = arith.constant dense<0.000000e+00> : vector<8x256xf32>
    %31 = tpu.matmul %24, %30, %cst_29 {dimension_numbers = #tpu.dot_dimension_numbers<[1], [0], [0], [1], [0, 0, 1, 1], [], []>} : vector<8x256xf32>, vector<256x256xf32>, vector<8x256xf32> -> vector<8x256xf32>
    %32 = arith.addf %29, %31 : vector<8x256xf32>
    %c0_30 = arith.constant 0 : index
    %c0_31 = arith.constant 0 : index
    %33 = vector.load %arg12[%c0_30, %c0_31] : memref<1x256xf32, #tpu.memory_space<vmem>>, vector<1x256xf32>
    %34 = vector.broadcast %33 : vector<1x256xf32> to vector<8x256xf32>
    %35 = arith.addf %32, %34 : vector<8x256xf32>
    %cst_32 = arith.constant 0.000000e+00 : f32
    %36 = vector.broadcast %cst_32 : f32 to vector<8x256xf32>
    %37 = arith.maximumf %35, %36 : vector<8x256xf32>
    %c0_33 = arith.constant 0 : index
    %c0_34 = arith.constant 0 : index
    %38 = vector.load %arg13[%c0_33, %c0_34] : memref<256x128xf32, #tpu.memory_space<vmem>>, vector<256x128xf32>
    %cst_35 = arith.constant dense<0.000000e+00> : vector<8x128xf32>
    %39 = tpu.matmul %37, %38, %cst_35 {dimension_numbers = #tpu.dot_dimension_numbers<[1], [0], [0], [1], [0, 0, 1, 1], [], []>} : vector<8x256xf32>, vector<256x128xf32>, vector<8x128xf32> -> vector<8x128xf32>
    %c0_36 = arith.constant 0 : index
    %c0_37 = arith.constant 0 : index
    %40 = vector.load %arg14[%c0_36, %c0_37] : memref<1x128xf32, #tpu.memory_space<vmem>>, vector<1x128xf32>
    %41 = vector.broadcast %40 : vector<1x128xf32> to vector<8x128xf32>
    %42 = arith.addf %39, %41 : vector<8x128xf32>
    %cst_38 = arith.constant 0.000000e+00 : f32
    %43 = vector.broadcast %cst_38 : f32 to vector<8x128xf32>
    %44 = arith.maximumf %42, %43 : vector<8x128xf32>
    %c0_39 = arith.constant 0 : index
    %c0_40 = arith.constant 0 : index
    %45 = vector.load %arg15[%c0_39, %c0_40] : memref<128x64xf32, #tpu.memory_space<vmem>>, vector<128x64xf32>
    %cst_41 = arith.constant dense<0.000000e+00> : vector<8x64xf32>
    %46 = tpu.matmul %44, %45, %cst_41 {dimension_numbers = #tpu.dot_dimension_numbers<[1], [0], [0], [1], [0, 0, 1, 1], [], []>} : vector<8x128xf32>, vector<128x64xf32>, vector<8x64xf32> -> vector<8x64xf32>
    %c0_42 = arith.constant 0 : index
    %c0_43 = arith.constant 0 : index
    %47 = vector.load %arg16[%c0_42, %c0_43] : memref<1x64xf32, #tpu.memory_space<vmem>>, vector<1x64xf32>
    %48 = vector.broadcast %47 : vector<1x64xf32> to vector<8x64xf32>
    %49 = arith.addf %46, %48 : vector<8x64xf32>
    %cst_44 = arith.constant 0.000000e+00 : f32
    %50 = vector.broadcast %cst_44 : f32 to vector<8x64xf32>
    %51 = arith.maximumf %49, %50 : vector<8x64xf32>
    %c0_45 = arith.constant 0 : index
    %c0_46 = arith.constant 0 : index
    %52 = vector.load %arg17[%c0_45, %c0_46] : memref<64x8xf32, #tpu.memory_space<vmem>>, vector<64x8xf32>
    %cst_47 = arith.constant dense<0.000000e+00> : vector<8x8xf32>
    %53 = tpu.matmul %51, %52, %cst_47 {dimension_numbers = #tpu.dot_dimension_numbers<[1], [0], [0], [1], [0, 0, 1, 1], [], []>} : vector<8x64xf32>, vector<64x8xf32>, vector<8x8xf32> -> vector<8x8xf32>
    %c0_48 = arith.constant 0 : index
    %c0_49 = arith.constant 0 : index
    %54 = vector.load %arg18[%c0_48, %c0_49] : memref<1x8xf32, #tpu.memory_space<vmem>>, vector<1x8xf32>
    %55 = vector.broadcast %54 : vector<1x8xf32> to vector<8x8xf32>
    %56 = arith.addf %53, %55 : vector<8x8xf32>
    %c0_50 = arith.constant 0 : index
    %c0_51 = arith.constant 0 : index
    %57 = vector.load %arg19[%c0_50, %c0_51] : memref<8x8xf32, #tpu.memory_space<vmem>>, vector<8x8xf32>
    tpu.vector_store %arg19[%c0_50, %c0_51], %56 {strides = array<i32>} : memref<8x8xf32, #tpu.memory_space<vmem>>, vector<8x8xf32>,
    return
  }
  func.func @transform_0(%arg0: i32) -> (i32, i32) {
    %c0_i32 = arith.constant 0 : i32
    %c0_i32_0 = arith.constant 0 : i32
    return %arg0, %c0_i32 : i32, i32
  }
  func.func @transform_1(%arg0: i32) -> (i32, i32) {
    %c0_i32 = arith.constant 0 : i32
    %c0_i32_0 = arith.constant 0 : i32
    %c0_i32_1 = arith.constant 0 : i32
    return %c0_i32, %c0_i32_0 : i32, i32
  }
  func.func @transform_2(%arg0: i32) -> (i32, i32) {
    %c0_i32 = arith.constant 0 : i32
    %c0_i32_0 = arith.constant 0 : i32
    %c0_i32_1 = arith.constant 0 : i32
    return %c0_i32, %c0_i32_0 : i32, i32
  }
  func.func @transform_3(%arg0: i32) -> (i32, i32) {
    %c0_i32 = arith.constant 0 : i32
    %c0_i32_0 = arith.constant 0 : i32
    %c0_i32_1 = arith.constant 0 : i32
    return %c0_i32, %c0_i32_0 : i32, i32
  }
  func.func @transform_4(%arg0: i32) -> (i32, i32) {
    %c0_i32 = arith.constant 0 : i32
    %c0_i32_0 = arith.constant 0 : i32
    %c0_i32_1 = arith.constant 0 : i32
    return %c0_i32, %c0_i32_0 : i32, i32
  }
  func.func @transform_5(%arg0: i32) -> (i32, i32) {
    %c0_i32 = arith.constant 0 : i32
    %c0_i32_0 = arith.constant 0 : i32
    %c0_i32_1 = arith.constant 0 : i32
    return %c0_i32, %c0_i32_0 : i32, i32
  }
  func.func @transform_6(%arg0: i32) -> (i32, i32) {
    %c0_i32 = arith.constant 0 : i32
    %c0_i32_0 = arith.constant 0 : i32
    %c0_i32_1 = arith.constant 0 : i32
    return %c0_i32, %c0_i32_0 : i32, i32
  }
  func.func @transform_7(%arg0: i32) -> (i32, i32) {
    %c0_i32 = arith.constant 0 : i32
    %c0_i32_0 = arith.constant 0 : i32
    %c0_i32_1 = arith.constant 0 : i32
    return %c0_i32, %c0_i32_0 : i32, i32
  }
  func.func @transform_8(%arg0: i32) -> (i32, i32) {
    %c0_i32 = arith.constant 0 : i32
    %c0_i32_0 = arith.constant 0 : i32
    %c0_i32_1 = arith.constant 0 : i32
    return %c0_i32, %c0_i32_0 : i32, i32
  }
  func.func @transform_9(%arg0: i32) -> (i32, i32) {
    %c0_i32 = arith.constant 0 : i32
    %c0_i32_0 = arith.constant 0 : i32
    %c0_i32_1 = arith.constant 0 : i32
    return %c0_i32, %c0_i32_0 : i32, i32
  }
  func.func @transform_10(%arg0: i32) -> (i32, i32) {
    %c0_i32 = arith.constant 0 : i32
    %c0_i32_0 = arith.constant 0 : i32
    %c0_i32_1 = arith.constant 0 : i32
    return %c0_i32, %c0_i32_0 : i32, i32
  }
  func.func @transform_11(%arg0: i32) -> (i32, i32) {
    %c0_i32 = arith.constant 0 : i32
    %c0_i32_0 = arith.constant 0 : i32
    %c0_i32_1 = arith.constant 0 : i32
    return %c0_i32, %c0_i32_0 : i32, i32
  }
  func.func @transform_12(%arg0: i32) -> (i32, i32) {
    %c0_i32 = arith.constant 0 : i32
    %c0_i32_0 = arith.constant 0 : i32
    %c0_i32_1 = arith.constant 0 : i32
    return %c0_i32, %c0_i32_0 : i32, i32
  }
  func.func @transform_13(%arg0: i32) -> (i32, i32) {
    %c0_i32 = arith.constant 0 : i32
    %c0_i32_0 = arith.constant 0 : i32
    %c0_i32_1 = arith.constant 0 : i32
    return %c0_i32, %c0_i32_0 : i32, i32
  }
  func.func @transform_14(%arg0: i32) -> (i32, i32) {
    %c0_i32 = arith.constant 0 : i32
    %c0_i32_0 = arith.constant 0 : i32
    %c0_i32_1 = arith.constant 0 : i32
    return %c0_i32, %c0_i32_0 : i32, i32
  }
  func.func @transform_15(%arg0: i32) -> (i32, i32) {
    %c0_i32 = arith.constant 0 : i32
    %c0_i32_0 = arith.constant 0 : i32
    %c0_i32_1 = arith.constant 0 : i32
    return %c0_i32, %c0_i32_0 : i32, i32
  }
  func.func @transform_16(%arg0: i32) -> (i32, i32) {
    %c0_i32 = arith.constant 0 : i32
    %c0_i32_0 = arith.constant 0 : i32
    %c0_i32_1 = arith.constant 0 : i32
    return %c0_i32, %c0_i32_0 : i32, i32
  }
  func.func @transform_17(%arg0: i32) -> (i32, i32) {
    %c0_i32 = arith.constant 0 : i32
    %c0_i32_0 = arith.constant 0 : i32
    %c0_i32_1 = arith.constant 0 : i32
    return %c0_i32, %c0_i32_0 : i32, i32
  }
  func.func @transform_18(%arg0: i32) -> (i32, i32) {
    %c0_i32 = arith.constant 0 : i32
    %c0_i32_0 = arith.constant 0 : i32
    return %arg0, %c0_i32 : i32, i32
  }
}

</mosaic_0001>

<bundles_post_ra>
// kernel: critic_resnet_forward.1
= control target key start
LH: loop header
LB: loop body
LE: loop exit
PB: predicated region body
PF: predicated region fallthrough
CT: control target
= control target key end

     0   :  { %s4280_s0 = inlined_call_operand.vmem [shape: f32[8,42], index: 0, kind: input, shape index: {}]   ;;  %s4281_s1 = inlined_call_operand.hbm [shape: f32[42,768], index: 1, kind: input, shape index: {}]   ;;  %s4282_s2 = inlined_call_operand.hbm [shape: f32[1,768], index: 2, kind: input, shape index: {}]   ;;  %s4283_s3 = inlined_call_operand.hbm [shape: f32[768,384], index: 3, kind: input, shape index: {}]   ;;  %s4284_s4 = inlined_call_operand.hbm [shape: f32[1,384], index: 4, kind: input, shape index: {}]   ;;  %s4285_s5 = inlined_call_operand.hbm [shape: f32[42,256], index: 5, kind: input, shape index: {}]   ;;  %s4286_s6 = inlined_call_operand.hbm [shape: f32[384,256], index: 6, kind: input, shape index: {}]   ;;  %s4287_s7 = inlined_call_operand.hbm [shape: f32[1,256], index: 7, kind: input, shape index: {}]   ;;  %s4288_s8 = inlined_call_operand.hbm [shape: f32[42,256], index: 8, kind: input, shape index: {}]   ;;  %s4289_s9 = inlined_call_operand.hbm [shape: f32[384,256], index: 9, kind: input, shape index: {}]   ;;  %s4290_s10 = inlined_call_operand.hbm [shape: f32[256,256], index: 10, kind: input, shape index: {}]   ;;  %s4291_s11 = inlined_call_operand.hbm [shape: f32[1,256], index: 11, kind: input, shape index: {}]   ;;  %s4292_s12 = inlined_call_operand.hbm [shape: f32[256,128], index: 12, kind: input, shape index: {}]   ;;  %s4293_s13 = inlined_call_operand.hbm [shape: f32[1,128], index: 13, kind: input, shape index: {}]   ;;  %s4294_s14 = inlined_call_operand.vmem [shape: f32[128,64], index: 14, kind: input, shape index: {}]   ;;  %s4295_s15 = inlined_call_operand.hbm [shape: f32[1,64], index: 15, kind: input, shape index: {}]   ;;  %s4296_s16 = inlined_call_operand.vmem [shape: f32[64,8], index: 16, kind: input, shape index: {}]   ;;  %s4297_s17 = inlined_call_operand.hbm [shape: f32[1,8], index: 17, kind: input, shape index: {}]   ;;  %s4298_s18 = inlined_call_operand.vmem [shape: f32[8,8], index: 18, kind: output, shape index: {}]  }
   0x1   :  { %4302 = sst [smem:[#allocation33_spill]] %s4280_s0 }
   0x2   :  { %4303 = sst [smem:[#allocation34_spill]] %s4281_s1 }
   0x3   :  { %4304 = sst [smem:[#allocation35_spill]] %s4282_s2 }
   0x4   :  { %23 = vsyncpa [#allocation3], 0 }
   0x5   :  { %24 = vsyncpa [#allocation5], 0 }
   0x6   :  { %25 = vsyncpa [#allocation8], 0 }
   0x7   :  { %26 = vsyncpa [#allocation11], 0 }
   0x8   :  { %27 = vsyncpa [#allocation14], 0 }
   0x9   :  { %28 = vsyncpa [#allocation17], 0 }
   0xa   :  { %29 = vsyncpa [#allocation20], 0 }
   0xb   :  { %30 = vsyncpa [#allocation23], 0  ;;  %s3731_s27 = smov [#allocation4]   ;;  %s3732_s29 = smov [#allocation7]  }
   0xc   :  { %s51_s28 = sshll.u32 %s3731_s27, 4  ;;  %s73_s30 = sshll.u32 %s3732_s29, 4  ;;  %s52_s28 = int_to_ptr.vmem [resolvable:$true] %s51_s28  ;;  %s74_s30 = int_to_ptr.vmem [resolvable:$true] %s73_s30 }
   0xd   :  { %s4305_s1 = sld [smem:[#allocation35_spill]] }
  0x13   :  { %s3385_s20 = scalar_lea.hbm %s4305_s1, 96 }
  0x14   :  { %p3386_p0 = scmp.ne.s32.totalorder %s4305_s1, %s3385_s20  ;;  %p3389_p1 = scmp.lt.u32.totalorder %s3385_s20, %s4305_s1 }
  0x16   :  { %p3391_p2 = pnand %p3389_p1, %p3386_p0 }
  0x18   :  { %3394 = shalt.err (!%p3391_p2)
}
  0x19   :  { %s3395_s24 = scalar_lea.vmem %s52_s28, 96  ;;  %p3400_p4 = scmp.lt.s32.totalorder %s52_s28, %s52_s28 }
  0x1a   :  { %p3396_p3 = scmp.ne.s32.totalorder %s52_s28, %s3395_s24  ;;  %p3401_p5 = scmp.lt.s32.totalorder %s3395_s24, %s3395_s24 }
  0x1c   :  { %p3402_p6 = por %p3401_p5, %p3400_p4 }
  0x1e   :  { %p3403_p7 = pnand %p3402_p6, %p3396_p3 }
  0x20   :  { %3406 = shalt.err (!%p3403_p7)
}
  0x21   :  { %54 = dma.hbm_to_vmem [thread:$0]  %s4305_s1, 96, %s52_s28, [#allocation5]  }
  0x22   :  { %s3407_s0 = scalar_lea.hbm %s4284_s4, 48 }
  0x23   :  { %p3408_p8 = scmp.ne.s32.totalorder %s4284_s4, %s3407_s0  ;;  %p3411_p9 = scmp.lt.u32.totalorder %s3407_s0, %s4284_s4 }
  0x25   :  { %p3413_p10 = pnand %p3411_p9, %p3408_p8 }
  0x27   :  { %3416 = shalt.err (!%p3413_p10)
}
  0x28   :  { %s3417_s2 = scalar_lea.vmem %s74_s30, 48  ;;  %s3421_s23 = scalar_lea.vmem %s74_s30, 64 }
  0x29   :  { %p3418_p11 = scmp.ne.s32.totalorder %s74_s30, %s3417_s2  ;;  %p3422_p12 = scmp.lt.s32.totalorder %s74_s30, %s74_s30 }
  0x2a   :  { %p3423_p13 = scmp.lt.s32.totalorder %s3421_s23, %s3417_s2 }
  0x2c   :  { %p3424_p0 = por %p3423_p13, %p3422_p12 }
  0x2e   :  { %p3425_p1 = pnand %p3424_p0, %p3418_p11 }
  0x30   :  { %3428 = shalt.err (!%p3425_p1)
}
  0x31   :  { %76 = dma.hbm_to_vmem [thread:$0]  %s4284_s4, 48, %s74_s30, [#allocation8]  }
  0x32   :  { %s3733_s24 = smov [#allocation10]   ;;  %s3734_s26 = smov [#allocation13]  }
  0x33   :  { %s94_s25 = sshll.u32 %s3733_s24, 4  ;;  %s116_s27 = sshll.u32 %s3734_s26, 4  ;;  %s95_s25 = int_to_ptr.vmem [resolvable:$true] %s94_s25  ;;  %s3877_s27 = int_to_ptr.vmem [resolvable:$true] %s116_s27 }
  0x34   :  { %s3429_s19 = scalar_lea.hbm %s4286_s6, 12288 }
  0x35   :  { %p3430_p2 = scmp.ne.s32.totalorder %s4286_s6, %s3429_s19  ;;  %p3433_p3 = scmp.lt.u32.totalorder %s3429_s19, %s4286_s6 }
  0x37   :  { %p3435_p4 = pnand %p3433_p3, %p3430_p2 }
  0x39   :  { %3438 = shalt.err (!%p3435_p4)
}
  0x3a   :  { %s3439_s4 = scalar_lea.vmem %s95_s25, 12288  ;;  %p3444_p6 = scmp.lt.s32.totalorder %s95_s25, %s95_s25 }
  0x3b   :  { %p3440_p5 = scmp.ne.s32.totalorder %s95_s25, %s3439_s4  ;;  %p3445_p7 = scmp.lt.s32.totalorder %s3439_s4, %s3439_s4 }
  0x3d   :  { %p3446_p8 = por %p3445_p7, %p3444_p6 }
  0x3f   :  { %p3447_p9 = pnand %p3446_p8, %p3440_p5 }
  0x41   :  { %3450 = shalt.err (!%p3447_p9)
}
  0x42   :  { %s3735_s30 = smov 256   ;;  %s3736_s23 = smov 16  }
  0x43   :  { %100 = dma.hbm_to_vmem [thread:$0]  %s4286_s6, 12288, %s95_s25, [#allocation11], %s3735_s30, %s3735_s30, %s3736_s23  }
  0x44   :  { %s3451_s29 = scalar_lea.hbm %s4288_s8, 1536 }
  0x45   :  { %p3452_p10 = scmp.ne.s32.totalorder %s4288_s8, %s3451_s29  ;;  %p3455_p11 = scmp.lt.u32.totalorder %s3451_s29, %s4288_s8 }
  0x47   :  { %p3457_p12 = pnand %p3455_p11, %p3452_p10 }
  0x49   :  { %3460 = shalt.err (!%p3457_p12)
}
  0x4a   :  { %s3461_s22 = scalar_lea.vmem %s3877_s27, 1536  ;;  %p3466_p0 = scmp.lt.s32.totalorder %s3877_s27, %s3877_s27 }
  0x4b   :  { %p3462_p13 = scmp.ne.s32.totalorder %s3877_s27, %s3461_s22  ;;  %p3467_p1 = scmp.lt.s32.totalorder %s3461_s22, %s3461_s22 }
  0x4d   :  { %p3468_p2 = por %p3467_p1, %p3466_p0 }
  0x4f   :  { %p3469_p3 = pnand %p3468_p2, %p3462_p13 }
  0x51   :  { %3472 = shalt.err (!%p3469_p3)
}
  0x52   :  { %122 = dma.hbm_to_vmem [thread:$0]  %s4288_s8, 1536, %s3877_s27, [#allocation14], %s3735_s30, %s3735_s30, %s3736_s23  }
  0x53   :  { %s3737_s2 = smov [#allocation16]   ;;  %s3738_s28 = smov [#allocation19]  }
  0x54   :  { %s140_s4 = sshll.u32 %s3737_s2, 4  ;;  %s162_s1 = sshll.u32 %s3738_s28, 4  ;;  %s141_s4 = int_to_ptr.vmem [resolvable:$true] %s140_s4  ;;  %s3914_s1 = int_to_ptr.vmem [resolvable:$true] %s162_s1 }
  0x55   :  { %s3473_s29 = scalar_lea.hbm %s4290_s10, 8192 }
  0x56   :  { %p3474_p4 = scmp.ne.s32.totalorder %s4290_s10, %s3473_s29  ;;  %p3477_p5 = scmp.lt.u32.totalorder %s3473_s29, %s4290_s10 }
  0x58   :  { %p3479_p6 = pnand %p3477_p5, %p3474_p4 }
  0x5a   :  { %3482 = shalt.err (!%p3479_p6)
}
  0x5b   :  { %s3483_s8 = scalar_lea.vmem %s141_s4, 8192  ;;  %p3488_p8 = scmp.lt.s32.totalorder %s141_s4, %s141_s4 }
  0x5c   :  { %p3484_p7 = scmp.ne.s32.totalorder %s141_s4, %s3483_s8  ;;  %p3489_p9 = scmp.lt.s32.totalorder %s3483_s8, %s3483_s8 }
  0x5e   :  { %p3490_p10 = por %p3489_p9, %p3488_p8 }
  0x60   :  { %p3491_p11 = pnand %p3490_p10, %p3484_p7 }
  0x62   :  { %3494 = shalt.err (!%p3491_p11)
}
  0x63   :  { %146 = dma.hbm_to_vmem [thread:$0]  %s4290_s10, 8192, %s141_s4, [#allocation17], %s3735_s30, %s3735_s30, %s3736_s23  }
  0x64   :  { %s3495_s2 = scalar_lea.hbm %s4292_s12, 4096 }
  0x65   :  { %p3496_p12 = scmp.ne.s32.totalorder %s4292_s12, %s3495_s2  ;;  %p3499_p13 = scmp.lt.u32.totalorder %s3495_s2, %s4292_s12 }
  0x67   :  { %p3501_p0 = pnand %p3499_p13, %p3496_p12 }
  0x69   :  { %3504 = shalt.err (!%p3501_p0)
}
  0x6a   :  { %s3505_s0 = scalar_lea.vmem %s3914_s1, 4096  ;;  %p3510_p2 = scmp.lt.s32.totalorder %s3914_s1, %s3914_s1 }
  0x6b   :  { %p3506_p1 = scmp.ne.s32.totalorder %s3914_s1, %s3505_s0  ;;  %p3511_p3 = scmp.lt.s32.totalorder %s3505_s0, %s3505_s0 }
  0x6d   :  { %p3512_p4 = por %p3511_p3, %p3510_p2 }
  0x6f   :  { %p3513_p5 = pnand %p3512_p4, %p3506_p1 }
  0x71   :  { %3516 = shalt.err (!%p3513_p5)
}
  0x72   :  { %s3739_s10 = smov 128   ;;  %s3740_s4 = smov 8  }
  0x73   :  { %168 = dma.hbm_to_vmem [thread:$0]  %s4292_s12, 4096, %s3914_s1, [#allocation20], %s3739_s10, %s3739_s10, %s3740_s4  }
  0x74   :  { %s3741_s20 = smov [#allocation22]   ;;  %s3742_s27 = smov [#allocation2]  }
  0x75   :  { %s187_s8 = sshll.u32 %s3741_s20, 4  ;;  %s38_s22 = sshll.u32 %s3742_s27, 4  ;;  %s188_s8 = int_to_ptr.vmem [resolvable:$true] %s187_s8  ;;  %s3948_s22 = int_to_ptr.vmem [resolvable:$true] %s38_s22 }
  0x76   :  { %s3517_s2 = scalar_lea.hbm %s4295_s15, 16 }
  0x77   :  { %p3518_p6 = scmp.ne.s32.totalorder %s4295_s15, %s3517_s2  ;;  %p3521_p7 = scmp.lt.u32.totalorder %s3517_s2, %s4295_s15 }
  0x79   :  { %p3523_p8 = pnand %p3521_p7, %p3518_p6 }
  0x7b   :  { %3526 = shalt.err (!%p3523_p8)
}
  0x7c   :  { %s3527_s12 = scalar_lea.vmem %s188_s8, 16  ;;  %s3531_s1 = scalar_lea.vmem %s188_s8, 32 }
  0x7d   :  { %p3528_p9 = scmp.ne.s32.totalorder %s188_s8, %s3527_s12  ;;  %p3532_p10 = scmp.lt.s32.totalorder %s188_s8, %s188_s8 }
  0x7e   :  { %p3533_p11 = scmp.lt.s32.totalorder %s3531_s1, %s3527_s12 }
  0x80   :  { %p3534_p12 = por %p3533_p11, %p3532_p10 }
  0x82   :  { %p3535_p13 = pnand %p3534_p12, %p3528_p9 }
  0x84   :  { %3538 = shalt.err (!%p3535_p13)
}
  0x85   :  { %190 = dma.hbm_to_vmem [thread:$0]  %s4295_s15, 16, %s188_s8, [#allocation23]  }
  0x86   :  { %s4306_s21 = sld [smem:[#allocation34_spill]] }
  0x8c   :  { %s3539_s20 = scalar_lea.hbm %s4306_s21, 4608 }
  0x8d   :  { %p3540_p0 = scmp.ne.s32.totalorder %s4306_s21, %s3539_s20  ;;  %p3543_p1 = scmp.lt.u32.totalorder %s3539_s20, %s4306_s21 }
  0x8f   :  { %p3545_p2 = pnand %p3543_p1, %p3540_p0 }
  0x91   :  { %3548 = shalt.err (!%p3545_p2)
}
  0x92   :  { %s3549_s28 = scalar_lea.vmem %s3948_s22, 4608  ;;  %p3554_p4 = scmp.lt.s32.totalorder %s3948_s22, %s3948_s22 }
  0x93   :  { %p3550_p3 = scmp.ne.s32.totalorder %s3948_s22, %s3549_s28  ;;  %p3555_p5 = scmp.lt.s32.totalorder %s3549_s28, %s3549_s28 }
  0x95   :  { %p3556_p6 = por %p3555_p5, %p3554_p4 }
  0x97   :  { %p3557_p7 = pnand %p3556_p6, %p3550_p3 }
  0x99   :  { %3560 = shalt.err (!%p3557_p7)
}
  0x9a   :  { %s3743_s15 = smov 768   ;;  %s3744_s8 = smov 48  }
  0x9b   :  { %44 = dma.hbm_to_vmem [thread:$0]  %s4306_s21, 4608, %s3948_s22, [#allocation3], %s3743_s15, %s3743_s15, %s3744_s8  }
  0x9c   :  { %s3745_s29 = smov [#allocation6]   ;;  %s3561_s10 = scalar_lea.hbm %s4283_s3, 36864 }
  0x9d   :  { %s60_s12 = sshll.u32 %s3745_s29, 4  ;;  %p3562_p8 = scmp.ne.s32.totalorder %s4283_s3, %s3561_s10  ;;  %s61_s12 = int_to_ptr.vmem [resolvable:$true] %s60_s12 }
  0x9e   :  { %p3565_p9 = scmp.lt.u32.totalorder %s3561_s10, %s4283_s3 }
  0xa0   :  { %p3567_p10 = pnand %p3565_p9, %p3562_p8 }
  0xa2   :  { %3570 = shalt.err (!%p3567_p10)
}
  0xa3   :  { %s3571_s6 = scalar_lea.vmem %s61_s12, 36864  ;;  %p3576_p12 = scmp.lt.s32.totalorder %s61_s12, %s61_s12 }
  0xa4   :  { %p3572_p11 = scmp.ne.s32.totalorder %s61_s12, %s3571_s6  ;;  %p3577_p13 = scmp.lt.s32.totalorder %s3571_s6, %s3571_s6 }
  0xa6   :  { %p3578_p0 = por %p3577_p13, %p3576_p12 }
  0xa8   :  { %p3579_p1 = pnand %p3578_p0, %p3572_p11 }
  0xaa   :  { %3582 = shalt.err (!%p3579_p1)
}
  0xab   :  { %s3746_s22 = smov 384   ;;  %s3747_s21 = smov 24  }
  0xac   :  { %66 = dma.hbm_to_vmem [thread:$0]  %s4283_s3, 36864, %s61_s12, [#allocation5], %s3746_s22, %s3746_s22, %s3747_s21  }
  0xad   :  { %s3748_s28 = smov [#allocation9]   ;;  %s3749_s8 = smov [#allocation12]  }
  0xae   :  { %s82_s15 = sshll.u32 %s3748_s28, 4  ;;  %s107_s24 = sshll.u32 %s3749_s8, 4  ;;  %s83_s15 = int_to_ptr.vmem [resolvable:$true] %s82_s15  ;;  %s108_s24 = int_to_ptr.vmem [resolvable:$true] %s107_s24 }
  0xaf   :  { %s3583_s1 = scalar_lea.hbm %s4285_s5, 1536 }
  0xb0   :  { %p3584_p2 = scmp.ne.s32.totalorder %s4285_s5, %s3583_s1  ;;  %p3587_p3 = scmp.lt.u32.totalorder %s3583_s1, %s4285_s5 }
  0xb2   :  { %p3589_p4 = pnand %p3587_p3, %p3584_p2 }
  0xb4   :  { %3592 = shalt.err (!%p3589_p4)
}
  0xb5   :  { %s3593_s3 = scalar_lea.vmem %s83_s15, 1536  ;;  %p3598_p6 = scmp.lt.s32.totalorder %s83_s15, %s83_s15 }
  0xb6   :  { %p3594_p5 = scmp.ne.s32.totalorder %s83_s15, %s3593_s3  ;;  %p3599_p7 = scmp.lt.s32.totalorder %s3593_s3, %s3593_s3 }
  0xb8   :  { %p3600_p8 = por %p3599_p7, %p3598_p6 }
  0xba   :  { %p3601_p9 = pnand %p3600_p8, %p3594_p5 }
  0xbc   :  { %3604 = shalt.err (!%p3601_p9)
}
  0xbd   :  { %88 = dma.hbm_to_vmem [thread:$0]  %s4285_s5, 1536, %s83_s15, [#allocation8], %s3735_s30, %s3735_s30, %s3736_s23  }
  0xbe   :  { %s3605_s22 = scalar_lea.hbm %s4287_s7, 32 }
  0xbf   :  { %p3606_p10 = scmp.ne.s32.totalorder %s4287_s7, %s3605_s22  ;;  %p3609_p11 = scmp.lt.u32.totalorder %s3605_s22, %s4287_s7 }
  0xc1   :  { %p3611_p12 = pnand %p3609_p11, %p3606_p10 }
  0xc3   :  { %3614 = shalt.err (!%p3611_p12)
}
  0xc4   :  { %s3615_s8 = scalar_lea.vmem %s108_s24, 32  ;;  %p3620_p0 = scmp.lt.s32.totalorder %s108_s24, %s108_s24 }
  0xc5   :  { %p3616_p13 = scmp.ne.s32.totalorder %s108_s24, %s3615_s8  ;;  %p3621_p1 = scmp.lt.s32.totalorder %s3615_s8, %s3615_s8 }
  0xc7   :  { %p3622_p2 = por %p3621_p1, %p3620_p0 }
  0xc9   :  { %p3623_p3 = pnand %p3622_p2, %p3616_p13 }
  0xcb   :  { %3626 = shalt.err (!%p3623_p3)
}
  0xcc   :  { %110 = dma.hbm_to_vmem [thread:$0]  %s4287_s7, 32, %s108_s24, [#allocation11]  }
  0xcd   :  { %s3750_s26 = smov [#allocation15]   ;;  %s3751_s1 = smov [#allocation18]  }
  0xce   :  { %s128_s29 = sshll.u32 %s3750_s26, 4  ;;  %s153_s0 = sshll.u32 %s3751_s1, 4  ;;  %s129_s29 = int_to_ptr.vmem [resolvable:$true] %s128_s29  ;;  %s154_s0 = int_to_ptr.vmem [resolvable:$true] %s153_s0 }
  0xcf   :  { %s3627_s19 = scalar_lea.hbm %s4289_s9, 12288 }
  0xd0   :  { %p3628_p4 = scmp.ne.s32.totalorder %s4289_s9, %s3627_s19  ;;  %p3631_p5 = scmp.lt.u32.totalorder %s3627_s19, %s4289_s9 }
  0xd2   :  { %p3633_p6 = pnand %p3631_p5, %p3628_p4 }
  0xd4   :  { %3636 = shalt.err (!%p3633_p6)
}
  0xd5   :  { %s3637_s7 = scalar_lea.vmem %s129_s29, 12288  ;;  %p3642_p8 = scmp.lt.s32.totalorder %s129_s29, %s129_s29 }
  0xd6   :  { %p3638_p7 = scmp.ne.s32.totalorder %s129_s29, %s3637_s7  ;;  %p3643_p9 = scmp.lt.s32.totalorder %s3637_s7, %s3637_s7 }
  0xd8   :  { %p3644_p10 = por %p3643_p9, %p3642_p8 }
  0xda   :  { %p3645_p11 = pnand %p3644_p10, %p3638_p7 }
  0xdc   :  { %3648 = shalt.err (!%p3645_p11)
}
  0xdd   :  { %134 = dma.hbm_to_vmem [thread:$0]  %s4289_s9, 12288, %s129_s29, [#allocation14], %s3735_s30, %s3735_s30, %s3736_s23  }
  0xde   :  { %s3649_s25 = scalar_lea.hbm %s4291_s11, 32 }
  0xdf   :  { %p3650_p12 = scmp.ne.s32.totalorder %s4291_s11, %s3649_s25  ;;  %p3653_p13 = scmp.lt.u32.totalorder %s3649_s25, %s4291_s11 }
  0xe1   :  { %p3655_p0 = pnand %p3653_p13, %p3650_p12 }
  0xe3   :  { %3658 = shalt.err (!%p3655_p0)
}
  0xe4   :  { %s3659_s15 = scalar_lea.vmem %s154_s0, 32  ;;  %p3664_p2 = scmp.lt.s32.totalorder %s154_s0, %s154_s0 }
  0xe5   :  { %p3660_p1 = scmp.ne.s32.totalorder %s154_s0, %s3659_s15  ;;  %p3665_p3 = scmp.lt.s32.totalorder %s3659_s15, %s3659_s15 }
  0xe7   :  { %p3666_p4 = por %p3665_p3, %p3664_p2 }
  0xe9   :  { %p3667_p5 = pnand %p3666_p4, %p3660_p1 }
  0xeb   :  { %3670 = shalt.err (!%p3667_p5)
}
  0xec   :  { %156 = dma.hbm_to_vmem [thread:$0]  %s4291_s11, 32, %s154_s0, [#allocation17]  }
  0xed   :  { %s3752_s23 = smov [#allocation21]   ;;  %s3753_s29 = smov [#allocation24]  }
  0xee   :  { %s175_s26 = sshll.u32 %s3752_s23, 4  ;;  %s199_s1 = sshll.u32 %s3753_s29, 4  ;;  %s176_s26 = int_to_ptr.vmem [resolvable:$true] %s175_s26  ;;  %s200_s1 = int_to_ptr.vmem [resolvable:$true] %s199_s1 }
  0xef   :  { %s3671_s19 = scalar_lea.hbm %s4293_s13, 16 }
  0xf0   :  { %p3672_p6 = scmp.ne.s32.totalorder %s4293_s13, %s3671_s19  ;;  %p3675_p7 = scmp.lt.u32.totalorder %s3671_s19, %s4293_s13 }
  0xf2   :  { %p3677_p8 = pnand %p3675_p7, %p3672_p6 }
  0xf4   :  { %3680 = shalt.err (!%p3677_p8)
}
  0xf5   :  { %s3681_s11 = scalar_lea.vmem %s176_s26, 16  ;;  %s3685_s0 = scalar_lea.vmem %s176_s26, 32 }
  0xf6   :  { %p3682_p9 = scmp.ne.s32.totalorder %s176_s26, %s3681_s11  ;;  %p3686_p10 = scmp.lt.s32.totalorder %s176_s26, %s176_s26 }
  0xf7   :  { %p3687_p11 = scmp.lt.s32.totalorder %s3685_s0, %s3681_s11 }
  0xf9   :  { %p3688_p12 = por %p3687_p11, %p3686_p10 }
  0xfb   :  { %p3689_p13 = pnand %p3688_p12, %p3682_p9 }
  0xfd   :  { %3692 = shalt.err (!%p3689_p13)
}
  0xfe   :  { %178 = dma.hbm_to_vmem [thread:$0]  %s4293_s13, 16, %s176_s26, [#allocation20]  }
  0xff   :  { %s3693_s21 = scalar_lea.hbm %s4297_s17, 16 }
 0x100   :  { %p3694_p0 = scmp.ne.s32.totalorder %s4297_s17, %s3693_s21  ;;  %p3697_p1 = scmp.lt.u32.totalorder %s3693_s21, %s4297_s17 }
 0x102   :  { %p3699_p2 = pnand %p3697_p1, %p3694_p0 }
 0x104   :  { %3702 = shalt.err (!%p3699_p2)
}
 0x105   :  { %s3703_s5 = scalar_lea.vmem %s200_s1, 16  ;;  %s3707_s15 = scalar_lea.vmem %s200_s1, 32 }
 0x106   :  { %p3704_p3 = scmp.ne.s32.totalorder %s200_s1, %s3703_s5  ;;  %p3708_p4 = scmp.lt.s32.totalorder %s200_s1, %s200_s1 }
 0x107   :  { %p3709_p5 = scmp.lt.s32.totalorder %s3707_s15, %s3703_s5 }
 0x109   :  { %p3710_p6 = por %p3709_p5, %p3708_p4 }
 0x10b   :  { %p3711_p7 = pnand %p3710_p6, %p3704_p3 }
 0x10d   :  { %3714 = shalt.err (!%p3711_p7)
}
 0x10e   :  { %202 = dma.hbm_to_vmem [thread:$0]  %s4297_s17, 16, %s200_s1, [#allocation23]  }
 0x10f   :  { %3715 = dma.done.wait [#allocation3], 4608  }
 0x110   :  { %3716 = vsyncadd [#allocation3], 4294962688 }
 0x111   :  { %3717 = dma.done.wait [#allocation5], 36960  }
 0x112   :  { %3718 = vsyncadd [#allocation5], 4294930336 }
 0x113   :  { %3719 = dma.done.wait [#allocation8], 1584  }
 0x114   :  { %3720 = vsyncadd [#allocation8], 4294965712 }
 0x115   :  { %3721 = dma.done.wait [#allocation11], 12320  }
 0x116   :  { %3722 = vsyncadd [#allocation11], 4294954976 }
 0x117   :  { %3723 = dma.done.wait [#allocation14], 13824  }
 0x118   :  { %3724 = vsyncadd [#allocation14], 4294953472 }
 0x119   :  { %3725 = dma.done.wait [#allocation17], 8224  }
 0x11a   :  { %3726 = vsyncadd [#allocation17], 4294959072 }
 0x11b   :  { %3727 = dma.done.wait [#allocation20], 4112  }
 0x11c   :  { %3728 = vsyncadd [#allocation20], 4294963184 }
 0x11d   :  { %3729 = dma.done.wait [#allocation23], 32  }
 0x11e   :  { %3730 = vsyncadd [#allocation23], 4294967264  ;;  %v3754_v0 = vmov 0.0   ;;  %v250_v1 = vld [vmem:[#allocation2 + $0x8] sm:$0xff]  ;;  %v256_v2 = vld [vmem:[#allocation2 + $0x38] sm:$0xff]  ;;  %vm321_vm0 = vcmask 1041408  }
 0x11f   :  { %404 = vmatprep.mubr.f32.mxu0 %v3754_v0  ;;  %475 = vmatprep.mubr.f32.mxu1 %v3754_v0  ;;  %v249_v3 = vld [vmem:[#allocation2] sm:$0xff]  ;;  %v2659_v4 = vpack.c.bf16 %v256_v2, %v250_v1  ;;  %v255_v5 = vld [vmem:[#allocation2 + $0x30] sm:$0xff]  ;;  %v262_v6 = vld [vmem:[#allocation2 + $0x68] sm:$0xff]  ;;  %vm3755_vm1 = vmmov 1   ;;  %s4309_s23 = sld [smem:[#allocation33_spill]]  ;;  %vm317_vm3 = vcmask 343040  }
 0x120   :  { %v268_v7 = vld [vmem:[#allocation2 + $0x98] sm:$0xff]  ;;  %v2661_v8 = vpack.c.bf16 %v255_v5, %v249_v3  ;;  %v261_v10 = vld [vmem:[#allocation2 + $0x60] sm:$0xff]  ;;  %v267_v11 = vld [vmem:[#allocation2 + $0x90] sm:$0xff]  ;;  %vm3757_vm4 = vmmov 0   ;;  %vm2332_vm5 = vcmask 523264   ;;  %vm2406_vm6 = vcmask 64512  }
 0x121   :  { %v2663_v9 = vpack.c.bf16 %v268_v7, %v262_v6  ;;  %v274_v12 = vld [vmem:[#allocation2 + $0xc8] sm:$0xff]  ;;  %2660 = vmatprep.subr.bf16.mxu0 %v2659_v4  ;;  %v280_v13 = vld [vmem:[#allocation2 + $0xf8] sm:$0x3]  ;;  %vm4071_vm2 = vmpackc.low %vm321_vm0, %vm3755_vm1  ;;  %v2665_v16 = vpack.c.bf16 %v267_v11, %v261_v10 }
 0x122   :  { %v273_v15 = vld [vmem:[#allocation2 + $0xc0] sm:$0xff]  ;;  %2662 = vmatpush1.bf16.msra.mxu0 %v2661_v8  ;;  %v279_v17 = vld [vmem:[#allocation2 + $0xf0] sm:$0x3]  ;;  %v252_v18 = vld [vmem:[#allocation2 + $0x18] sm:$0xff]  ;;  %v2667_v20 = vpack.c.bf16 %v280_v13, %v274_v12 }
 0x123   :  { %v258_v19 = vld [vmem:[#allocation2 + $0x48] sm:$0xff]  ;;  %2664 = vmatprep.subr.bf16.mxu0 %v2663_v9  ;;  %v251_v22 = vld [vmem:[#allocation2 + $0x10] sm:$0xff]  ;;  %v257_v23 = vld [vmem:[#allocation2 + $0x40] sm:$0xff]  ;;  %v2670_v32 = vpack.c.bf16 %v279_v17, %v273_v15 }
 0x124   :  { %v2673_v21 = vpack.c.bf16 %v258_v19, %v252_v18  ;;  %v264_v24 = vld [vmem:[#allocation2 + $0x78] sm:$0xff]  ;;  %v2675_v25 = vpack.c.bf16 %v257_v23, %v251_v22  ;;  %v270_v26 = vld [vmem:[#allocation2 + $0xa8] sm:$0xff]  ;;  %v263_v27 = vld [vmem:[#allocation2 + $0x70] sm:$0xff] }
 0x125   :  { %v269_v28 = vld [vmem:[#allocation2 + $0xa0] sm:$0xff]  ;;  %v2677_v29 = vpack.c.bf16 %v270_v26, %v264_v24  ;;  %v276_v30 = vld [vmem:[#allocation2 + $0xd8] sm:$0xff]  ;;  %v282_v31 = vld [vmem:[#allocation2 + $0x108] sm:$0x3] }
 0x126   :  { %2674 = vmatprep.subr.bf16.mxu1 %v2673_v21  ;;  %2666 = vmatpush1.bf16.msra.mxu0 %v2665_v16  ;;  %v2679_v33 = vpack.c.bf16 %v269_v28, %v263_v27  ;;  %v275_v34 = vld [vmem:[#allocation2 + $0xd0] sm:$0xff]  ;;  %v254_v35 = vld [vmem:[#allocation2 + $0x28] sm:$0xff]  ;;  %v260_v36 = vld [vmem:[#allocation2 + $0x58] sm:$0xff]  ;;  %v2681_v37 = vpack.c.bf16 %v282_v31, %v276_v30 }
 0x127   :  { %2676 = vmatpush1.bf16.msra.mxu1 %v2675_v25  ;;  %2669 = vmatprep.subr.msk.bf16.mxu0 %vm4071_vm2, %v2667_v20  ;;  %v281_v38 = vld [vmem:[#allocation2 + $0x100] sm:$0x3]  ;;  %v2687_v39 = vpack.c.bf16 %v260_v36, %v254_v35  ;;  %v259_v41 = vld [vmem:[#allocation2 + $0x50] sm:$0xff]  ;;  %v266_v42 = vld [vmem:[#allocation2 + $0x88] sm:$0xff] }
 0x128   :  { %2678 = vmatprep.subr.bf16.mxu1 %v2677_v29  ;;  %v253_v40 = vld [vmem:[#allocation2 + $0x20] sm:$0xff]  ;;  %v272_v43 = vld [vmem:[#allocation2 + $0xb8] sm:$0xff]  ;;  %v2684_v46 = vpack.c.bf16 %v281_v38, %v275_v34  ;;  %v271_v48 = vld [vmem:[#allocation2 + $0xb0] sm:$0xff] }
 0x129   :  { %v4080_v44 = vld [vmem:[%s4309_s23] sm:$0xff]  ;;  %v2689_v47 = vpack.c.bf16 %v259_v41, %v253_v40  ;;  %v560_v49 = vld [vmem:[#allocation6 + $0x8] sm:$0xff]  ;;  %v2691_v51 = vpack.c.bf16 %v272_v43, %v266_v42  ;;  %v284_v55 = vld [vmem:[#allocation2 + $0x118] sm:$0x3] }
 0x12a   :  { %v265_v45 = vld [vmem:[#allocation2 + $0x80] sm:$0xff]  ;;  %2672 = vmatpush1.bf16.msk.msra.mxu0 %vm4071_vm2, %v2670_v32  ;;  %v278_v52 = vld [vmem:[#allocation2 + $0xe8] sm:$0xff]  ;;  %v569_v58 = vld [vmem:[#allocation6 + $0x50] sm:$0xff] }
 0x12b   :  { %2680 = vmatpush1.bf16.msra.mxu1 %v2679_v33  ;;  %v563_v50 = vld [vmem:[#allocation6 + $0x20] sm:$0xff]  ;;  %2688 = vmatprep.subr.bf16.mxu0 %v2687_v39  ;;  %v562_v54 = vld [vmem:[#allocation6 + $0x18] sm:$0xff]  ;;  %v2693_v59 = vpack.c.bf16 %v271_v48, %v265_v45  ;;  %v2695_v62 = vpack.c.bf16 %v284_v55, %v278_v52  ;;  %v283_v63 = vld [vmem:[#allocation2 + $0x110] sm:$0x3] }
 0x12c   :  { %2683 = vmatprep.subr.msk.bf16.mxu1 %vm4071_vm2, %v2681_v37  ;;  %v559_v53 = vld [vmem:[#allocation6] sm:$0xff]  ;;  %v2701_v56 = vpack.c.bf16 %v563_v50, %v560_v49  ;;  %v566_v57 = vld [vmem:[#allocation6 + $0x38] sm:$0xff]  ;;  %v565_v2 = vld [vmem:[#allocation6 + $0x30] sm:$0xff] }
 0x12d   :  { %2422 = vmatmul.mubr.msk.f32.vlgmr.msra.gmra.mrb[0].mxu0 %vm317_vm3, %v4080_v44  ;;  %v277_v60 = vld [vmem:[#allocation2 + $0xe0] sm:$0xff]  ;;  %v2703_v61 = vpack.c.bf16 %v562_v54, %v559_v53  ;;  %v2705_v1 = vpack.c.bf16 %v569_v58, %v566_v57  ;;  %v568_v3 = vld [vmem:[#allocation6 + $0x48] sm:$0xff]  ;;  %v581_v12 = vld [vmem:[#allocation6 + $0xb0] sm:$0xff] }
 0x12e   :  { %2690 = vmatpush1.bf16.msra.mxu0 %v2689_v47  ;;  %546 = vmatprep.mubr.f32.mxu0 %v3754_v0  ;;  %v572_v4 = vld [vmem:[#allocation6 + $0x68] sm:$0xff]  ;;  %v575_v5 = vld [vmem:[#allocation6 + $0x80] sm:$0xff]  ;;  %v2698_v6 = vpack.c.bf16 %v283_v63, %v277_v60  ;;  %v2707_v7 = vpack.c.bf16 %v568_v3, %v565_v2  ;;  %v574_v10 = vld [vmem:[#allocation6 + $0x78] sm:$0xff] }
 0x12f   :  { %2686 = vmatpush1.bf16.msk.msra.mxu1 %vm4071_vm2, %v2684_v46  ;;  %2692 = vmatprep.subr.bf16.mxu0 %v2691_v51  ;;  %v2709_v8 = vpack.c.bf16 %v575_v5, %v572_v4  ;;  %v571_v9 = vld [vmem:[#allocation6 + $0x60] sm:$0xff]  ;;  %v578_v11 = vld [vmem:[#allocation6 + $0x98] sm:$0xff]  ;;  %v609_v13 = vld [vmem:[#allocation6 + $0x190] sm:$0xff] }
 0x130   :  { %2702 = vmatprep.subr.bf16.mxu1 %v2701_v56  ;;  %v2711_v15 = vpack.c.bf16 %v574_v10, %v571_v9  ;;  %v577_v16 = vld [vmem:[#allocation6 + $0x90] sm:$0xff]  ;;  %v580_v17 = vld [vmem:[#allocation6 + $0xa8] sm:$0xff]  ;;  %v2713_v19 = vpack.c.bf16 %v581_v12, %v578_v11  ;;  %v587_v24 = vld [vmem:[#allocation6 + $0xe0] sm:$0xff] }
 0x131   :  { %v612_v18 = vld [vmem:[#allocation6 + $0x1a8] sm:$0xff]  ;;  %v561_v22 = vld [vmem:[#allocation6 + $0x10] sm:$0xff]  ;;  %v615_v26 = vld [vmem:[#allocation6 + $0x1c0] sm:$0xff]  ;;  %v2715_v30 = vpack.c.bf16 %v580_v17, %v577_v16 }
 0x132   :  { %2425 = vmatmul.mubr.msk.f32.vlgmr.msra.gmra.mrb[0].mxu1 %vm317_vm3, %v4080_v44  ;;  %2694 = vmatpush1.bf16.msra.mxu0 %v2693_v59  ;;  %v584_v20 = vld [vmem:[#allocation6 + $0xc8] sm:$0xff]  ;;  %v2893_v21 = vpack.c.bf16 %v612_v18, %v609_v13  ;;  %v618_v27 = vld [vmem:[#allocation6 + $0x1d8] sm:$0xff]  ;;  %v567_v29 = vld [vmem:[#allocation6 + $0x40] sm:$0xff] }
 0x133   :  { %2704 = vmatpush1.bf16.msra.mxu1 %v2703_v61  ;;  %2697 = vmatprep.subr.msk.bf16.mxu0 %vm4071_vm2, %v2695_v62  ;;  %v564_v23 = vld [vmem:[#allocation6 + $0x28] sm:$0xff]  ;;  %v2897_v28 = vpack.c.bf16 %v618_v27, %v615_v26  ;;  %v583_v31 = vld [vmem:[#allocation6 + $0xc0] sm:$0xff]  ;;  %v586_v32 = vld [vmem:[#allocation6 + $0xd8] sm:$0xff]  ;;  %v2717_v34 = vpack.c.bf16 %v587_v24, %v584_v20 }
 0x134   :  { %2706 = vmatprep.subr.bf16.mxu1 %v2705_v1  ;;  %v2895_v25 = vpack.c.bf16 %v564_v23, %v561_v22  ;;  %v570_v33 = vld [vmem:[#allocation6 + $0x58] sm:$0xff]  ;;  %v621_v37 = vld [vmem:[#allocation6 + $0x1f0] sm:$0xff]  ;;  %v624_v38 = vld [vmem:[#allocation6 + $0x208] sm:$0xff] }
 0x135   :  { %v590_v35 = vld [vmem:[#allocation6 + $0xf8] sm:$0xff]  ;;  %v2899_v36 = vpack.c.bf16 %v570_v33, %v567_v29  ;;  %v593_v39 = vld [vmem:[#allocation6 + $0x110] sm:$0xff]  ;;  %v2901_v40 = vpack.c.bf16 %v624_v38, %v621_v37  ;;  %v576_v42 = vld [vmem:[#allocation6 + $0x88] sm:$0xff] }
 0x136   :  { %2700 = vmatpush1.bf16.msk.msra.mxu0 %vm4071_vm2, %v2698_v6  ;;  %v573_v41 = vld [vmem:[#allocation6 + $0x70] sm:$0xff]  ;;  %v627_v43 = vld [vmem:[#allocation6 + $0x220] sm:$0xff]  ;;  %v592_v46 = vld [vmem:[#allocation6 + $0x108] sm:$0xff]  ;;  %v2721_v49 = vpack.c.bf16 %v593_v39, %v590_v35 }
 0x137   :  { %2708 = vmatpush1.bf16.msra.mxu1 %v2707_v7  ;;  %2894 = vmatprep.subr.bf16.mxu0 %v2893_v21  ;;  %v589_v45 = vld [vmem:[#allocation6 + $0xf0] sm:$0xff]  ;;  %v2903_v47 = vpack.c.bf16 %v576_v42, %v573_v41  ;;  %v630_v48 = vld [vmem:[#allocation6 + $0x238] sm:$0xff]  ;;  %v596_v50 = vld [vmem:[#allocation6 + $0x128] sm:$0xff] }
 0x138   :  { %2710 = vmatprep.subr.bf16.mxu1 %v2709_v8  ;;  %v2905_v51 = vpack.c.bf16 %v630_v48, %v627_v43  ;;  %v579_v52 = vld [vmem:[#allocation6 + $0xa0] sm:$0xff]  ;;  %v582_v53 = vld [vmem:[#allocation6 + $0xb8] sm:$0xff]  ;;  %v633_v55 = vld [vmem:[#allocation6 + $0x250] sm:$0xff]  ;;  %v2723_v57 = vpack.c.bf16 %v592_v46, %v589_v45 }
 0x139   :  { %2428 = vmatmul.mubr.msk.f32.vlgmr.msra.gmra.mrb[2].mxu0 %vm317_vm3, %v4080_v44  ;;  %v2719_v44 = vpack.c.bf16 %v586_v32, %v583_v31  ;;  %v599_v54 = vld [vmem:[#allocation6 + $0x140] sm:$0xff]  ;;  %v636_v56 = vld [vmem:[#allocation6 + $0x268] sm:$0xff]  ;;  %v598_v59 = vld [vmem:[#allocation6 + $0x138] sm:$0xff]  ;;  %v2907_v60 = vpack.c.bf16 %v582_v53, %v579_v52 }
 0x13a   :  { %2896 = vmatpush3.bf16.msra.mxu0 %v2895_v25  ;;  %v595_v58 = vld [vmem:[#allocation6 + $0x120] sm:$0xff]  ;;  %v2725_v61 = vpack.c.bf16 %v599_v54, %v596_v50  ;;  %v602_v62 = vld [vmem:[#allocation6 + $0x158] sm:$0xff]  ;;  %v2909_v63 = vpack.c.bf16 %v636_v56, %v633_v55  ;;  %v585_v1 = vld [vmem:[#allocation6 + $0xd0] sm:$0xff] }
 0x13b   :  { %2712 = vmatpush1.bf16.msra.mxu1 %v2711_v15  ;;  %2898 = vmatprep.subr.bf16.mxu0 %v2897_v28  ;;  %v588_v2 = vld [vmem:[#allocation6 + $0xe8] sm:$0xff]  ;;  %v605_v3 = vld [vmem:[#allocation6 + $0x170] sm:$0xff]  ;;  %v639_v4 = vld [vmem:[#allocation6 + $0x280] sm:$0xff]  ;;  %v2727_v6 = vpack.c.bf16 %v598_v59, %v595_v58 }
 0x13c   :  { %2714 = vmatprep.subr.bf16.mxu1 %v2713_v19  ;;  %v642_v5 = vld [vmem:[#allocation6 + $0x298] sm:$0xff]  ;;  %v601_v7 = vld [vmem:[#allocation6 + $0x150] sm:$0xff]  ;;  %v604_v8 = vld [vmem:[#allocation6 + $0x168] sm:$0xff]  ;;  %v2911_v9 = vpack.c.bf16 %v588_v2, %v585_v1  ;;  %v2729_v10 = vpack.c.bf16 %v605_v3, %v602_v62 }
 0x13d   :  { %v608_v11 = vld [vmem:[#allocation6 + $0x188] sm:$0xff]  ;;  %v2913_v12 = vpack.c.bf16 %v642_v5, %v639_v4  ;;  %v591_v13 = vld [vmem:[#allocation6 + $0x100] sm:$0xff]  ;;  %v594_v15 = vld [vmem:[#allocation6 + $0x118] sm:$0xff]  ;;  %v2731_v19 = vpack.c.bf16 %v604_v8, %v601_v7 }
 0x13e   :  { %2900 = vmatpush3.bf16.msra.mxu0 %v2899_v36  ;;  %v611_v16 = vld [vmem:[#allocation6 + $0x1a0] sm:$0xff]  ;;  %v645_v17 = vld [vmem:[#allocation6 + $0x2b0] sm:$0xff]  ;;  %v648_v18 = vld [vmem:[#allocation6 + $0x2c8] sm:$0xff]  ;;  %v2915_v21 = vpack.c.bf16 %v594_v15, %v591_v13 }
 0x13f   :  { %2716 = vmatpush1.bf16.msra.mxu1 %v2715_v30  ;;  %2902 = vmatprep.subr.bf16.mxu0 %v2901_v40  ;;  %v607_v20 = vld [vmem:[#allocation6 + $0x180] sm:$0xff]  ;;  %v2733_v22 = vpack.c.bf16 %v611_v16, %v608_v11  ;;  %v610_v23 = vld [vmem:[#allocation6 + $0x198] sm:$0xff]  ;;  %v2917_v24 = vpack.c.bf16 %v648_v18, %v645_v17  ;;  %v597_v25 = vld [vmem:[#allocation6 + $0x130] sm:$0xff] }
 0x140   :  { %2718 = vmatprep.subr.bf16.mxu1 %v2717_v34  ;;  %v600_v26 = vld [vmem:[#allocation6 + $0x148] sm:$0xff]  ;;  %v614_v27 = vld [vmem:[#allocation6 + $0x1b8] sm:$0xff]  ;;  %v617_v28 = vld [vmem:[#allocation6 + $0x1d0] sm:$0xff]  ;;  %v2735_v29 = vpack.c.bf16 %v610_v23, %v607_v20 }
 0x141   :  { %v2919_v30 = vpack.c.bf16 %v600_v26, %v597_v25  ;;  %v2737_v31 = vpack.c.bf16 %v617_v28, %v614_v27  ;;  %v613_v32 = vld [vmem:[#allocation6 + $0x1b0] sm:$0xff]  ;;  %v616_v33 = vld [vmem:[#allocation6 + $0x1c8] sm:$0xff]  ;;  %v623_v35 = vld [vmem:[#allocation6 + $0x200] sm:$0xff] }
 0x142   :  { %2904 = vmatpush3.bf16.msra.mxu0 %v2903_v47  ;;  %v620_v34 = vld [vmem:[#allocation6 + $0x1e8] sm:$0xff]  ;;  %v2739_v36 = vpack.c.bf16 %v616_v33, %v613_v32  ;;  %v619_v38 = vld [vmem:[#allocation6 + $0x1e0] sm:$0xff]  ;;  %v622_v39 = vld [vmem:[#allocation6 + $0x1f8] sm:$0xff] }
 0x143   :  { %2720 = vmatpush1.bf16.msra.mxu1 %v2719_v44  ;;  %2906 = vmatprep.subr.bf16.mxu0 %v2905_v51  ;;  %v2741_v37 = vpack.c.bf16 %v623_v35, %v620_v34  ;;  %v626_v40 = vld [vmem:[#allocation6 + $0x218] sm:$0xff]  ;;  %v629_v41 = vld [vmem:[#allocation6 + $0x230] sm:$0xff]  ;;  %v2743_v42 = vpack.c.bf16 %v622_v39, %v619_v38  ;;  %v628_v45 = vld [vmem:[#allocation6 + $0x228] sm:$0xff] }
 0x144   :  { %2722 = vmatprep.subr.bf16.mxu1 %v2721_v49  ;;  %v2745_v43 = vpack.c.bf16 %v629_v41, %v626_v40  ;;  %v625_v44 = vld [vmem:[#allocation6 + $0x210] sm:$0xff]  ;;  %v632_v46 = vld [vmem:[#allocation6 + $0x248] sm:$0xff]  ;;  %v635_v47 = vld [vmem:[#allocation6 + $0x260] sm:$0xff] }
 0x145   :  { %v2747_v48 = vpack.c.bf16 %v628_v45, %v625_v44  ;;  %v2749_v49 = vpack.c.bf16 %v635_v47, %v632_v46  ;;  %v631_v50 = vld [vmem:[#allocation6 + $0x240] sm:$0xff]  ;;  %v634_v51 = vld [vmem:[#allocation6 + $0x258] sm:$0xff]  ;;  %v641_v53 = vld [vmem:[#allocation6 + $0x290] sm:$0xff] }
 0x146   :  { %2908 = vmatpush3.bf16.msra.mxu0 %v2907_v60  ;;  %v638_v52 = vld [vmem:[#allocation6 + $0x278] sm:$0xff]  ;;  %v2751_v54 = vpack.c.bf16 %v634_v51, %v631_v50  ;;  %v637_v56 = vld [vmem:[#allocation6 + $0x270] sm:$0xff]  ;;  %v644_v58 = vld [vmem:[#allocation6 + $0x2a8] sm:$0xff] }
 0x147   :  { %2724 = vmatpush1.bf16.msra.mxu1 %v2723_v57  ;;  %2910 = vmatprep.subr.bf16.mxu0 %v2909_v63  ;;  %v2753_v55 = vpack.c.bf16 %v641_v53, %v638_v52  ;;  %v640_v57 = vld [vmem:[#allocation6 + $0x288] sm:$0xff]  ;;  %v647_v59 = vld [vmem:[#allocation6 + $0x2c0] sm:$0xff]  ;;  %v646_v63 = vld [vmem:[#allocation6 + $0x2b8] sm:$0xff] }
 0x148   :  { %2726 = vmatprep.subr.bf16.mxu1 %v2725_v61  ;;  %v2755_v60 = vpack.c.bf16 %v640_v57, %v637_v56  ;;  %v2757_v61 = vpack.c.bf16 %v647_v59, %v644_v58  ;;  %v643_v62 = vld [vmem:[#allocation6 + $0x2a0] sm:$0xff]  ;;  %v650_v2 = vld [vmem:[#allocation6 + $0x2d8] sm:$0xff]  ;;  %v653_v3 = vld [vmem:[#allocation6 + $0x2f0] sm:$0xff] }
 0x149   :  { %v2759_v1 = vpack.c.bf16 %v646_v63, %v643_v62  ;;  %v651_v4 = vld [vmem:[#allocation6 + $0x2e0] sm:$0xff]  ;;  %v2761_v5 = vpack.c.bf16 %v653_v3, %v650_v2  ;;  %v649_v7 = vld [vmem:[#allocation6 + $0x2d0] sm:$0xff]  ;;  %v652_v8 = vld [vmem:[#allocation6 + $0x2e8] sm:$0xff] }
 0x14a   :  { %2912 = vmatpush3.bf16.msra.mxu0 %v2911_v9  ;;  %v603_v11 = vld [vmem:[#allocation6 + $0x160] sm:$0xff]  ;;  %v656_v15 = vld [vmem:[#allocation6 + $0x308] sm:$0xff]  ;;  %v705_v17 = vld [vmem:[#allocation6 + $0x490] sm:$0xff] }
 0x14b   :  { %2728 = vmatpush1.bf16.msra.mxu1 %v2727_v6  ;;  %2914 = vmatprep.subr.bf16.mxu0 %v2913_v12  ;;  %v654_v6 = vld [vmem:[#allocation6 + $0x2f8] sm:$0xff]  ;;  %v659_v16 = vld [vmem:[#allocation6 + $0x320] sm:$0xff]  ;;  %v657_v34 = vld [vmem:[#allocation6 + $0x310] sm:$0xff] }
 0x14c   :  { %2730 = vmatprep.subr.bf16.mxu1 %v2729_v10  ;;  %v2921_v9 = vpack.c.bf16 %v654_v6, %v651_v4  ;;  %v2763_v10 = vpack.c.bf16 %v652_v8, %v649_v7  ;;  %v606_v12 = vld [vmem:[#allocation6 + $0x178] sm:$0xff]  ;;  %v2765_v18 = vpack.c.bf16 %v659_v16, %v656_v15  ;;  %v660_v35 = vld [vmem:[#allocation6 + $0x328] sm:$0xff]  ;;  %v665_v38 = vld [vmem:[#allocation6 + $0x350] sm:$0xff] }
 0x14d   :  { %v2923_v13 = vpack.c.bf16 %v606_v12, %v603_v11  ;;  %v711_v39 = vld [vmem:[#allocation6 + $0x4c0] sm:$0xff]  ;;  %v714_v40 = vld [vmem:[#allocation6 + $0x4d8] sm:$0xff]  ;;  %v2927_v44 = vpack.c.bf16 %v660_v35, %v657_v34  ;;  %v661_v45 = vld [vmem:[#allocation6 + $0x330] sm:$0xff] }
 0x14e   :  { %2916 = vmatpush3.bf16.msra.mxu0 %v2915_v21  ;;  %v287_v21 = vlaneseq  ;;  %v664_v46 = vld [vmem:[#allocation6 + $0x348] sm:$0xff]  ;;  %v2929_v50 = vpack.c.bf16 %v714_v40, %v711_v39  ;;  %v663_v51 = vld [vmem:[#allocation6 + $0x340] sm:$0xff]  ;;  %v666_v52 = vld [vmem:[#allocation6 + $0x358] sm:$0xff] }
 0x14f   :  { %2732 = vmatpush1.bf16.msra.mxu1 %v2731_v19  ;;  %2918 = vmatprep.subr.bf16.mxu0 %v2917_v24  ;;  %v708_v19 = vld [vmem:[#allocation6 + $0x4a8] sm:$0xff]  ;;  %v4104_v24 = vld [vmem:[#allocation4] sm:$0x3f]  ;;  %v717_v56 = vld [vmem:[#allocation6 + $0x4f0] sm:$0xff]  ;;  %v2771_v59 = vpack.c.bf16 %v664_v46, %v661_v45 }
 0x150   :  { %2734 = vmatprep.subr.bf16.mxu1 %v2733_v22  ;;  %v2925_v20 = vpack.c.bf16 %v708_v19, %v705_v17  ;;  %v4099_v22 = vshrl.u32 %v287_v21, 7  ;;  %v668_v53 = vld [vmem:[#allocation6 + $0x368] sm:$0xff]  ;;  %v670_v62 = vld [vmem:[#allocation6 + $0x378] sm:$0xff]  ;;  %v669_v3 = vld [vmem:[#allocation6 + $0x370] sm:$0xff] }
 0x151   :  { %v720_v57 = vld [vmem:[#allocation6 + $0x508] sm:$0xff]  ;;  %v677_v6 = vld [vmem:[#allocation6 + $0x3b0] sm:$0xff]  ;;  %v723_v7 = vld [vmem:[#allocation6 + $0x520] sm:$0xff] }
 0x152   :  { %2920 = vmatpush3.bf16.msra.mxu0 %v2919_v30  ;;  %v4102_v23 = vsub.s32 0, %v4099_v22  ;;  %v4107_v25 = vsub.s32 1, %v4099_v22  ;;  %v301_v28 = vsub.s32 3, %v4099_v22  ;;  %v655_v30 = vld [vmem:[#allocation6 + $0x300] sm:$0xff]  ;;  %v2933_v2 = vpack.c.bf16 %v720_v57, %v717_v56  ;;  %v672_v4 = vld [vmem:[#allocation6 + $0x388] sm:$0xff]  ;;  %v726_v8 = vld [vmem:[#allocation6 + $0x538] sm:$0xff] }
 0x153   :  { %2736 = vmatpush1.bf16.msra.mxu1 %v2735_v29  ;;  %2922 = vmatprep.subr.bf16.mxu0 %v2921_v9  ;;  %v673_v11 = vld [vmem:[#allocation6 + $0x390] sm:$0xff]  ;;  %v676_v12 = vld [vmem:[#allocation6 + $0x3a8] sm:$0xff]  ;;  %v2937_v16 = vpack.c.bf16 %v726_v8, %v723_v7  ;;  %v675_v17 = vld [vmem:[#allocation6 + $0x3a0] sm:$0xff] }
 0x154   :  { %2738 = vmatprep.subr.bf16.mxu1 %v2737_v31  ;;  %v290_v26 = vrot.slane %v4104_v24, %v4102_v23  ;;  %v294_v27 = vrot.slane %v4104_v24, %v4107_v25  ;;  %v658_v31 = vld [vmem:[#allocation6 + $0x318] sm:$0xff]  ;;  %v302_v41 = vrot.slane %v4104_v24, %v301_v28  ;;  %v680_v19 = vld [vmem:[#allocation6 + $0x3c8] sm:$0xff]  ;;  %v683_v21 = vld [vmem:[#allocation6 + $0x3e0] sm:$0xff]  ;;  %v2779_v28 = vpack.c.bf16 %v676_v12, %v673_v11 }
 0x155   :  { %v681_v34 = vld [vmem:[#allocation6 + $0x3d0] sm:$0xff]  ;;  %v684_v35 = vld [vmem:[#allocation6 + $0x3e8] sm:$0xff]  ;;  %v738_v39 = vld [vmem:[#allocation6 + $0x598] sm:$0xff] }
 0x156   :  { %2924 = vmatpush3.bf16.msra.mxu0 %v2923_v13  ;;  %v687_v46 = vld [vmem:[#allocation6 + $0x400] sm:$0xff]  ;;  %v694_v57 = vld [vmem:[#allocation6 + $0x438] sm:$0xff]  ;;  %v697_v7 = vld [vmem:[#allocation6 + $0x450] sm:$0xff] }
 0x157   :  { %2740 = vmatpush1.bf16.msra.mxu1 %v2739_v36  ;;  %2926 = vmatprep.subr.bf16.mxu0 %v2925_v20  ;;  %v662_v36 = vld [vmem:[#allocation6 + $0x338] sm:$0xff]  ;;  %v691_v56 = vld [vmem:[#allocation6 + $0x420] sm:$0xff]  ;;  %v700_v8 = vld [vmem:[#allocation6 + $0x468] sm:$0xff] }
 0x158   :  { %2742 = vmatprep.subr.bf16.mxu1 %v2741_v37  ;;  %v699_v11 = vld [vmem:[#allocation6 + $0x460] sm:$0xff]  ;;  %v702_v12 = vld [vmem:[#allocation6 + $0x478] sm:$0xff]  ;;  %v1722_v14 = vld [vmem:[#allocation15 + $0x268] sm:$0xff] }
 0x15b   :  { %2744 = vmatpush1.bf16.msra.mxu1 %v2743_v42 }
 0x15c   :  { %2746 = vmatprep.subr.bf16.mxu1 %v2745_v43  ;;  %v2767_v43 = vpack.c.bf16 %v658_v31, %v655_v30  ;;  %v679_v30 = vld [vmem:[#allocation6 + $0x3c0] sm:$0xff]  ;;  %v682_v31 = vld [vmem:[#allocation6 + $0x3d8] sm:$0xff] }
 0x15d   :  { %v2783_v40 = vpack.c.bf16 %v682_v31, %v679_v30 }
 0x15f   :  { %2748 = vmatpush1.bf16.msra.mxu1 %v2747_v48 }
 0x160   :  { %2750 = vmatprep.subr.bf16.mxu1 %v2749_v49  ;;  %v2769_v49 = vpack.c.bf16 %v665_v38, %v662_v36  ;;  %v686_v36 = vld [vmem:[#allocation6 + $0x3f8] sm:$0xff]  ;;  %v735_v38 = vld [vmem:[#allocation6 + $0x580] sm:$0xff] }
 0x161   :  { %v2945_v45 = vpack.c.bf16 %v738_v39, %v735_v38 }
 0x163   :  { %2752 = vmatpush1.bf16.msra.mxu1 %v2751_v54 }
 0x164   :  { %2754 = vmatprep.subr.bf16.mxu1 %v2753_v55  ;;  %v671_v55 = vld [vmem:[#allocation6 + $0x380] sm:$0xff] }
 0x167   :  { %2756 = vmatpush1.bf16.msra.mxu1 %v2755_v60  ;;  %v2931_v60 = vpack.c.bf16 %v666_v52, %v663_v51  ;;  %v741_v51 = vld [vmem:[#allocation6 + $0x5b0] sm:$0xff]  ;;  %v744_v52 = vld [vmem:[#allocation6 + $0x5c8] sm:$0xff] }
 0x168   :  { %2758 = vmatprep.subr.bf16.mxu1 %v2757_v61  ;;  %v667_v61 = vld [vmem:[#allocation6 + $0x360] sm:$0xff] }
 0x169   :  { %v2775_v9 = vpack.c.bf16 %v670_v62, %v667_v61  ;;  %v696_v61 = vld [vmem:[#allocation6 + $0x448] sm:$0xff]  ;;  %v698_v62 = vld [vmem:[#allocation6 + $0x458] sm:$0xff] }
 0x16b   :  { %2760 = vmatpush1.bf16.msra.mxu1 %v2759_v1  ;;  %v2773_v1 = vpack.c.bf16 %v671_v55, %v668_v53  ;;  %v297_v53 = vsub.s32 2, %v4099_v22 }
 0x16c   :  { %2762 = vmatprep.subr.bf16.mxu1 %v2761_v5  ;;  %v674_v5 = vld [vmem:[#allocation6 + $0x398] sm:$0xff] }
 0x16d   :  { %v2777_v15 = vpack.c.bf16 %v677_v6, %v674_v5  ;;  %v2791_v5 = vpack.c.bf16 %v694_v57, %v691_v56  ;;  %v718_v56 = vld [vmem:[#allocation6 + $0x4f8] sm:$0xff] }
 0x16f   :  { %2764 = vmatpush1.bf16.msra.mxu1 %v2763_v10  ;;  %v2935_v10 = vpack.c.bf16 %v672_v4, %v669_v3  ;;  %v309_v3 = vsub.s32 5, %v4099_v22  ;;  %v298_v4 = vrot.slane %v4104_v24, %v297_v53 }
 0x170   :  { %2766 = vmatprep.subr.bf16.mxu1 %v2765_v18  ;;  %v678_v18 = vld [vmem:[#allocation6 + $0x3b8] sm:$0xff] }
 0x200   :  { %v406_v29 = vpop.f32.mrb[0].mxu0 }
 0x201   :  { %v407_v32 = vadd.f32 %v406_v29, %v290_v26  ;;  %v408_v33 = vpop.f32.mrb[1].mxu0  ;;  %v729_v26 = vld [vmem:[#allocation6 + $0x550] sm:$0xff]  ;;  %v2939_v29 = vpack.c.bf16 %v678_v18, %v675_v17  ;;  %v804_v18 = vld [vmem:[#allocation6 + $0x7a8] sm:$0xff] }
 0x202   :  { %v409_v37 = vadd.f32 %v408_v33, %v294_v27  ;;  %v732_v27 = vld [vmem:[#allocation6 + $0x568] sm:$0xff]  ;;  %v801_v17 = vld [vmem:[#allocation6 + $0x790] sm:$0xff] }
 0x203   :  { %v553_v48 = vmax.f32 %v407_v32, 0.0  ;;  %v2781_v32 = vpack.c.bf16 %v683_v21, %v680_v19  ;;  %v2941_v33 = vpack.c.bf16 %v732_v27, %v729_v26  ;;  %v310_v19 = vrot.slane %v4104_v24, %v309_v3 }
 0x204   :  { %v554_v42 = vmax.f32 %v409_v37, 0.0  ;;  %v689_v37 = vld [vmem:[#allocation6 + $0x410] sm:$0xff]  ;;  %v2795_v26 = vpack.c.bf16 %v700_v8, %v697_v7  ;;  %v2955_v27 = vpack.c.bf16 %v702_v12, %v699_v11  ;;  %v2957_v31 = vpack.c.bf16 %v804_v18, %v801_v17  ;;  %v771_v8 = vld [vmem:[#allocation6 + $0x6a0] sm:$0xff] }
 0x205   :  { %v4115_v47 = vpop.f32.mrb[0].mxu1  ;;  %v731_v11 = vld [vmem:[#allocation6 + $0x560] sm:$0xff]  ;;  %v825_v12 = vld [vmem:[#allocation6 + $0x850] sm:$0xff] }
 0x206   :  { %v479_v54 = vpop.f32.mrb[1].mxu1  ;;  %928 = vmatprep.mubr.f32.mxu1 %v554_v42  ;;  %1141 = vmatprep.mubr.f32.mxu0 %v554_v42  ;;  %v685_v42 = vld [vmem:[#allocation6 + $0x3f0] sm:$0xff]  ;;  %v4128_v21 = vadd.f32 %v4115_v47, %v298_v4  ;;  %v727_v18 = vld [vmem:[#allocation6 + $0x540] sm:$0xff] }
 0x207   :  { %v480_v58 = vadd.f32 %v479_v54, %v302_v41  ;;  %929 = vmatmul.mubr.f32.vlgmr.msra.gmra.mrb[2].mxu1 %v553_v48  ;;  %1142 = vmatmul.mubr.f32.vlgmr.msra.gmra.mrb[4].mxu0 %v553_v48  ;;  %v2943_v41 = vpack.c.bf16 %v684_v35, %v681_v34  ;;  %v690_v48 = vld [vmem:[#allocation6 + $0x418] sm:$0xff]  ;;  %v713_v35 = vld [vmem:[#allocation6 + $0x4d0] sm:$0xff] }
 0x208   :  { %2768 = vmatpush1.bf16.msra.mxu1 %v2767_v43  ;;  %2928 = vmatpush3.bf16.msra.mxu0 %v2927_v44  ;;  %v688_v43 = vld [vmem:[#allocation6 + $0x408] sm:$0xff]  ;;  %v2785_v44 = vpack.c.bf16 %v689_v37, %v686_v36  ;;  %v2947_v55 = vpack.c.bf16 %v690_v48, %v687_v46  ;;  %v710_v34 = vld [vmem:[#allocation6 + $0x4b8] sm:$0xff]  ;;  %v807_v36 = vld [vmem:[#allocation6 + $0x7c0] sm:$0xff]  ;;  %v555_v47 = vmax.f32 %v4128_v21, 0.0 }
 0x209   :  { %v556_v63 = vmax.f32 %v480_v58, 0.0  ;;  %2770 = vmatprep.subr.bf16.mxu1 %v2769_v49  ;;  %2930 = vmatprep.subr.bf16.mxu0 %v2929_v50  ;;  %v692_v49 = vld [vmem:[#allocation6 + $0x428] sm:$0xff]  ;;  %v695_v50 = vld [vmem:[#allocation6 + $0x440] sm:$0xff]  ;;  %v2787_v54 = vpack.c.bf16 %v688_v43, %v685_v42  ;;  %v810_v37 = vld [vmem:[#allocation6 + $0x7d8] sm:$0xff]  ;;  %v2801_v43 = vpack.c.bf16 %v713_v35, %v710_v34 }
 0x20a   :  { %v2789_v58 = vpack.c.bf16 %v695_v50, %v692_v49  ;;  %v712_v42 = vld [vmem:[#allocation6 + $0x4c8] sm:$0xff]  ;;  %v762_v46 = vld [vmem:[#allocation6 + $0x658] sm:$0xff]  ;;  %v719_v49 = vld [vmem:[#allocation6 + $0x500] sm:$0xff] }
 0x20b   :  { %1211 = vmatprep.mubr.f32.mxu0 %v556_v63  ;;  %999 = vmatprep.mubr.f32.mxu1 %v556_v63  ;;  %v701_v63 = vld [vmem:[#allocation6 + $0x470] sm:$0xff]  ;;  %v716_v48 = vld [vmem:[#allocation6 + $0x4e8] sm:$0xff] }
 0x20c   :  { %2772 = vmatpush1.bf16.msra.mxu1 %v2771_v59  ;;  %2932 = vmatpush3.bf16.msra.mxu0 %v2931_v60  ;;  %v4117_v13 = vpop.f32.mrb[2].mxu0  ;;  %v2949_v59 = vpack.c.bf16 %v744_v52, %v741_v51  ;;  %v693_v60 = vld [vmem:[#allocation6 + $0x430] sm:$0xff]  ;;  %v816_v51 = vld [vmem:[#allocation6 + $0x808] sm:$0xff]  ;;  %v2805_v57 = vpack.c.bf16 %v719_v49, %v716_v48  ;;  %v305_v48 = vsub.s32 4, %v4099_v22 }
 0x20d   :  { %2774 = vmatprep.subr.bf16.mxu1 %v2773_v1  ;;  %2934 = vmatprep.subr.bf16.mxu0 %v2933_v2  ;;  %v4119_v20 = vpop.f32.mrb[3].mxu0  ;;  %v747_v1 = vld [vmem:[#allocation6 + $0x5e0] sm:$0xff]  ;;  %v750_v2 = vld [vmem:[#allocation6 + $0x5f8] sm:$0xff]  ;;  %v2951_v6 = vpack.c.bf16 %v696_v61, %v693_v60  ;;  %v813_v50 = vld [vmem:[#allocation6 + $0x7f0] sm:$0xff] }
 0x20e   :  { %v4131_v38 = vadd.f32 %v4119_v20, %v310_v19  ;;  %v768_v60 = vld [vmem:[#allocation6 + $0x688] sm:$0xff]  ;;  %v722_v61 = vld [vmem:[#allocation6 + $0x518] sm:$0xff]  ;;  %v721_v4 = vld [vmem:[#allocation6 + $0x510] sm:$0xff] }
 0x20f   :  { %v730_v19 = vld [vmem:[#allocation6 + $0x558] sm:$0xff]  ;;  %v769_v21 = vld [vmem:[#allocation6 + $0x690] sm:$0xff] }
 0x210   :  { %2776 = vmatpush1.bf16.msra.mxu1 %v2775_v9  ;;  %2936 = vmatpush3.bf16.msra.mxu0 %v2935_v10  ;;  %v2793_v9 = vpack.c.bf16 %v701_v63, %v698_v62  ;;  %v2953_v10 = vpack.c.bf16 %v750_v2, %v747_v1  ;;  %v558_v20 = vmax.f32 %v4131_v38, 0.0  ;;  %v725_v62 = vld [vmem:[#allocation6 + $0x530] sm:$0xff]  ;;  %v819_v63 = vld [vmem:[#allocation6 + $0x820] sm:$0xff]  ;;  %v822_v1 = vld [vmem:[#allocation6 + $0x838] sm:$0xff]  ;;  %v2815_v34 = vpack.c.bf16 %v730_v19, %v727_v18 }
 0x211   :  { %2778 = vmatprep.subr.bf16.mxu1 %v2777_v15  ;;  %2938 = vmatprep.subr.bf16.mxu0 %v2937_v16  ;;  %v704_v15 = vld [vmem:[#allocation6 + $0x488] sm:$0xff]  ;;  %v707_v16 = vld [vmem:[#allocation6 + $0x4a0] sm:$0xff]  ;;  %v2969_v7 = vpack.c.bf16 %v822_v1, %v819_v63  ;;  %v761_v18 = vld [vmem:[#allocation6 + $0x650] sm:$0xff] }
 0x212   :  { %v2797_v30 = vpack.c.bf16 %v707_v16, %v704_v15  ;;  %v828_v15 = vld [vmem:[#allocation6 + $0x868] sm:$0xff]  ;;  %v775_v38 = vld [vmem:[#allocation6 + $0x6c0] sm:$0xff] }
 0x214   :  { %2780 = vmatpush1.bf16.msra.mxu1 %v2779_v28  ;;  %2940 = vmatpush3.bf16.msra.mxu0 %v2939_v29  ;;  %v703_v28 = vld [vmem:[#allocation6 + $0x480] sm:$0xff]  ;;  %v706_v29 = vld [vmem:[#allocation6 + $0x498] sm:$0xff] }
 0x215   :  { %2782 = vmatprep.subr.bf16.mxu1 %v2781_v32  ;;  %2942 = vmatprep.subr.bf16.mxu0 %v2941_v33  ;;  %v753_v32 = vld [vmem:[#allocation6 + $0x610] sm:$0xff]  ;;  %v756_v33 = vld [vmem:[#allocation6 + $0x628] sm:$0xff]  ;;  %v2799_v39 = vpack.c.bf16 %v706_v29, %v703_v28 }
 0x216   :  { %v777_v28 = vld [vmem:[#allocation6 + $0x6d0] sm:$0xff]  ;;  %v780_v29 = vld [vmem:[#allocation6 + $0x6e8] sm:$0xff] }
 0x217   :  { %v2975_v35 = vpack.c.bf16 %v780_v29, %v777_v28  ;;  %v760_v28 = vld [vmem:[#allocation6 + $0x648] sm:$0xff] }
 0x218   :  { %2784 = vmatpush1.bf16.msra.mxu1 %v2783_v40  ;;  %2944 = vmatpush3.bf16.msra.mxu0 %v2943_v41  ;;  %v2959_v40 = vpack.c.bf16 %v756_v33, %v753_v32  ;;  %v709_v41 = vld [vmem:[#allocation6 + $0x4b0] sm:$0xff]  ;;  %v831_v32 = vld [vmem:[#allocation6 + $0x880] sm:$0xff]  ;;  %v834_v33 = vld [vmem:[#allocation6 + $0x898] sm:$0xff] }
 0x219   :  { %2786 = vmatprep.subr.bf16.mxu1 %v2785_v44  ;;  %2946 = vmatprep.subr.bf16.mxu0 %v2945_v45  ;;  %v2961_v44 = vpack.c.bf16 %v810_v37, %v807_v36  ;;  %v759_v45 = vld [vmem:[#allocation6 + $0x640] sm:$0xff]  ;;  %v2803_v52 = vpack.c.bf16 %v712_v42, %v709_v41  ;;  %v733_v36 = vld [vmem:[#allocation6 + $0x570] sm:$0xff]  ;;  %v736_v37 = vld [vmem:[#allocation6 + $0x588] sm:$0xff] }
 0x21a   :  { %v783_v41 = vld [vmem:[#allocation6 + $0x700] sm:$0xff]  ;;  %v786_v42 = vld [vmem:[#allocation6 + $0x718] sm:$0xff]  ;;  %v2819_v49 = vpack.c.bf16 %v736_v37, %v733_v36  ;;  %v764_v29 = vld [vmem:[#allocation6 + $0x668] sm:$0xff] }
 0x21b   :  { %v773_v36 = vld [vmem:[#allocation6 + $0x6b0] sm:$0xff] }
 0x21c   :  { %2788 = vmatpush1.bf16.msra.mxu1 %v2787_v54  ;;  %2948 = vmatpush3.bf16.msra.mxu0 %v2947_v55  ;;  %v2963_v54 = vpack.c.bf16 %v762_v46, %v759_v45  ;;  %v715_v55 = vld [vmem:[#allocation6 + $0x4e0] sm:$0xff]  ;;  %v837_v45 = vld [vmem:[#allocation6 + $0x8b0] sm:$0xff]  ;;  %v840_v46 = vld [vmem:[#allocation6 + $0x8c8] sm:$0xff] }
 0x21d   :  { %2790 = vmatprep.subr.bf16.mxu1 %v2789_v58  ;;  %2950 = vmatprep.subr.bf16.mxu0 %v2949_v59  ;;  %v2965_v58 = vpack.c.bf16 %v816_v51, %v813_v50  ;;  %v765_v59 = vld [vmem:[#allocation6 + $0x670] sm:$0xff]  ;;  %v2807_v2 = vpack.c.bf16 %v718_v56, %v715_v55  ;;  %v2979_v50 = vpack.c.bf16 %v786_v42, %v783_v41  ;;  %v739_v51 = vld [vmem:[#allocation6 + $0x5a0] sm:$0xff] }
 0x21e   :  { %v2967_v3 = vpack.c.bf16 %v768_v60, %v765_v59  ;;  %v2981_v55 = vpack.c.bf16 %v840_v46, %v837_v45  ;;  %v789_v56 = vld [vmem:[#allocation6 + $0x730] sm:$0xff]  ;;  %v843_v60 = vld [vmem:[#allocation6 + $0x8e0] sm:$0xff] }
 0x21f   :  { %v749_v59 = vld [vmem:[#allocation6 + $0x5f0] sm:$0xff]  ;;  %v779_v41 = vld [vmem:[#allocation6 + $0x6e0] sm:$0xff] }
 0x220   :  { %2792 = vmatpush1.bf16.msra.mxu1 %v2791_v5  ;;  %2952 = vmatpush3.bf16.msra.mxu0 %v2951_v6  ;;  %v724_v5 = vld [vmem:[#allocation6 + $0x528] sm:$0xff]  ;;  %v2809_v6 = vpack.c.bf16 %v725_v62, %v722_v61  ;;  %v846_v61 = vld [vmem:[#allocation6 + $0x8f8] sm:$0xff]  ;;  %v306_v62 = vrot.slane %v4104_v24, %v305_v48  ;;  %v785_v45 = vld [vmem:[#allocation6 + $0x710] sm:$0xff] }
 0x221   :  { %2794 = vmatprep.subr.bf16.mxu1 %v2793_v9  ;;  %2954 = vmatprep.subr.bf16.mxu0 %v2953_v10  ;;  %v774_v9 = vld [vmem:[#allocation6 + $0x6b8] sm:$0xff]  ;;  %v728_v10 = vld [vmem:[#allocation6 + $0x548] sm:$0xff]  ;;  %v2811_v16 = vpack.c.bf16 %v724_v5, %v721_v4  ;;  %v2985_v4 = vpack.c.bf16 %v846_v61, %v843_v60 }
 0x222   :  { %v2971_v17 = vpack.c.bf16 %v774_v9, %v771_v8  ;;  %v748_v5 = vld [vmem:[#allocation6 + $0x5e8] sm:$0xff]  ;;  %v755_v9 = vld [vmem:[#allocation6 + $0x620] sm:$0xff] }
 0x223   :  { %v752_v8 = vld [vmem:[#allocation6 + $0x608] sm:$0xff] }
 0x224   :  { %2796 = vmatpush1.bf16.msra.mxu1 %v2795_v26  ;;  %2956 = vmatpush3.bf16.msra.mxu0 %v2955_v27  ;;  %v2813_v26 = vpack.c.bf16 %v731_v11, %v728_v10  ;;  %v2973_v27 = vpack.c.bf16 %v828_v15, %v825_v12  ;;  %v4142_v10 = vadd.f32 %v4117_v13, %v306_v62  ;;  %v751_v15 = vld [vmem:[#allocation6 + $0x600] sm:$0xff]  ;;  %v757_v13 = vld [vmem:[#allocation6 + $0x630] sm:$0xff] }
 0x225   :  { %2798 = vmatprep.subr.bf16.mxu1 %v2797_v30  ;;  %2958 = vmatprep.subr.bf16.mxu0 %v2957_v31  ;;  %v734_v30 = vld [vmem:[#allocation6 + $0x578] sm:$0xff]  ;;  %v737_v31 = vld [vmem:[#allocation6 + $0x590] sm:$0xff]  ;;  %v2829_v12 = vpack.c.bf16 %v755_v9, %v752_v8 }
 0x226   :  { %v557_v19 = vmax.f32 %v4142_v10, 0.0  ;;  %v793_v62 = vld [vmem:[#allocation6 + $0x750] sm:$0xff] }
 0x227   :  { %1212 = vmatmul.mubr.f32.vlgmr.msra.gmra.mrb[6].mxu0 %v555_v47  ;;  %v809_v8 = vld [vmem:[#allocation6 + $0x7d0] sm:$0xff] }
 0x228   :  { %2800 = vmatpush1.bf16.msra.mxu1 %v2799_v39  ;;  %2960 = vmatpush3.bf16.msra.mxu0 %v2959_v40  ;;  %v2817_v39 = vpack.c.bf16 %v737_v31, %v734_v30  ;;  %v2977_v40 = vpack.c.bf16 %v834_v33, %v831_v32  ;;  %v767_v30 = vld [vmem:[#allocation6 + $0x680] sm:$0xff]  ;;  %v2835_v31 = vpack.c.bf16 %v760_v28, %v757_v13  ;;  %v818_v13 = vld [vmem:[#allocation6 + $0x818] sm:$0xff]  ;;  %v821_v28 = vld [vmem:[#allocation6 + $0x830] sm:$0xff] }
 0x229   :  { %2802 = vmatprep.subr.bf16.mxu1 %v2801_v43  ;;  %2962 = vmatprep.subr.bf16.mxu0 %v2961_v44  ;;  %v740_v43 = vld [vmem:[#allocation6 + $0x5a8] sm:$0xff]  ;;  %v743_v44 = vld [vmem:[#allocation6 + $0x5c0] sm:$0xff]  ;;  %v2837_v32 = vpack.c.bf16 %v767_v30, %v764_v29  ;;  %v2873_v30 = vpack.c.bf16 %v821_v28, %v818_v13  ;;  %v1308_v10 = vld [vmem:[#allocation10 + $0x30] sm:$0xff] }
 0x22a   :  { %1281 = vmatprep.mubr.f32.mxu0 %v558_v20  ;;  %v763_v33 = vld [vmem:[#allocation6 + $0x660] sm:$0xff]  ;;  %v1312_v13 = vld [vmem:[#allocation10 + $0x50] sm:$0xff] }
 0x22c   :  { %2804 = vmatpush1.bf16.msra.mxu1 %v2803_v52  ;;  %2964 = vmatpush3.bf16.msra.mxu0 %v2963_v54  ;;  %v742_v52 = vld [vmem:[#allocation6 + $0x5b8] sm:$0xff]  ;;  %v2821_v54 = vpack.c.bf16 %v743_v44, %v740_v43 }
 0x22d   :  { %2806 = vmatprep.subr.bf16.mxu1 %v2805_v57  ;;  %2966 = vmatprep.subr.bf16.mxu0 %v2965_v58  ;;  %v792_v57 = vld [vmem:[#allocation6 + $0x748] sm:$0xff]  ;;  %v746_v58 = vld [vmem:[#allocation6 + $0x5d8] sm:$0xff]  ;;  %v2823_v63 = vpack.c.bf16 %v742_v52, %v739_v51  ;;  %v791_v52 = vld [vmem:[#allocation6 + $0x740] sm:$0xff] }
 0x22e   :  { %v2983_v1 = vpack.c.bf16 %v792_v57, %v789_v56  ;;  %v782_v44 = vld [vmem:[#allocation6 + $0x6f8] sm:$0xff]  ;;  %v788_v51 = vld [vmem:[#allocation6 + $0x728] sm:$0xff]  ;;  %v787_v56 = vld [vmem:[#allocation6 + $0x720] sm:$0xff] }
 0x22f   :  { %v2849_v48 = vpack.c.bf16 %v785_v45, %v782_v44  ;;  %v790_v57 = vld [vmem:[#allocation6 + $0x738] sm:$0xff] }
 0x230   :  { %2808 = vmatpush1.bf16.msra.mxu1 %v2807_v2  ;;  %2968 = vmatpush3.bf16.msra.mxu0 %v2967_v3  ;;  %v745_v2 = vld [vmem:[#allocation6 + $0x5d0] sm:$0xff]  ;;  %v2825_v3 = vpack.c.bf16 %v749_v59, %v746_v58  ;;  %v794_v58 = vld [vmem:[#allocation6 + $0x758] sm:$0xff]  ;;  %v2855_v60 = vpack.c.bf16 %v790_v57, %v787_v56 }
 0x231   :  { %2810 = vmatprep.subr.bf16.mxu1 %v2809_v6  ;;  %2970 = vmatprep.subr.bf16.mxu0 %v2969_v7  ;;  %v795_v6 = vld [vmem:[#allocation6 + $0x760] sm:$0xff]  ;;  %v798_v7 = vld [vmem:[#allocation6 + $0x778] sm:$0xff]  ;;  %v2827_v24 = vpack.c.bf16 %v748_v5, %v745_v2  ;;  %v797_v59 = vld [vmem:[#allocation6 + $0x770] sm:$0xff] }
 0x232   :  { %v2987_v11 = vpack.c.bf16 %v798_v7, %v795_v6  ;;  %v2857_v61 = vpack.c.bf16 %v797_v59, %v794_v58  ;;  %v803_v2 = vld [vmem:[#allocation6 + $0x7a0] sm:$0xff]  ;;  %v802_v6 = vld [vmem:[#allocation6 + $0x798] sm:$0xff]  ;;  %v1303_v57 = vld [vmem:[#allocation10 + $0x8] sm:$0xff] }
 0x233   :  { %v799_v5 = vld [vmem:[#allocation6 + $0x780] sm:$0xff]  ;;  %v806_v7 = vld [vmem:[#allocation6 + $0x7b8] sm:$0xff] }
 0x234   :  { %2812 = vmatpush1.bf16.msra.mxu1 %v2811_v16  ;;  %2972 = vmatpush3.bf16.msra.mxu0 %v2971_v17  ;;  %v754_v16 = vld [vmem:[#allocation6 + $0x618] sm:$0xff]  ;;  %v2863_v9 = vpack.c.bf16 %v802_v6, %v799_v5  ;;  %v1307_v6 = vld [vmem:[#allocation10 + $0x28] sm:$0xff] }
 0x235   :  { %2814 = vmatprep.subr.bf16.mxu1 %v2813_v26  ;;  %2974 = vmatprep.subr.bf16.mxu0 %v2973_v27  ;;  %v758_v17 = vld [vmem:[#allocation6 + $0x638] sm:$0xff]  ;;  %v2831_v26 = vpack.c.bf16 %v754_v16, %v751_v15  ;;  %v812_v15 = vld [vmem:[#allocation6 + $0x7e8] sm:$0xff]  ;;  %v815_v16 = vld [vmem:[#allocation6 + $0x800] sm:$0xff] }
 0x236   :  { %v2833_v27 = vpack.c.bf16 %v761_v18, %v758_v17  ;;  %v2869_v18 = vpack.c.bf16 %v815_v16, %v812_v15  ;;  %v1305_v58 = vld [vmem:[#allocation10 + $0x18] sm:$0xff]  ;;  %v1649_v15 = vld [vmem:[#allocation15 + $0x20] sm:$0xff] }
 0x237   :  { %v2989_v59 = vpack.c.bf16 %v1305_v58, %v1303_v57  ;;  %v1651_v16 = vld [vmem:[#allocation15 + $0x30] sm:$0xff]  ;;  %v1661_v57 = vld [vmem:[#allocation15 + $0x80] sm:$0xff] }
 0x238   :  { %2816 = vmatpush1.bf16.msra.mxu1 %v2815_v34  ;;  %2976 = vmatpush3.bf16.msra.mxu0 %v2975_v35  ;;  %v766_v34 = vld [vmem:[#allocation6 + $0x678] sm:$0xff] }
 0x239   :  { %2818 = vmatprep.subr.bf16.mxu1 %v2817_v39  ;;  %2978 = vmatprep.subr.bf16.mxu0 %v2977_v40  ;;  %v770_v35 = vld [vmem:[#allocation6 + $0x698] sm:$0xff]  ;;  %v2839_v37 = vpack.c.bf16 %v766_v34, %v763_v33  ;;  %v776_v40 = vld [vmem:[#allocation6 + $0x6c8] sm:$0xff]  ;;  %v827_v34 = vld [vmem:[#allocation6 + $0x860] sm:$0xff] }
 0x23a   :  { %v2841_v39 = vpack.c.bf16 %v773_v36, %v770_v35  ;;  %v2845_v43 = vpack.c.bf16 %v779_v41, %v776_v40  ;;  %v824_v33 = vld [vmem:[#allocation6 + $0x848] sm:$0xff]  ;;  %v1663_v58 = vld [vmem:[#allocation15 + $0x90] sm:$0xff] }
 0x23b   :  { %v2877_v36 = vpack.c.bf16 %v827_v34, %v824_v33  ;;  %v1655_v34 = vld [vmem:[#allocation15 + $0x50] sm:$0xff] }
 0x23c   :  { %2820 = vmatpush1.bf16.msra.mxu1 %v2819_v49  ;;  %2980 = vmatpush3.bf16.msra.mxu0 %v2979_v50  ;;  %v781_v49 = vld [vmem:[#allocation6 + $0x6f0] sm:$0xff]  ;;  %v784_v50 = vld [vmem:[#allocation6 + $0x708] sm:$0xff] }
 0x23d   :  { %2822 = vmatprep.subr.bf16.mxu1 %v2821_v54  ;;  %2982 = vmatprep.subr.bf16.mxu0 %v2981_v55  ;;  %v2851_v54 = vpack.c.bf16 %v784_v50, %v781_v49  ;;  %v2853_v55 = vpack.c.bf16 %v791_v52, %v788_v51  ;;  %v842_v49 = vld [vmem:[#allocation6 + $0x8d8] sm:$0xff]  ;;  %v845_v50 = vld [vmem:[#allocation6 + $0x8f0] sm:$0xff] }
 0x23e   :  { %v2889_v52 = vpack.c.bf16 %v845_v50, %v842_v49  ;;  %v1318_v50 = vld [vmem:[#allocation10 + $0x80] sm:$0xff] }
 0x240   :  { %2824 = vmatpush1.bf16.msra.mxu1 %v2823_v63  ;;  %2984 = vmatpush3.bf16.msra.mxu0 %v2983_v1  ;;  %v796_v63 = vld [vmem:[#allocation6 + $0x768] sm:$0xff] }
 0x241   :  { %2826 = vmatprep.subr.bf16.mxu1 %v2825_v3  ;;  %2986 = vmatprep.subr.bf16.mxu0 %v2985_v4  ;;  %v800_v1 = vld [vmem:[#allocation6 + $0x788] sm:$0xff]  ;;  %v2859_v3 = vpack.c.bf16 %v796_v63, %v793_v62 }
 0x242   :  { %v2861_v4 = vpack.c.bf16 %v803_v2, %v800_v1  ;;  %v1646_v62 = vld [vmem:[#allocation15 + $0x8] sm:$0xff]  ;;  %v1648_v1 = vld [vmem:[#allocation15 + $0x18] sm:$0xff]  ;;  %v1645_v2 = vld [vmem:[#allocation15] sm:$0xff] }
 0x244   :  { %2828 = vmatpush1.bf16.msra.mxu1 %v2827_v24  ;;  %2988 = vmatpush3.bf16.msra.mxu0 %v2987_v11  ;;  %v2865_v24 = vpack.c.bf16 %v809_v8, %v806_v7  ;;  %v805_v11 = vld [vmem:[#allocation6 + $0x7b0] sm:$0xff]  ;;  %v1309_v7 = vld [vmem:[#allocation10 + $0x38] sm:$0xff]  ;;  %v1306_v8 = vld [vmem:[#allocation10 + $0x20] sm:$0xff] }
 0x245   :  { %2830 = vmatprep.subr.bf16.mxu1 %v2829_v12  ;;  %v808_v12 = vld [vmem:[#allocation6 + $0x7c8] sm:$0xff]  ;;  %2990 = vmatprep.subr.bf16.mxu0 %v2989_v59 }
 0x246   :  { %v2867_v17 = vpack.c.bf16 %v808_v12, %v805_v11  ;;  %v2995_v11 = vpack.c.bf16 %v1308_v10, %v1306_v8  ;;  %v1672_v10 = vld [vmem:[#allocation15 + $0xd8] sm:$0xff] }
 0x247   :  { %1000 = vmatmul.mubr.f32.vlgmr.msra.gmra.mrb[2].mxu1 %v555_v47  ;;  %1282 = vmatmul.mubr.f32.vlgmr.msra.gmra.mrb[8].mxu0 %v557_v19  ;;  %v772_v47 = vld [vmem:[#allocation6 + $0x6a8] sm:$0xff] }
 0x248   :  { %2832 = vmatpush1.bf16.msra.mxu1 %v2831_v26  ;;  %1070 = vmatprep.mubr.f32.mxu1 %v558_v20  ;;  %v2843_v42 = vpack.c.bf16 %v772_v47, %v769_v21  ;;  %v778_v20 = vld [vmem:[#allocation6 + $0x6d8] sm:$0xff]  ;;  %v811_v26 = vld [vmem:[#allocation6 + $0x7e0] sm:$0xff]  ;;  %v833_v47 = vld [vmem:[#allocation6 + $0x890] sm:$0xff] }
 0x249   :  { %2834 = vmatprep.subr.bf16.mxu1 %v2833_v27  ;;  %v2847_v46 = vpack.c.bf16 %v778_v20, %v775_v38  ;;  %v814_v27 = vld [vmem:[#allocation6 + $0x7f8] sm:$0xff]  ;;  %v836_v38 = vld [vmem:[#allocation6 + $0x8a8] sm:$0xff]  ;;  %v839_v20 = vld [vmem:[#allocation6 + $0x8c0] sm:$0xff] }
 0x24a   :  { %v2871_v29 = vpack.c.bf16 %v814_v27, %v811_v26  ;;  %v830_v21 = vld [vmem:[#allocation6 + $0x878] sm:$0xff]  ;;  %v2885_v45 = vpack.c.bf16 %v839_v20, %v836_v38  ;;  %v1310_v27 = vld [vmem:[#allocation10 + $0x40] sm:$0xff]  ;;  %v1319_v20 = vld [vmem:[#allocation10 + $0x88] sm:$0xff] }
 0x24b   :  { %v2881_v41 = vpack.c.bf16 %v833_v47, %v830_v21  ;;  %v1313_v26 = vld [vmem:[#allocation10 + $0x58] sm:$0xff]  ;;  %v1316_v21 = vld [vmem:[#allocation10 + $0x70] sm:$0xff] }
 0x24c   :  { %2836 = vmatpush1.bf16.msra.mxu1 %v2835_v31  ;;  %v817_v31 = vld [vmem:[#allocation6 + $0x810] sm:$0xff] }
 0x24d   :  { %2838 = vmatprep.subr.bf16.mxu1 %v2837_v32  ;;  %v820_v32 = vld [vmem:[#allocation6 + $0x828] sm:$0xff]  ;;  %v1659_v38 = vld [vmem:[#allocation15 + $0x70] sm:$0xff] }
 0x24e   :  { %v2875_v35 = vpack.c.bf16 %v820_v32, %v817_v31  ;;  %v1653_v31 = vld [vmem:[#allocation15 + $0x40] sm:$0xff]  ;;  %v2999_v32 = vpack.c.bf16 %v1312_v13, %v1310_v27  ;;  %v1658_v47 = vld [vmem:[#allocation15 + $0x68] sm:$0xff] }
 0x24f   :  { %v1674_v13 = vld [vmem:[#allocation15 + $0xe8] sm:$0xff] }
 0x250   :  { %2840 = vmatpush1.bf16.msra.mxu1 %v2839_v37  ;;  %v823_v37 = vld [vmem:[#allocation6 + $0x840] sm:$0xff] }
 0x251   :  { %2842 = vmatprep.subr.bf16.mxu1 %v2841_v39  ;;  %v826_v39 = vld [vmem:[#allocation6 + $0x858] sm:$0xff] }
 0x252   :  { %v2879_v40 = vpack.c.bf16 %v826_v39, %v823_v37  ;;  %v1314_v39 = vld [vmem:[#allocation10 + $0x60] sm:$0xff] }
 0x254   :  { %2844 = vmatpush1.bf16.msra.mxu1 %v2843_v42  ;;  %v829_v42 = vld [vmem:[#allocation6 + $0x870] sm:$0xff] }
 0x255   :  { %2846 = vmatprep.subr.bf16.mxu1 %v2845_v43  ;;  %v832_v43 = vld [vmem:[#allocation6 + $0x888] sm:$0xff] }
 0x256   :  { %v2883_v44 = vpack.c.bf16 %v832_v43, %v829_v42  ;;  %v1657_v42 = vld [vmem:[#allocation15 + $0x60] sm:$0xff] }
 0x258   :  { %2848 = vmatpush1.bf16.msra.mxu1 %v2847_v46  ;;  %v835_v46 = vld [vmem:[#allocation6 + $0x8a0] sm:$0xff] }
 0x259   :  { %2850 = vmatprep.subr.bf16.mxu1 %v2849_v48  ;;  %v838_v48 = vld [vmem:[#allocation6 + $0x8b8] sm:$0xff] }
 0x25a   :  { %v2887_v51 = vpack.c.bf16 %v838_v48, %v835_v46  ;;  %v1662_v46 = vld [vmem:[#allocation15 + $0x88] sm:$0xff]  ;;  %v1664_v48 = vld [vmem:[#allocation15 + $0x98] sm:$0xff] }
 0x25c   :  { %2852 = vmatpush1.bf16.msra.mxu1 %v2851_v54  ;;  %v841_v54 = vld [vmem:[#allocation6 + $0x8d0] sm:$0xff] }
 0x25d   :  { %2854 = vmatprep.subr.bf16.mxu1 %v2853_v55  ;;  %v844_v55 = vld [vmem:[#allocation6 + $0x8e8] sm:$0xff] }
 0x25e   :  { %v2891_v56 = vpack.c.bf16 %v844_v55, %v841_v54  ;;  %v1323_v54 = vld [vmem:[#allocation10 + $0xa8] sm:$0xff]  ;;  %v1325_v55 = vld [vmem:[#allocation10 + $0xb8] sm:$0xff] }
 0x260   :  { %2856 = vmatpush1.bf16.msra.mxu1 %v2855_v60  ;;  %v1302_v60 = vld [vmem:[#allocation10] sm:$0xff] }
 0x261   :  { %2858 = vmatprep.subr.bf16.mxu1 %v2857_v61  ;;  %v1304_v61 = vld [vmem:[#allocation10 + $0x10] sm:$0xff] }
 0x262   :  { %v2991_v63 = vpack.c.bf16 %v1304_v61, %v1302_v60  ;;  %v1666_v60 = vld [vmem:[#allocation15 + $0xa8] sm:$0xff]  ;;  %v1668_v61 = vld [vmem:[#allocation15 + $0xb8] sm:$0xff] }
 0x264   :  { %2860 = vmatpush1.bf16.msra.mxu1 %v2859_v3  ;;  %v1647_v3 = vld [vmem:[#allocation15 + $0x10] sm:$0xff]  ;;  %2992 = vmatpush1.bf16.msra.mxu0 %v2991_v63  ;;  %v1322_v63 = vld [vmem:[#allocation10 + $0xa0] sm:$0xff] }
 0x265   :  { %2862 = vmatprep.subr.bf16.mxu1 %v2861_v4  ;;  %v3099_v4 = vpack.c.bf16 %v1648_v1, %v1646_v62  ;;  %v3101_v5 = vpack.c.bf16 %v1647_v3, %v1645_v2  ;;  %v3009_v62 = vpack.c.bf16 %v1325_v55, %v1323_v54  ;;  %v1324_v1 = vld [vmem:[#allocation10 + $0xb0] sm:$0xff]  ;;  %v3117_v2 = vpack.c.bf16 %v1663_v58, %v1661_v57  ;;  %v1327_v3 = vld [vmem:[#allocation10 + $0xc8] sm:$0xff]  ;;  %v1345_v57 = vld [vmem:[#allocation10 + $0x158] sm:$0xff] }
 0x266   :  { %v3011_v8 = vpack.c.bf16 %v1324_v1, %v1322_v63  ;;  %v1340_v54 = vld [vmem:[#allocation10 + $0x130] sm:$0xff]  ;;  %v1688_v63 = vld [vmem:[#allocation15 + $0x158] sm:$0xff] }
 0x268   :  { %2864 = vmatpush1.bf16.msra.mxu1 %v2863_v9  ;;  %v2993_v9 = vpack.c.bf16 %v1309_v7, %v1307_v6  ;;  %v1665_v6 = vld [vmem:[#allocation15 + $0xa0] sm:$0xff]  ;;  %v1667_v7 = vld [vmem:[#allocation15 + $0xb0] sm:$0xff] }
 0x269   :  { %2866 = vmatprep.subr.bf16.mxu1 %v2865_v24  ;;  %v1652_v24 = vld [vmem:[#allocation15 + $0x38] sm:$0xff] }
 0x26a   :  { %2994 = vmatprep.subr.bf16.mxu0 %v2993_v9  ;;  %v1670_v9 = vld [vmem:[#allocation15 + $0xc8] sm:$0xff] }
 0x26b   :  { %2996 = vmatpush1.bf16.msra.mxu0 %v2995_v11  ;;  %v1328_v11 = vld [vmem:[#allocation10 + $0xd0] sm:$0xff] }
 0x26c   :  { %2868 = vmatpush1.bf16.msra.mxu1 %v2867_v17  ;;  %v1311_v17 = vld [vmem:[#allocation10 + $0x48] sm:$0xff] }
 0x26d   :  { %2870 = vmatprep.subr.bf16.mxu1 %v2869_v18  ;;  %v3105_v18 = vpack.c.bf16 %v1651_v16, %v1649_v15  ;;  %v2997_v28 = vpack.c.bf16 %v1313_v26, %v1311_v17  ;;  %v1331_v15 = vld [vmem:[#allocation10 + $0xe8] sm:$0xff]  ;;  %v1333_v16 = vld [vmem:[#allocation10 + $0xf8] sm:$0xff]  ;;  %v3123_v17 = vpack.c.bf16 %v1672_v10, %v1670_v9 }
 0x26e   :  { %v1671_v26 = vld [vmem:[#allocation15 + $0xd0] sm:$0xff] }
 0x26f   :  { %2998 = vmatprep.subr.bf16.mxu0 %v2997_v28  ;;  %v1676_v28 = vld [vmem:[#allocation15 + $0xf8] sm:$0xff]  ;;  %v1687_v9 = vld [vmem:[#allocation15 + $0x150] sm:$0xff] }
 0x270   :  { %2872 = vmatpush1.bf16.msra.mxu1 %v2871_v29  ;;  %v1654_v29 = vld [vmem:[#allocation15 + $0x48] sm:$0xff]  ;;  %3000 = vmatpush1.bf16.msra.mxu0 %v2999_v32 }
 0x271   :  { %2874 = vmatprep.subr.bf16.mxu1 %v2873_v30  ;;  %v1656_v30 = vld [vmem:[#allocation15 + $0x58] sm:$0xff] }
 0x272   :  { %v3107_v33 = vpack.c.bf16 %v1656_v30, %v1654_v29  ;;  %v3017_v29 = vpack.c.bf16 %v1333_v16, %v1331_v15  ;;  %v1330_v30 = vld [vmem:[#allocation10 + $0xe0] sm:$0xff]  ;;  %v1348_v15 = vld [vmem:[#allocation10 + $0x170] sm:$0xff] }
 0x274   :  { %2876 = vmatpush1.bf16.msra.mxu1 %v2875_v35  ;;  %v1315_v35 = vld [vmem:[#allocation10 + $0x68] sm:$0xff] }
 0x275   :  { %2878 = vmatprep.subr.bf16.mxu1 %v2877_v36  ;;  %v1317_v36 = vld [vmem:[#allocation10 + $0x78] sm:$0xff] }
 0x276   :  { %v3001_v37 = vpack.c.bf16 %v1317_v36, %v1315_v35  ;;  %v3127_v35 = vpack.c.bf16 %v1676_v28, %v1674_v13  ;;  %v1673_v36 = vld [vmem:[#allocation15 + $0xe0] sm:$0xff]  ;;  %v1691_v13 = vld [vmem:[#allocation15 + $0x170] sm:$0xff] }
 0x278   :  { %2880 = vmatpush1.bf16.msra.mxu1 %v2879_v40  ;;  %v3109_v40 = vpack.c.bf16 %v1655_v34, %v1653_v31  ;;  %3002 = vmatprep.subr.bf16.mxu0 %v3001_v37  ;;  %v1332_v31 = vld [vmem:[#allocation10 + $0xf0] sm:$0xff]  ;;  %v1337_v34 = vld [vmem:[#allocation10 + $0x118] sm:$0xff] }
 0x279   :  { %2882 = vmatprep.subr.bf16.mxu1 %v2881_v41  ;;  %v1660_v41 = vld [vmem:[#allocation15 + $0x78] sm:$0xff]  ;;  %v1675_v37 = vld [vmem:[#allocation15 + $0xf0] sm:$0xff] }
 0x27a   :  { %v3111_v43 = vpack.c.bf16 %v1660_v41, %v1658_v47  ;;  %v1680_v47 = vld [vmem:[#allocation15 + $0x118] sm:$0xff] }
 0x27b   :  { %v1334_v41 = vld [vmem:[#allocation10 + $0x100] sm:$0xff] }
 0x27c   :  { %2884 = vmatpush1.bf16.msra.mxu1 %v2883_v44  ;;  %v1321_v44 = vld [vmem:[#allocation10 + $0x98] sm:$0xff] }
 0x27d   :  { %2886 = vmatprep.subr.bf16.mxu1 %v2885_v45  ;;  %v3003_v45 = vpack.c.bf16 %v1316_v21, %v1314_v39  ;;  %v3005_v49 = vpack.c.bf16 %v1321_v44, %v1319_v20  ;;  %v3019_v39 = vpack.c.bf16 %v1332_v31, %v1330_v30  ;;  %v1678_v21 = vld [vmem:[#allocation15 + $0x108] sm:$0xff]  ;;  %v1341_v20 = vld [vmem:[#allocation10 + $0x138] sm:$0xff] }
 0x27e   :  { %v3131_v44 = vpack.c.bf16 %v1680_v47, %v1678_v21  ;;  %v1696_v30 = vld [vmem:[#allocation15 + $0x198] sm:$0xff]  ;;  %v1695_v21 = vld [vmem:[#allocation15 + $0x190] sm:$0xff] }
 0x27f   :  { %3004 = vmatpush1.bf16.msra.mxu0 %v3003_v45  ;;  %v1677_v45 = vld [vmem:[#allocation15 + $0x100] sm:$0xff] }
 0x280   :  { %2888 = vmatpush1.bf16.msra.mxu1 %v2887_v51  ;;  %v1320_v51 = vld [vmem:[#allocation10 + $0x90] sm:$0xff]  ;;  %3006 = vmatprep.subr.bf16.mxu0 %v3005_v49 }
 0x281   :  { %2890 = vmatprep.subr.bf16.mxu1 %v2889_v52  ;;  %v3113_v52 = vpack.c.bf16 %v1659_v38, %v1657_v42  ;;  %v3007_v59 = vpack.c.bf16 %v1320_v51, %v1318_v50  ;;  %v1336_v42 = vld [vmem:[#allocation10 + $0x110] sm:$0xff]  ;;  %v1339_v38 = vld [vmem:[#allocation10 + $0x128] sm:$0xff]  ;;  %v1684_v50 = vld [vmem:[#allocation15 + $0x138] sm:$0xff] }
 0x282   :  { %v1682_v49 = vld [vmem:[#allocation15 + $0x128] sm:$0xff]  ;;  %v3025_v51 = vpack.c.bf16 %v1341_v20, %v1339_v38 }
 0x283   :  { %3008 = vmatpush1.bf16.msra.mxu0 %v3007_v59  ;;  %v3135_v58 = vpack.c.bf16 %v1684_v50, %v1682_v49  ;;  %v1681_v59 = vld [vmem:[#allocation15 + $0x120] sm:$0xff]  ;;  %v1356_v38 = vld [vmem:[#allocation10 + $0x1b0] sm:$0xff] }
 0x284   :  { %2892 = vmatpush1.bf16.msra.mxu1 %v2891_v56  ;;  %v3115_v56 = vpack.c.bf16 %v1664_v48, %v1662_v46  ;;  %3010 = vmatprep.subr.bf16.mxu0 %v3009_v62  ;;  %v1679_v46 = vld [vmem:[#allocation15 + $0x110] sm:$0xff]  ;;  %v3023_v48 = vpack.c.bf16 %v1336_v42, %v1334_v41  ;;  %v1686_v62 = vld [vmem:[#allocation15 + $0x148] sm:$0xff]  ;;  %v1700_v41 = vld [vmem:[#allocation15 + $0x1b8] sm:$0xff] }
 0x285   :  { %3100 = vmatprep.subr.bf16.mxu1 %v3099_v4  ;;  %v1329_v4 = vld [vmem:[#allocation10 + $0xd8] sm:$0xff]  ;;  %v3133_v55 = vpack.c.bf16 %v1679_v46, %v1677_v45 }
 0x286   :  { %v1361_v45 = vld [vmem:[#allocation10 + $0x1d8] sm:$0xff] }
 0x287   :  { %1071 = vmatmul.mubr.f32.vlgmr.msra.gmra.mrb[2].mxu1 %v557_v19  ;;  %v1650_v19 = vld [vmem:[#allocation15 + $0x28] sm:$0xff]  ;;  %3012 = vmatpush1.bf16.msra.mxu0 %v3011_v8  ;;  %v1685_v8 = vld [vmem:[#allocation15 + $0x140] sm:$0xff]  ;;  %v1699_v49 = vld [vmem:[#allocation15 + $0x1b0] sm:$0xff] }
 0x288   :  { %v3103_v12 = vpack.c.bf16 %v1652_v24, %v1650_v19  ;;  %3102 = vmatpush1.bf16.msra.mxu1 %v3101_v5  ;;  %v3119_v5 = vpack.c.bf16 %v1668_v61, %v1666_v60  ;;  %v3013_v19 = vpack.c.bf16 %v1329_v4, %v1327_v3  ;;  %v1326_v24 = vld [vmem:[#allocation10 + $0xc0] sm:$0xff]  ;;  %v1683_v60 = vld [vmem:[#allocation15 + $0x130] sm:$0xff]  ;;  %v3141_v16 = vpack.c.bf16 %v1687_v9, %v1685_v8 }
 0x289   :  { %v3015_v27 = vpack.c.bf16 %v1328_v11, %v1326_v24  ;;  %v1344_v3 = vld [vmem:[#allocation10 + $0x150] sm:$0xff]  ;;  %v3137_v4 = vpack.c.bf16 %v1683_v60, %v1681_v59  ;;  %v1692_v24 = vld [vmem:[#allocation15 + $0x178] sm:$0xff]  ;;  %v1701_v60 = vld [vmem:[#allocation15 + $0x1c0] sm:$0xff] }
 0x28a   :  { %3104 = vmatprep.subr.bf16.mxu1 %v3103_v12  ;;  %v3121_v12 = vpack.c.bf16 %v1667_v7, %v1665_v6  ;;  %3014 = vmatprep.subr.bf16.mxu0 %v3013_v19  ;;  %v1349_v6 = vld [vmem:[#allocation10 + $0x178] sm:$0xff]  ;;  %v3139_v7 = vpack.c.bf16 %v1688_v63, %v1686_v62  ;;  %v1690_v19 = vld [vmem:[#allocation15 + $0x168] sm:$0xff] }
 0x28b   :  { %3016 = vmatpush1.bf16.msra.mxu0 %v3015_v27  ;;  %v1689_v27 = vld [vmem:[#allocation15 + $0x160] sm:$0xff]  ;;  %v1708_v9 = vld [vmem:[#allocation15 + $0x1f8] sm:$0xff] }
 0x28c   :  { %3106 = vmatpush1.bf16.msra.mxu1 %v3105_v18  ;;  %v1669_v18 = vld [vmem:[#allocation15 + $0xc0] sm:$0xff]  ;;  %3018 = vmatprep.subr.bf16.mxu0 %v3017_v29  ;;  %v1694_v29 = vld [vmem:[#allocation15 + $0x188] sm:$0xff] }
 0x28d   :  { %3108 = vmatprep.subr.bf16.mxu1 %v3107_v33  ;;  %v3125_v32 = vpack.c.bf16 %v1671_v26, %v1669_v18  ;;  %v1335_v33 = vld [vmem:[#allocation10 + $0x108] sm:$0xff]  ;;  %v1353_v18 = vld [vmem:[#allocation10 + $0x198] sm:$0xff]  ;;  %v3143_v26 = vpack.c.bf16 %v1692_v24, %v1690_v19 }
 0x28e   :  { %v1363_v63 = vld [vmem:[#allocation10 + $0x1e8] sm:$0xff]  ;;  %v1707_v19 = vld [vmem:[#allocation15 + $0x1f0] sm:$0xff] }
 0x28f   :  { %3020 = vmatpush1.bf16.msra.mxu0 %v3019_v39  ;;  %v1693_v39 = vld [vmem:[#allocation15 + $0x180] sm:$0xff] }
 0x290   :  { %3110 = vmatpush1.bf16.msra.mxu1 %v3109_v40  ;;  %v3021_v40 = vpack.c.bf16 %v1337_v34, %v1335_v33  ;;  %v1352_v33 = vld [vmem:[#allocation10 + $0x190] sm:$0xff]  ;;  %v3145_v34 = vpack.c.bf16 %v1691_v13, %v1689_v27  ;;  %v3149_v20 = vpack.c.bf16 %v1695_v21, %v1693_v39 }
 0x291   :  { %3112 = vmatprep.subr.bf16.mxu1 %v3111_v43  ;;  %v3129_v43 = vpack.c.bf16 %v1675_v37, %v1673_v36  ;;  %v1357_v36 = vld [vmem:[#allocation10 + $0x1b8] sm:$0xff]  ;;  %v3147_v37 = vpack.c.bf16 %v1696_v30, %v1694_v29 }
 0x292   :  { %3022 = vmatprep.subr.bf16.mxu0 %v3021_v40  ;;  %v1698_v40 = vld [vmem:[#allocation15 + $0x1a8] sm:$0xff] }
 0x293   :  { %3024 = vmatpush1.bf16.msra.mxu0 %v3023_v48  ;;  %v3151_v46 = vpack.c.bf16 %v1700_v41, %v1698_v40  ;;  %v1697_v48 = vld [vmem:[#allocation15 + $0x1a0] sm:$0xff]  ;;  %v1368_v41 = vld [vmem:[#allocation10 + $0x210] sm:$0xff] }
 0x294   :  { %3114 = vmatpush1.bf16.msra.mxu1 %v3113_v52  ;;  %v1338_v52 = vld [vmem:[#allocation10 + $0x120] sm:$0xff]  ;;  %3026 = vmatprep.subr.bf16.mxu0 %v3025_v51  ;;  %v1702_v51 = vld [vmem:[#allocation15 + $0x1c8] sm:$0xff] }
 0x295   :  { %3116 = vmatprep.subr.bf16.mxu1 %v3115_v56  ;;  %v1343_v56 = vld [vmem:[#allocation10 + $0x148] sm:$0xff]  ;;  %v3027_v61 = vpack.c.bf16 %v1340_v54, %v1338_v52  ;;  %v1704_v52 = vld [vmem:[#allocation15 + $0x1d8] sm:$0xff] }
 0x296   :  { %v3029_v1 = vpack.c.bf16 %v1345_v57, %v1343_v56  ;;  %v1360_v56 = vld [vmem:[#allocation10 + $0x1d0] sm:$0xff]  ;;  %v3153_v57 = vpack.c.bf16 %v1699_v49, %v1697_v48  ;;  %v1366_v40 = vld [vmem:[#allocation10 + $0x200] sm:$0xff] }
 0x297   :  { %3028 = vmatpush1.bf16.msra.mxu0 %v3027_v61  ;;  %v1703_v61 = vld [vmem:[#allocation15 + $0x1d0] sm:$0xff]  ;;  %v3055_v49 = vpack.c.bf16 %v1368_v41, %v1366_v40 }
 0x298   :  { %3118 = vmatpush1.bf16.msra.mxu1 %v3117_v2  ;;  %v1342_v2 = vld [vmem:[#allocation10 + $0x140] sm:$0xff]  ;;  %3030 = vmatprep.subr.bf16.mxu0 %v3029_v1  ;;  %v3157_v62 = vpack.c.bf16 %v1703_v61, %v1701_v60  ;;  %v1365_v1 = vld [vmem:[#allocation10 + $0x1f8] sm:$0xff]  ;;  %v1642_v61 = vld [vmem:[#allocation13 + $0x48] sm:$0xff] }
 0x299   :  { %3120 = vmatprep.subr.bf16.mxu1 %v3119_v5  ;;  %v1347_v5 = vld [vmem:[#allocation10 + $0x168] sm:$0xff]  ;;  %v3031_v10 = vpack.c.bf16 %v1344_v3, %v1342_v2  ;;  %v3049_v3 = vpack.c.bf16 %v1365_v1, %v1363_v63  ;;  %v1639_v60 = vld [vmem:[#allocation13 + $0x30] sm:$0xff] }
 0x29a   :  { %v3033_v11 = vpack.c.bf16 %v1349_v6, %v1347_v5  ;;  %v1364_v5 = vld [vmem:[#allocation10 + $0x1f0] sm:$0xff] }
 0x29b   :  { %3032 = vmatpush1.bf16.msra.mxu0 %v3031_v10  ;;  %v1706_v6 = vld [vmem:[#allocation15 + $0x1e8] sm:$0xff]  ;;  %v1705_v10 = vld [vmem:[#allocation15 + $0x1e0] sm:$0xff]  ;;  %v4168_v41 = vld [vmem:[%s4309_s23] sm:$0xff] }
 0x29c   :  { %3122 = vmatpush1.bf16.msra.mxu1 %v3121_v12  ;;  %v1346_v12 = vld [vmem:[#allocation10 + $0x160] sm:$0xff]  ;;  %3034 = vmatprep.subr.bf16.mxu0 %v3033_v11  ;;  %v3159_v11 = vpack.c.bf16 %v1708_v9, %v1706_v6  ;;  %v1381_v6 = vld [vmem:[#allocation10 + $0x278] sm:$0xff]  ;;  %v1643_v9 = vld [vmem:[#allocation13 + $0x50] sm:$0x3] }
 0x29d   :  { %3124 = vmatprep.subr.bf16.mxu1 %v3123_v17  ;;  %v1351_v17 = vld [vmem:[#allocation10 + $0x188] sm:$0xff]  ;;  %v3035_v28 = vpack.c.bf16 %v1348_v15, %v1346_v12  ;;  %v3161_v12 = vpack.c.bf16 %v1707_v19, %v1705_v10  ;;  %v1963_v19 = vld [vmem:[#allocation16 + $0x18] sm:$0xff] }
 0x29e   :  { %v3037_v31 = vpack.c.bf16 %v1353_v18, %v1351_v17  ;;  %v1367_v15 = vld [vmem:[#allocation10 + $0x208] sm:$0xff]  ;;  %v847_v18 = vld [vmem:[#allocation7] sm:$0x7] }
 0x29f   :  { %3036 = vmatpush1.bf16.msra.mxu0 %v3035_v28  ;;  %v852_v39 = vrot.slane %v847_v18, %v4102_v23  ;;  %v856_v21 = vrot.slane %v847_v18, %v4107_v25  ;;  %v1961_v10 = vld [vmem:[#allocation16 + $0x8] sm:$0xff] }
 0x2a0   :  { %3126 = vmatpush1.bf16.msra.mxu1 %v3125_v32  ;;  %v1350_v32 = vld [vmem:[#allocation10 + $0x180] sm:$0xff]  ;;  %3038 = vmatprep.subr.bf16.mxu0 %v3037_v31 }
 0x2a1   :  { %3128 = vmatprep.subr.bf16.mxu1 %v3127_v35  ;;  %v1355_v35 = vld [vmem:[#allocation10 + $0x1a8] sm:$0xff]  ;;  %v3039_v47 = vpack.c.bf16 %v1352_v33, %v1350_v32 }
 0x2a2   :  { %v3041_v42 = vpack.c.bf16 %v1357_v36, %v1355_v35  ;;  %v1634_v35 = vld [vmem:[#allocation13 + $0x8] sm:$0xff]  ;;  %v1636_v36 = vld [vmem:[#allocation13 + $0x18] sm:$0xff] }
 0x2a3   :  { %3040 = vmatpush1.bf16.msra.mxu0 %v3039_v47 }
 0x2a4   :  { %3130 = vmatpush1.bf16.msra.mxu1 %v3129_v43  ;;  %v1354_v43 = vld [vmem:[#allocation10 + $0x1a0] sm:$0xff]  ;;  %3042 = vmatprep.subr.bf16.mxu0 %v3041_v42  ;;  %v1371_v42 = vld [vmem:[#allocation10 + $0x228] sm:$0xff] }
 0x2a5   :  { %3132 = vmatprep.subr.bf16.mxu1 %v3131_v44  ;;  %v1359_v44 = vld [vmem:[#allocation10 + $0x1c8] sm:$0xff]  ;;  %v3043_v50 = vpack.c.bf16 %v1356_v38, %v1354_v43  ;;  %v1373_v38 = vld [vmem:[#allocation10 + $0x238] sm:$0xff] }
 0x2a6   :  { %v3045_v54 = vpack.c.bf16 %v1361_v45, %v1359_v44  ;;  %v1635_v44 = vld [vmem:[#allocation13 + $0x10] sm:$0xff]  ;;  %v1638_v45 = vld [vmem:[#allocation13 + $0x28] sm:$0xff] }
 0x2a7   :  { %3044 = vmatpush1.bf16.msra.mxu0 %v3043_v50 }
 0x2a8   :  { %3134 = vmatpush1.bf16.msra.mxu1 %v3133_v55  ;;  %v1358_v55 = vld [vmem:[#allocation10 + $0x1c0] sm:$0xff]  ;;  %3046 = vmatprep.subr.bf16.mxu0 %v3045_v54  ;;  %v1372_v54 = vld [vmem:[#allocation10 + $0x230] sm:$0xff] }
 0x2a9   :  { %3136 = vmatprep.subr.bf16.mxu1 %v3135_v58  ;;  %v3155_v58 = vpack.c.bf16 %v1704_v52, %v1702_v51  ;;  %v3047_v59 = vpack.c.bf16 %v1360_v56, %v1358_v55  ;;  %v3057_v51 = vpack.c.bf16 %v1373_v38, %v1371_v42  ;;  %v1370_v52 = vld [vmem:[#allocation10 + $0x220] sm:$0xff]  ;;  %v1375_v55 = vld [vmem:[#allocation10 + $0x248] sm:$0xff]  ;;  %v1388_v38 = vld [vmem:[#allocation10 + $0x2b0] sm:$0xff] }
 0x2aa   :  { %v3059_v63 = vpack.c.bf16 %v1372_v54, %v1370_v52 }
 0x2ab   :  { %3048 = vmatpush1.bf16.msra.mxu0 %v3047_v59  ;;  %v1637_v59 = vld [vmem:[#allocation13 + $0x20] sm:$0xff] }
 0x2ac   :  { %3138 = vmatpush1.bf16.msra.mxu1 %v3137_v4  ;;  %v1362_v4 = vld [vmem:[#allocation10 + $0x1e0] sm:$0xff]  ;;  %3050 = vmatprep.subr.bf16.mxu0 %v3049_v3  ;;  %v1376_v3 = vld [vmem:[#allocation10 + $0x250] sm:$0xff] }
 0x2ad   :  { %3140 = vmatprep.subr.bf16.mxu1 %v3139_v7  ;;  %v3051_v8 = vpack.c.bf16 %v1364_v5, %v1362_v4  ;;  %v1379_v4 = vld [vmem:[#allocation10 + $0x268] sm:$0xff]  ;;  %v3201_v5 = vpack.c.bf16 %v1639_v60, %v1637_v59  ;;  %v1397_v59 = vld [vmem:[#allocation10 + $0x2f8] sm:$0xff] }
 0x2af   :  { %3052 = vmatpush1.bf16.msra.mxu0 %v3051_v8  ;;  %v1641_v8 = vld [vmem:[#allocation13 + $0x40] sm:$0xff] }
 0x2b0   :  { %3142 = vmatpush1.bf16.msra.mxu1 %v3141_v16  ;;  %v1369_v16 = vld [vmem:[#allocation10 + $0x218] sm:$0xff] }
 0x2b1   :  { %3144 = vmatprep.subr.bf16.mxu1 %v3143_v26  ;;  %v3053_v17 = vpack.c.bf16 %v1369_v16, %v1367_v15  ;;  %v860_v26 = vrot.slane %v847_v18, %v297_v53  ;;  %v1380_v15 = vld [vmem:[#allocation10 + $0x270] sm:$0xff]  ;;  %v1383_v16 = vld [vmem:[#allocation10 + $0x288] sm:$0xff]  ;;  %v1385_v18 = vld [vmem:[#allocation10 + $0x298] sm:$0xff] }
 0x2b3   :  { %3054 = vmatprep.subr.bf16.mxu0 %v3053_v17  ;;  %v3206_v17 = vpack.c.bf16 %v1643_v9, %v1641_v8  ;;  %v1290_v9 = vld [vmem:[#allocation9] sm:$0xff] }
 0x2b4   :  { %3146 = vmatpush1.bf16.msra.mxu1 %v3145_v34 }
 0x2b5   :  { %3148 = vmatprep.subr.bf16.mxu1 %v3147_v37  ;;  %v3195_v37 = vpack.c.bf16 %v1636_v36, %v1634_v35  ;;  %v1387_v35 = vld [vmem:[#allocation10 + $0x2a8] sm:$0xff] }
 0x2b8   :  { %3150 = vmatpush1.bf16.msra.mxu1 %v3149_v20  ;;  %v1633_v20 = vld [vmem:[#allocation13] sm:$0xff] }
 0x2b9   :  { %3152 = vmatprep.subr.bf16.mxu1 %v3151_v46  ;;  %v1640_v46 = vld [vmem:[#allocation13 + $0x38] sm:$0xff]  ;;  %v3197_v56 = vpack.c.bf16 %v1635_v44, %v1633_v20  ;;  %v1391_v20 = vld [vmem:[#allocation10 + $0x2c8] sm:$0xff] }
 0x2bc   :  { %3154 = vmatpush1.bf16.msra.mxu1 %v3153_v57  ;;  %v1377_v57 = vld [vmem:[#allocation10 + $0x258] sm:$0xff] }
 0x2bd   :  { %3156 = vmatprep.subr.bf16.mxu1 %v3155_v58  ;;  %v3199_v58 = vpack.c.bf16 %v1640_v46, %v1638_v45  ;;  %v3061_v1 = vpack.c.bf16 %v1377_v57, %v1375_v55  ;;  %v1393_v45 = vld [vmem:[#allocation10 + $0x2d8] sm:$0xff]  ;;  %v1390_v55 = vld [vmem:[#allocation10 + $0x2c0] sm:$0xff]  ;;  %v1395_v57 = vld [vmem:[#allocation10 + $0x2e8] sm:$0xff] }
 0x2be   :  { %v3077_v54 = vpack.c.bf16 %v1393_v45, %v1391_v20  ;;  %v1717_v20 = vld [vmem:[#allocation15 + $0x240] sm:$0xff]  ;;  %v1724_v45 = vld [vmem:[#allocation15 + $0x278] sm:$0xff] }
 0x2c0   :  { %3158 = vmatpush1.bf16.msra.mxu1 %v3157_v62  ;;  %v1644_v62 = vld [vmem:[#allocation13 + $0x58] sm:$0x3] }
 0x2c1   :  { %3160 = vmatprep.subr.bf16.mxu1 %v3159_v11  ;;  %v3065_v11 = vpack.c.bf16 %v1381_v6, %v1379_v4  ;;  %v1293_v6 = vld [vmem:[#allocation9 + $0x18] sm:$0xff] }
 0x2c4   :  { %3162 = vmatpush1.bf16.msra.mxu1 %v3161_v12  ;;  %v1378_v12 = vld [vmem:[#allocation10 + $0x260] sm:$0xff] }
 0x2c5   :  { %3196 = vmatprep.subr.bf16.mxu1 %v3195_v37  ;;  %v1389_v37 = vld [vmem:[#allocation10 + $0x2b8] sm:$0xff] }
 0x2c6   :  { %v3073_v42 = vpack.c.bf16 %v1389_v37, %v1387_v35  ;;  %v1709_v35 = vld [vmem:[#allocation15 + $0x200] sm:$0xff]  ;;  %v1714_v37 = vld [vmem:[#allocation15 + $0x228] sm:$0xff] }
 0x2da   :  { %v2471_v2 = vpop.f32.mrb[4].mxu0 }
 0x2db   :  { %v2472_v7 = vpop.f32.mrb[5].mxu0 }
 0x2dc   :  { %v2473_v24 = vadd.f32 %v2472_v7, %v2471_v2  ;;  %v1374_v2 = vld [vmem:[#allocation10 + $0x240] sm:$0xff]  ;;  %v3203_v7 = vpack.c.bf16 %v1644_v62, %v1642_v61  ;;  %v1974_v62 = vld [vmem:[#allocation16 + $0x70] sm:$0xff] }
 0x2dd   :  { %v1972_v61 = vld [vmem:[#allocation16 + $0x60] sm:$0xff] }
 0x2de   :  { %v1144_v28 = vadd.f32 %v2473_v24, %v860_v26  ;;  %v3063_v24 = vpack.c.bf16 %v1376_v3, %v1374_v2  ;;  %v3209_v26 = vpack.c.bf16 %v1963_v19, %v1961_v10  ;;  %v1394_v2 = vld [vmem:[#allocation10 + $0x2e0] sm:$0xff]  ;;  %v1396_v3 = vld [vmem:[#allocation10 + $0x2f0] sm:$0xff]  ;;  %v3223_v4 = vpack.c.bf16 %v1974_v62, %v1972_v61  ;;  %v1295_v19 = vld [vmem:[#allocation9 + $0x28] sm:$0xff] }
 0x2df   :  { %v1292_v10 = vld [vmem:[#allocation9 + $0x10] sm:$0xff]  ;;  %v1729_v61 = vld [vmem:[#allocation15 + $0x2a0] sm:$0xff] }
 0x2e0   :  { %v1731_v62 = vld [vmem:[#allocation15 + $0x2b0] sm:$0xff] }
 0x2fa   :  { %v2506_v27 = vpop.f32.mrb[6].mxu0 }
 0x2fb   :  { %v2507_v13 = vpop.f32.mrb[7].mxu0 }
 0x2fc   :  { %v2508_v29 = vadd.f32 %v2507_v13, %v2506_v27  ;;  %v1960_v27 = vld [vmem:[#allocation16] sm:$0xff]  ;;  %v1962_v13 = vld [vmem:[#allocation16 + $0x10] sm:$0xff] }
 0x2fd   :  { %v3211_v36 = vpack.c.bf16 %v1962_v13, %v1960_v27 }
 0x2fe   :  { %v1214_v30 = vadd.f32 %v2508_v29, %v1144_v28  ;;  %v1965_v28 = vld [vmem:[#allocation16 + $0x28] sm:$0xff]  ;;  %v1967_v29 = vld [vmem:[#allocation16 + $0x38] sm:$0xff] }
 0x31a   :  { %v2541_v31 = vpop.f32.mrb[8].mxu0 }
 0x31b   :  { %v2542_v32 = vpop.f32.mrb[9].mxu0 }
 0x31c   :  { %v2543_v33 = vadd.f32 %v2542_v32, %v2541_v31  ;;  %v3069_v31 = vpack.c.bf16 %v1385_v18, %v1383_v16  ;;  %v1382_v32 = vld [vmem:[#allocation10 + $0x280] sm:$0xff]  ;;  %v1299_v18 = vld [vmem:[#allocation9 + $0x48] sm:$0xff] }
 0x31d   :  { %v1294_v16 = vld [vmem:[#allocation9 + $0x20] sm:$0xff] }
 0x31e   :  { %v4155_v34 = vadd.f32 %v2543_v33, %v1214_v30  ;;  %v3067_v30 = vpack.c.bf16 %v1380_v15, %v1378_v12  ;;  %v1384_v33 = vld [vmem:[#allocation10 + $0x290] sm:$0xff] }
 0x31f   :  { %v3071_v40 = vpack.c.bf16 %v1384_v33, %v1382_v32 }
 0x320   :  { %v1289_v12 = vmax.f32 %v4155_v34, 0.0  ;;  %v1984_v34 = vld [vmem:[#allocation16 + $0xc0] sm:$0xff] }
 0x35a   :  { %v1072_v22 = vpop.f32.mrb[2].mxu1 }
 0x35b   :  { %v3341_v53 = vadd.f32 %v1072_v22, %v852_v39  ;;  %v1074_v47 = vpop.f32.mrb[3].mxu1  ;;  %v3213_v39 = vpack.c.bf16 %v1967_v29, %v1965_v28  ;;  %v1966_v22 = vld [vmem:[#allocation16 + $0x30] sm:$0xff]  ;;  %v1298_v28 = vld [vmem:[#allocation9 + $0x40] sm:$0xff]  ;;  %v1300_v29 = vld [vmem:[#allocation9 + $0x50] sm:$0x3] }
 0x35c   :  { %v3342_v43 = vadd.f32 %v1074_v47, %v856_v21  ;;  %v1964_v21 = vld [vmem:[#allocation16 + $0x20] sm:$0xff]  ;;  %v1971_v47 = vld [vmem:[#allocation16 + $0x58] sm:$0xff]  ;;  %v3096_v32 = vpack.c.bf16 %v1300_v29, %v1298_v28  ;;  %v1982_v29 = vld [vmem:[#allocation16 + $0xb0] sm:$0xff] }
 0x35d   :  { %v1287_v50 = vmax.f32 %v3341_v53, 0.0  ;;  %v1969_v53 = vld [vmem:[#allocation16 + $0x48] sm:$0xff]  ;;  %v3215_v44 = vpack.c.bf16 %v1966_v22, %v1964_v21  ;;  %v1980_v28 = vld [vmem:[#allocation16 + $0xa0] sm:$0xff] }
 0x35e   :  { %v1288_v48 = vmax.f32 %v3342_v43, 0.0  ;;  %v1386_v43 = vld [vmem:[#allocation10 + $0x2a0] sm:$0xff]  ;;  %v3217_v46 = vpack.c.bf16 %v1971_v47, %v1969_v53  ;;  %v1715_v47 = vld [vmem:[#allocation15 + $0x230] sm:$0xff] }
 0x35f   :  { %v3075_v52 = vpack.c.bf16 %v1388_v38, %v1386_v43  ;;  %v1713_v53 = vld [vmem:[#allocation15 + $0x220] sm:$0xff] }
 0x360   :  { %1462 = vmatprep.mubr.f32.mxu0 %v1288_v48  ;;  %1805 = vmatprep.mubr.f32.mxu1 %v1288_v48  ;;  %v1968_v48 = vld [vmem:[#allocation16 + $0x40] sm:$0xff]  ;;  %v3169_v43 = vpack.c.bf16 %v1715_v47, %v1713_v53  ;;  %v1990_v53 = vld [vmem:[#allocation16 + $0xf0] sm:$0xff]  ;;  %v1993_v47 = vld [vmem:[#allocation16 + $0x108] sm:$0xff] }
 0x361   :  { %1463 = vmatmul.mubr.f32.vlgmr.msra.gmra.mrb[10].mxu0 %v1287_v50  ;;  %1806 = vmatmul.mubr.f32.vlgmr.msra.gmra.mrb[4].mxu1 %v1287_v50  ;;  %v1973_v50 = vld [vmem:[#allocation16 + $0x68] sm:$0xff] }
 0x362   :  { %3056 = vmatpush1.bf16.msra.mxu0 %v3055_v49  ;;  %1533 = vmatprep.mubr.f32.mxu0 %v3754_v0  ;;  %v1970_v49 = vld [vmem:[#allocation16 + $0x50] sm:$0xff] }
 0x363   :  { %3058 = vmatprep.subr.bf16.mxu0 %v3057_v51  ;;  %3198 = vmatpush1.bf16.msra.mxu1 %v3197_v56  ;;  %v1975_v51 = vld [vmem:[#allocation16 + $0x78] sm:$0xff]  ;;  %v1392_v56 = vld [vmem:[#allocation10 + $0x2d0] sm:$0xff] }
 0x364   :  { %3200 = vmatprep.subr.bf16.mxu1 %v3199_v58  ;;  %1953 = vmatprep.mubr.f32.mxu1 %v3754_v0  ;;  %v3219_v58 = vpack.c.bf16 %v1970_v49, %v1968_v48  ;;  %v3221_v60 = vpack.c.bf16 %v1975_v51, %v1973_v50  ;;  %v3175_v48 = vpack.c.bf16 %v1724_v45, %v1722_v14  ;;  %v1721_v49 = vld [vmem:[#allocation15 + $0x260] sm:$0xff]  ;;  %v1723_v50 = vld [vmem:[#allocation15 + $0x270] sm:$0xff]  ;;  %v1726_v51 = vld [vmem:[#allocation15 + $0x288] sm:$0xff] }
 0x365   :  { %v1999_v14 = vld [vmem:[#allocation16 + $0x138] sm:$0xff] }
 0x366   :  { %3060 = vmatpush1.bf16.msra.mxu0 %v3059_v63  ;;  %v3079_v63 = vpack.c.bf16 %v1392_v56, %v1390_v55  ;;  %v1725_v55 = vld [vmem:[#allocation15 + $0x280] sm:$0xff]  ;;  %v1727_v56 = vld [vmem:[#allocation15 + $0x290] sm:$0xff] }
 0x367   :  { %3062 = vmatprep.subr.bf16.mxu0 %v3061_v1  ;;  %3202 = vmatpush1.bf16.msra.mxu1 %v3201_v5  ;;  %v3081_v1 = vpack.c.bf16 %v1397_v59, %v1395_v57  ;;  %v1291_v5 = vld [vmem:[#allocation9 + $0x8] sm:$0xff]  ;;  %v3181_v59 = vpack.c.bf16 %v1727_v56, %v1725_v55  ;;  %v2002_v55 = vld [vmem:[#allocation16 + $0x150] sm:$0xff] }
 0x368   :  { %3205 = vmatprep.subr.msk.bf16.mxu1 %vm4071_vm2, %v3203_v7  ;;  %v3083_v7 = vpack.c.bf16 %v1396_v3, %v1394_v2  ;;  %v3085_v8 = vpack.c.bf16 %v1293_v6, %v1291_v5  ;;  %v1730_v57 = vld [vmem:[#allocation15 + $0x2a8] sm:$0xff]  ;;  %v3185_v2 = vpack.c.bf16 %v1731_v62, %v1729_v61  ;;  %v1735_v5 = vld [vmem:[#allocation15 + $0x2d0] sm:$0xff] }
 0x369   :  { %v1738_v6 = vld [vmem:[#allocation15 + $0x2e8] sm:$0xff]  ;;  %v2006_v61 = vld [vmem:[#allocation16 + $0x170] sm:$0xff] }
 0x36a   :  { %3064 = vmatpush1.bf16.msra.mxu0 %v3063_v24  ;;  %v1297_v24 = vld [vmem:[#allocation9 + $0x38] sm:$0xff]  ;;  %v2005_v56 = vld [vmem:[#allocation16 + $0x168] sm:$0xff] }
 0x36b   :  { %3066 = vmatprep.subr.bf16.mxu0 %v3065_v11  ;;  %3208 = vmatpush1.bf16.msk.msra.mxu1 %vm4071_vm2, %v3206_v17  ;;  %v3087_v11 = vpack.c.bf16 %v1292_v10, %v1290_v9  ;;  %v3089_v15 = vpack.c.bf16 %v1297_v24, %v1295_v19  ;;  %v1296_v17 = vld [vmem:[#allocation9 + $0x30] sm:$0xff]  ;;  %v1737_v10 = vld [vmem:[#allocation15 + $0x2e0] sm:$0xff] }
 0x36c   :  { %3210 = vmatprep.subr.bf16.mxu1 %v3209_v26  ;;  %v1301_v26 = vld [vmem:[#allocation9 + $0x58] sm:$0x3]  ;;  %v3091_v27 = vpack.c.bf16 %v1296_v17, %v1294_v16  ;;  %v1976_v17 = vld [vmem:[#allocation16 + $0x80] sm:$0xff]  ;;  %v2009_v62 = vld [vmem:[#allocation16 + $0x188] sm:$0xff] }
 0x36d   :  { %v3093_v13 = vpack.c.bf16 %v1301_v26, %v1299_v18  ;;  %v1739_v19 = vld [vmem:[#allocation15 + $0x2f0] sm:$0xff]  ;;  %v1981_v26 = vld [vmem:[#allocation16 + $0xa8] sm:$0xff] }
 0x36e   :  { %3068 = vmatpush1.bf16.msra.mxu0 %v3067_v30  ;;  %2434 = vmatmul.mubr.msk.f32.vlgmr.msra.gmra.mrb[6].mxu1 %vm317_vm3, %v4168_v41  ;;  %v1710_v30 = vld [vmem:[#allocation15 + $0x208] sm:$0xff]  ;;  %v3193_v24 = vpack.c.bf16 %v1739_v19, %v1737_v10  ;;  %v1978_v18 = vld [vmem:[#allocation16 + $0x90] sm:$0xff] }
 0x36f   :  { %3070 = vmatprep.subr.bf16.mxu0 %v3069_v31  ;;  %3212 = vmatpush1.bf16.msra.mxu1 %v3211_v36  ;;  %v1712_v31 = vld [vmem:[#allocation15 + $0x218] sm:$0xff]  ;;  %v1711_v36 = vld [vmem:[#allocation15 + $0x210] sm:$0xff]  ;;  %v2017_v19 = vld [vmem:[#allocation16 + $0x1c8] sm:$0xff] }
 0x370   :  { %3214 = vmatprep.subr.bf16.mxu1 %v3213_v39  ;;  %v3163_v33 = vpack.c.bf16 %v1712_v31, %v1710_v30  ;;  %v1716_v39 = vld [vmem:[#allocation15 + $0x238] sm:$0xff]  ;;  %v3165_v21 = vpack.c.bf16 %v1711_v36, %v1709_v35  ;;  %v1985_v31 = vld [vmem:[#allocation16 + $0xc8] sm:$0xff]  ;;  %v2014_v10 = vld [vmem:[#allocation16 + $0x1b0] sm:$0xff] }
 0x371   :  { %v3167_v22 = vpack.c.bf16 %v1716_v39, %v1714_v37  ;;  %v1989_v36 = vld [vmem:[#allocation16 + $0xe8] sm:$0xff]  ;;  %v1991_v37 = vld [vmem:[#allocation16 + $0xf8] sm:$0xff] }
 0x372   :  { %3072 = vmatpush1.bf16.msra.mxu0 %v3071_v40  ;;  %v1718_v40 = vld [vmem:[#allocation15 + $0x248] sm:$0xff] }
 0x373   :  { %3074 = vmatprep.subr.bf16.mxu0 %v3073_v42  ;;  %3216 = vmatpush1.bf16.msra.mxu1 %v3215_v44  ;;  %v1720_v42 = vld [vmem:[#allocation15 + $0x258] sm:$0xff]  ;;  %v1719_v44 = vld [vmem:[#allocation15 + $0x250] sm:$0xff] }
 0x374   :  { %3218 = vmatprep.subr.bf16.mxu1 %v3217_v46  ;;  %v3171_v38 = vpack.c.bf16 %v1720_v42, %v1718_v40  ;;  %v3173_v46 = vpack.c.bf16 %v1719_v44, %v1717_v20  ;;  %v1995_v40 = vld [vmem:[#allocation16 + $0x118] sm:$0xff]  ;;  %v1994_v20 = vld [vmem:[#allocation16 + $0x110] sm:$0xff]  ;;  %v1997_v44 = vld [vmem:[#allocation16 + $0x128] sm:$0xff] }
 0x376   :  { %3076 = vmatpush1.bf16.msra.mxu0 %v3075_v52  ;;  %v1728_v52 = vld [vmem:[#allocation15 + $0x298] sm:$0xff] }
 0x377   :  { %3078 = vmatprep.subr.bf16.mxu0 %v3077_v54  ;;  %3220 = vmatpush1.bf16.msra.mxu1 %v3219_v58  ;;  %v3179_v54 = vpack.c.bf16 %v1728_v52, %v1726_v51  ;;  %v1732_v58 = vld [vmem:[#allocation15 + $0x2b8] sm:$0xff] }
 0x378   :  { %3222 = vmatprep.subr.bf16.mxu1 %v3221_v60  ;;  %v3183_v60 = vpack.c.bf16 %v1732_v58, %v1730_v57  ;;  %v2003_v51 = vld [vmem:[#allocation16 + $0x158] sm:$0xff] }
 0x379   :  { %v2007_v57 = vld [vmem:[#allocation16 + $0x178] sm:$0xff] }
 0x37a   :  { %3080 = vmatpush1.bf16.msra.mxu0 %v3079_v63  ;;  %v1734_v63 = vld [vmem:[#allocation15 + $0x2c8] sm:$0xff] }
 0x37b   :  { %3082 = vmatprep.subr.bf16.mxu0 %v3081_v1  ;;  %3224 = vmatpush1.bf16.msra.mxu1 %v3223_v4  ;;  %v1736_v1 = vld [vmem:[#allocation15 + $0x2d8] sm:$0xff]  ;;  %v1733_v4 = vld [vmem:[#allocation15 + $0x2c0] sm:$0xff] }
 0x37c   :  { %v3187_v3 = vpack.c.bf16 %v1736_v1, %v1734_v63  ;;  %v2011_v63 = vld [vmem:[#allocation16 + $0x198] sm:$0xff] }
 0x37e   :  { %3084 = vmatpush1.bf16.msra.mxu0 %v3083_v7  ;;  %v1740_v7 = vld [vmem:[#allocation15 + $0x2f8] sm:$0xff] }
 0x37f   :  { %3086 = vmatprep.subr.bf16.mxu0 %v3085_v8  ;;  %v3189_v8 = vpack.c.bf16 %v1735_v5, %v1733_v4  ;;  %v3191_v9 = vpack.c.bf16 %v1740_v7, %v1738_v6  ;;  %v2010_v4 = vld [vmem:[#allocation16 + $0x190] sm:$0xff]  ;;  %v2013_v5 = vld [vmem:[#allocation16 + $0x1a8] sm:$0xff]  ;;  %v2015_v6 = vld [vmem:[#allocation16 + $0x1b8] sm:$0xff] }
 0x381   :  { %1534 = vmatmul.mubr.f32.vlgmr.msra.gmra.mrb[10].mxu0 %v1289_v12 }
 0x382   :  { %3088 = vmatpush1.bf16.msra.mxu0 %v3087_v11  ;;  %1610 = vmatprep.mubr.f32.mxu0 %v3754_v0  ;;  %v1977_v11 = vld [vmem:[#allocation16 + $0x88] sm:$0xff] }
 0x383   :  { %3090 = vmatprep.subr.bf16.mxu0 %v3089_v15  ;;  %v1979_v15 = vld [vmem:[#allocation16 + $0x98] sm:$0xff] }
 0x384   :  { %v3225_v16 = vpack.c.bf16 %v1979_v15, %v1977_v11 }
 0x386   :  { %3092 = vmatpush1.bf16.msra.mxu0 %v3091_v27  ;;  %v3227_v27 = vpack.c.bf16 %v1978_v18, %v1976_v17  ;;  %3226 = vmatprep.subr.bf16.mxu1 %v3225_v16  ;;  %v2016_v16 = vld [vmem:[#allocation16 + $0x1c0] sm:$0xff]  ;;  %v2018_v17 = vld [vmem:[#allocation16 + $0x1d0] sm:$0xff] }
 0x387   :  { %3095 = vmatprep.subr.msk.bf16.mxu0 %vm4071_vm2, %v3093_v13  ;;  %v1983_v13 = vld [vmem:[#allocation16 + $0xb8] sm:$0xff]  ;;  %v3267_v18 = vpack.c.bf16 %v2018_v17, %v2016_v16  ;;  %v2142_v16 = vld [vmem:[#allocation19 + $0xe8] sm:$0xff] }
 0x388   :  { %v3229_v30 = vpack.c.bf16 %v1983_v13, %v1981_v26  ;;  %3228 = vmatpush1.bf16.msra.mxu1 %v3227_v27  ;;  %v2021_v26 = vld [vmem:[#allocation16 + $0x1e8] sm:$0xff]  ;;  %v2023_v27 = vld [vmem:[#allocation16 + $0x1f8] sm:$0xff] }
 0x389   :  { %v3269_v13 = vpack.c.bf16 %v2023_v27, %v2021_v26  ;;  %v2126_v26 = vld [vmem:[#allocation19 + $0x68] sm:$0xff] }
 0x38a   :  { %3098 = vmatpush1.bf16.msk.msra.mxu0 %vm4071_vm2, %v3096_v32  ;;  %v1987_v32 = vld [vmem:[#allocation16 + $0xd8] sm:$0xff]  ;;  %3230 = vmatprep.subr.bf16.mxu1 %v3229_v30 }
 0x38b   :  { %3164 = vmatprep.subr.bf16.mxu0 %v3163_v33  ;;  %v3231_v33 = vpack.c.bf16 %v1982_v29, %v1980_v28  ;;  %v3233_v35 = vpack.c.bf16 %v1987_v32, %v1985_v31  ;;  %v2020_v28 = vld [vmem:[#allocation16 + $0x1e0] sm:$0xff]  ;;  %v2022_v29 = vld [vmem:[#allocation16 + $0x1f0] sm:$0xff] }
 0x38c   :  { %v3271_v30 = vpack.c.bf16 %v2022_v29, %v2020_v28  ;;  %v2129_v31 = vld [vmem:[#allocation19 + $0x80] sm:$0xff]  ;;  %v2130_v32 = vld [vmem:[#allocation19 + $0x88] sm:$0xff]  ;;  %v2144_v28 = vld [vmem:[#allocation19 + $0xf8] sm:$0xff] }
 0x38d   :  { %2431 = vmatmul.mubr.msk.f32.vlgmr.msra.gmra.mrb[10].mxu0 %vm317_vm3, %v4168_v41  ;;  %v3177_v41 = vpack.c.bf16 %v1723_v50, %v1721_v49  ;;  %3232 = vmatpush1.bf16.msra.mxu1 %v3231_v33  ;;  %v1998_v49 = vld [vmem:[#allocation16 + $0x130] sm:$0xff]  ;;  %v2001_v50 = vld [vmem:[#allocation16 + $0x148] sm:$0xff] }
 0x38e   :  { %3166 = vmatpush1.bf16.msra.mxu0 %v3165_v21  ;;  %1876 = vmatprep.mubr.f32.mxu0 %v3754_v0  ;;  %v3237_v21 = vpack.c.bf16 %v1991_v37, %v1989_v36  ;;  %v2113_v33 = vld [vmem:[#allocation19] sm:$0xff]  ;;  %v2132_v36 = vld [vmem:[#allocation19 + $0x98] sm:$0xff] }
 0x38f   :  { %3168 = vmatprep.subr.bf16.mxu0 %v3167_v22  ;;  %3234 = vmatprep.subr.bf16.mxu1 %v3233_v35  ;;  %v1988_v22 = vld [vmem:[#allocation16 + $0xe0] sm:$0xff]  ;;  %v3273_v35 = vpack.c.bf16 %v2130_v32, %v2129_v31 }
 0x390   :  { %v3239_v42 = vpack.c.bf16 %v1990_v53, %v1988_v22  ;;  %v2116_v22 = vld [vmem:[#allocation19 + $0x18] sm:$0xff]  ;;  %v2133_v53 = vld [vmem:[#allocation19 + $0xa0] sm:$0xff] }
 0x391   :  { %v2128_v31 = vld [vmem:[#allocation19 + $0x78] sm:$0xff] }
 0x392   :  { %3170 = vmatpush1.bf16.msra.mxu0 %v3169_v43  ;;  %v3241_v43 = vpack.c.bf16 %v1995_v40, %v1993_v47  ;;  %v2134_v47 = vld [vmem:[#allocation19 + $0xa8] sm:$0xff] }
 0x393   :  { %3172 = vmatprep.subr.bf16.mxu0 %v3171_v38  ;;  %v1992_v38 = vld [vmem:[#allocation16 + $0x100] sm:$0xff] }
 0x394   :  { %v3243_v45 = vpack.c.bf16 %v1994_v20, %v1992_v38  ;;  %v2118_v38 = vld [vmem:[#allocation19 + $0x28] sm:$0xff]  ;;  %v2135_v20 = vld [vmem:[#allocation19 + $0xb0] sm:$0xff] }
 0x396   :  { %3174 = vmatpush1.bf16.msra.mxu0 %v3173_v46  ;;  %v3245_v46 = vpack.c.bf16 %v1999_v14, %v1997_v44  ;;  %v2136_v44 = vld [vmem:[#allocation19 + $0xb8] sm:$0xff] }
 0x397   :  { %3176 = vmatprep.subr.bf16.mxu0 %v3175_v48  ;;  %v1996_v48 = vld [vmem:[#allocation16 + $0x120] sm:$0xff] }
 0x398   :  { %v3247_v52 = vpack.c.bf16 %v1998_v49, %v1996_v48  ;;  %v2120_v48 = vld [vmem:[#allocation19 + $0x38] sm:$0xff]  ;;  %v2137_v49 = vld [vmem:[#allocation19 + $0xc0] sm:$0xff] }
 0x39a   :  { %3178 = vmatpush1.bf16.msra.mxu0 %v3177_v41  ;;  %v3249_v41 = vpack.c.bf16 %v2003_v51, %v2001_v50  ;;  %v2138_v50 = vld [vmem:[#allocation19 + $0xc8] sm:$0xff] }
 0x39b   :  { %3180 = vmatprep.subr.bf16.mxu0 %v3179_v54  ;;  %v2000_v54 = vld [vmem:[#allocation16 + $0x140] sm:$0xff] }
 0x39c   :  { %v3251_v58 = vpack.c.bf16 %v2002_v55, %v2000_v54  ;;  %v2122_v54 = vld [vmem:[#allocation19 + $0x48] sm:$0xff]  ;;  %v2139_v55 = vld [vmem:[#allocation19 + $0xd0] sm:$0xff] }
 0x39e   :  { %3182 = vmatpush1.bf16.msra.mxu0 %v3181_v59  ;;  %v3253_v59 = vpack.c.bf16 %v2007_v57, %v2005_v56  ;;  %v2140_v56 = vld [vmem:[#allocation19 + $0xd8] sm:$0xff] }
 0x39f   :  { %3184 = vmatprep.subr.bf16.mxu0 %v3183_v60  ;;  %v2004_v60 = vld [vmem:[#allocation16 + $0x160] sm:$0xff] }
 0x3a0   :  { %v3255_v1 = vpack.c.bf16 %v2006_v61, %v2004_v60  ;;  %v2124_v60 = vld [vmem:[#allocation19 + $0x58] sm:$0xff] }
 0x3a2   :  { %3186 = vmatpush1.bf16.msra.mxu0 %v3185_v2  ;;  %v3257_v2 = vpack.c.bf16 %v2011_v63, %v2009_v62 }
 0x3a3   :  { %3188 = vmatprep.subr.bf16.mxu0 %v3187_v3  ;;  %v2008_v3 = vld [vmem:[#allocation16 + $0x180] sm:$0xff] }
 0x3a4   :  { %v3259_v7 = vpack.c.bf16 %v2010_v4, %v2008_v3 }
 0x3a6   :  { %3190 = vmatpush1.bf16.msra.mxu0 %v3189_v8  ;;  %v3261_v8 = vpack.c.bf16 %v2015_v6, %v2013_v5 }
 0x3a7   :  { %3192 = vmatprep.subr.bf16.mxu0 %v3191_v9  ;;  %v2012_v9 = vld [vmem:[#allocation16 + $0x1a0] sm:$0xff] }
 0x3a8   :  { %v3263_v11 = vpack.c.bf16 %v2014_v10, %v2012_v9 }
 0x3aa   :  { %3194 = vmatpush1.bf16.msra.mxu0 %v3193_v24  ;;  %v2019_v24 = vld [vmem:[#allocation16 + $0x1d8] sm:$0xff] }
 0x3ab   :  { %v3265_v15 = vpack.c.bf16 %v2019_v24, %v2017_v19  ;;  %3274 = vmatprep.subr.bf16.mxu0 %v3273_v35  ;;  %v2097_v35 = vld [vmem:[#allocation18] sm:$0x3] }
 0x3ad   :  { %1877 = vmatmul.mubr.f32.vlgmr.msra.gmra.mrb[12].mxu0 %v1289_v12  ;;  %v1986_v12 = vld [vmem:[#allocation16 + $0xd0] sm:$0xff] }
 0x3ae   :  { %v3235_v39 = vpack.c.bf16 %v1986_v12, %v1984_v34  ;;  %v2114_v34 = vld [vmem:[#allocation19 + $0x8] sm:$0xff]  ;;  %v2131_v12 = vld [vmem:[#allocation19 + $0x90] sm:$0xff] }
 0x3af   :  { %v3275_v37 = vpack.c.bf16 %v2114_v34, %v2113_v33  ;;  %v3756_v33 = vmov 0.0|0.0   ;;  %v2102_v34 = vrot.slane %v2097_v35, %v4102_v23 }
 0x3b0   :  { %3236 = vmatpush1.bf16.msra.mxu1 %v3235_v39  ;;  %v3277_v39 = vpack.c.bf16 %v2132_v36, %v2131_v12  ;;  %v2106_v36 = vrot.slane %v2097_v35, %v4107_v25 }
 0x3b1   :  { %3238 = vmatprep.subr.bf16.mxu1 %v3237_v21  ;;  %v2115_v21 = vld [vmem:[#allocation19 + $0x10] sm:$0xff]  ;;  %3276 = vmatpush3.bf16.msra.mxu0 %v3275_v37 }
 0x3b2   :  { %v3279_v40 = vpack.c.bf16 %v2116_v22, %v2115_v21  ;;  %3278 = vmatprep.subr.bf16.mxu0 %v3277_v39 }
 0x3b4   :  { %3240 = vmatpush1.bf16.msra.mxu1 %v3239_v42  ;;  %v3281_v42 = vpack.c.bf16 %v2134_v47, %v2133_v53  ;;  %v2223_v53 = vld [vmem:[%s4294_s14] sm:$0xff]  ;;  %v2224_v47 = vld [vmem:[%s4294_s14 + $0x8] sm:$0xff] }
 0x3b5   :  { %3242 = vmatprep.subr.bf16.mxu1 %v3241_v43  ;;  %v2117_v43 = vld [vmem:[#allocation19 + $0x20] sm:$0xff]  ;;  %3280 = vmatpush3.bf16.msra.mxu0 %v3279_v40 }
 0x3b6   :  { %v3283_v14 = vpack.c.bf16 %v2118_v38, %v2117_v43  ;;  %3282 = vmatprep.subr.bf16.mxu0 %v3281_v42  ;;  %v3306_v43 = vpack.c.bf16 %v2224_v47, %v2223_v53 }
 0x3b8   :  { %3244 = vmatpush1.bf16.msra.mxu1 %v3243_v45  ;;  %v3285_v45 = vpack.c.bf16 %v2136_v44, %v2135_v20  ;;  %v2227_v44 = vld [vmem:[%s4294_s14 + $0x20] sm:$0xff] }
 0x3b9   :  { %3246 = vmatprep.subr.bf16.mxu1 %v3245_v46  ;;  %v2119_v46 = vld [vmem:[#allocation19 + $0x30] sm:$0xff]  ;;  %3284 = vmatpush3.bf16.msra.mxu0 %v3283_v14  ;;  %v2228_v14 = vld [vmem:[%s4294_s14 + $0x28] sm:$0xff] }
 0x3ba   :  { %v3287_v51 = vpack.c.bf16 %v2120_v48, %v2119_v46  ;;  %3286 = vmatprep.subr.bf16.mxu0 %v3285_v45  ;;  %v3312_v45 = vpack.c.bf16 %v2228_v14, %v2227_v44  ;;  %v2229_v46 = vld [vmem:[%s4294_s14 + $0x30] sm:$0xff]  ;;  %v2230_v48 = vld [vmem:[%s4294_s14 + $0x38] sm:$0xff] }
 0x3bc   :  { %3248 = vmatpush1.bf16.msra.mxu1 %v3247_v52  ;;  %v3289_v52 = vpack.c.bf16 %v2138_v50, %v2137_v49  ;;  %v3315_v49 = vpack.c.bf16 %v2230_v48, %v2229_v46  ;;  %v2231_v50 = vld [vmem:[%s4294_s14 + $0x40] sm:$0xff] }
 0x3bd   :  { %3250 = vmatprep.subr.bf16.mxu1 %v3249_v41  ;;  %v2121_v41 = vld [vmem:[#allocation19 + $0x40] sm:$0xff]  ;;  %3288 = vmatpush3.bf16.msra.mxu0 %v3287_v51 }
 0x3be   :  { %v3291_v57 = vpack.c.bf16 %v2122_v54, %v2121_v41  ;;  %3290 = vmatprep.subr.bf16.mxu0 %v3289_v52  ;;  %v2232_v51 = vld [vmem:[%s4294_s14 + $0x48] sm:$0xff]  ;;  %v2233_v41 = vld [vmem:[%s4294_s14 + $0x50] sm:$0xff]  ;;  %v2234_v54 = vld [vmem:[%s4294_s14 + $0x58] sm:$0xff] }
 0x3bf   :  { %v3318_v52 = vpack.c.bf16 %v2232_v51, %v2231_v50 }
 0x3c0   :  { %3252 = vmatpush1.bf16.msra.mxu1 %v3251_v58  ;;  %v3293_v58 = vpack.c.bf16 %v2140_v56, %v2139_v55  ;;  %v3321_v55 = vpack.c.bf16 %v2234_v54, %v2233_v41  ;;  %v2235_v56 = vld [vmem:[%s4294_s14 + $0x60] sm:$0xff] }
 0x3c1   :  { %3254 = vmatprep.subr.bf16.mxu1 %v3253_v59  ;;  %v2123_v59 = vld [vmem:[#allocation19 + $0x50] sm:$0xff]  ;;  %3292 = vmatpush3.bf16.msra.mxu0 %v3291_v57  ;;  %v2236_v57 = vld [vmem:[%s4294_s14 + $0x68] sm:$0xff] }
 0x3c2   :  { %v3295_v61 = vpack.c.bf16 %v2124_v60, %v2123_v59  ;;  %3294 = vmatprep.subr.bf16.mxu0 %v3293_v58  ;;  %v3324_v58 = vpack.c.bf16 %v2236_v57, %v2235_v56  ;;  %v2237_v59 = vld [vmem:[%s4294_s14 + $0x70] sm:$0xff]  ;;  %v2238_v60 = vld [vmem:[%s4294_s14 + $0x78] sm:$0xff] }
 0x3c4   :  { %3256 = vmatpush1.bf16.msra.mxu1 %v3255_v1  ;;  %v1617_v1 = vld [vmem:[#allocation12] sm:$0x3] }
 0x3c5   :  { %3258 = vmatprep.subr.bf16.mxu1 %v3257_v2  ;;  %3296 = vmatpush3.bf16.msra.mxu0 %v3295_v61  ;;  %v1622_v2 = vrot.slane %v1617_v1, %v4102_v23  ;;  %v1626_v3 = vrot.slane %v1617_v1, %v4107_v25  ;;  %v2225_v23 = vld [vmem:[%s4294_s14 + $0x10] sm:$0xff]  ;;  %v2226_v25 = vld [vmem:[%s4294_s14 + $0x18] sm:$0xff]  ;;  %v3327_v61 = vpack.c.bf16 %v2238_v60, %v2237_v59 }
 0x3c6   :  { %v3309_v20 = vpack.c.bf16 %v2226_v25, %v2225_v23 }
 0x3c8   :  { %3260 = vmatpush1.bf16.msra.mxu1 %v3259_v7 }
 0x3c9   :  { %3262 = vmatprep.subr.bf16.mxu1 %v3261_v8 }
 0x3cc   :  { %3264 = vmatpush1.bf16.msra.mxu1 %v3263_v11 }
 0x3cd   :  { %3266 = vmatprep.subr.bf16.mxu1 %v3265_v15  ;;  %v2141_v15 = vld [vmem:[#allocation19 + $0xe0] sm:$0xff] }
 0x3ce   :  { %v3297_v17 = vpack.c.bf16 %v2142_v16, %v2141_v15  ;;  %v2324_v15 = vld [vmem:[%s4296_s16 + $0x38] sm:$0xff] }
 0x3d0   :  { %3268 = vmatpush1.bf16.msra.mxu1 %v3267_v18  ;;  %v2125_v18 = vld [vmem:[#allocation19 + $0x60] sm:$0xff]  ;;  %3298 = vmatprep.subr.bf16.mxu0 %v3297_v17 }
 0x3d1   :  { %3270 = vmatprep.subr.bf16.mxu1 %v3269_v13  ;;  %v3299_v27 = vpack.c.bf16 %v2126_v26, %v2125_v18  ;;  %v2143_v13 = vld [vmem:[#allocation19 + $0xf0] sm:$0xff]  ;;  %v2436_v17 = vld [vmem:[#allocation22] ss:$0 sm:$0xff] }
 0x3d2   :  { %v3301_v29 = vpack.c.bf16 %v2144_v28, %v2143_v13  ;;  %v2437_v28 = vld [vmem:[#allocation24] ss:$0 sm:$0xff] }
 0x3d3   :  { %3300 = vmatpush3.bf16.msra.mxu0 %v3299_v27 }
 0x3d4   :  { %3272 = vmatpush1.bf16.msra.mxu1 %v3271_v30  ;;  %v2127_v30 = vld [vmem:[#allocation19 + $0x70] sm:$0xff]  ;;  %3302 = vmatprep.subr.bf16.mxu0 %v3301_v29 }
 0x3d5   :  { %v3303_v32 = vpack.c.bf16 %v2128_v31, %v2127_v30 }
 0x3d7   :  { %3304 = vmatpush3.bf16.msra.mxu0 %v3303_v32 }
 0x3d8   :  { %3305 = vmatprep.subr.bf16.mxu0 %v3756_v33 }
 0x434   :  { %v1807_v62 = vpop.f32.mrb[4].mxu1 }
 0x435   :  { %v1809_v63 = vpop.f32.mrb[5].mxu1 }
 0x460   :  { %v1612_v4 = vpop.f32.mrb[10].mxu0 }
 0x461   :  { %v1629_v5 = vadd.f32 %v1622_v2, %v1612_v4  ;;  %v1614_v6 = vpop.f32.mrb[11].mxu0  ;;  %v2318_v4 = vld [vmem:[%s4296_s16 + $0x8] sm:$0xff] }
 0x462   :  { %v1630_v7 = vadd.f32 %v1626_v3, %v1614_v6  ;;  %v2317_v3 = vld [vmem:[%s4296_s16] sm:$0xff] }
 0x463   :  { %v1631_v9 = vmax.f32 %v1629_v5, 0.0  ;;  %v3330_v6 = vpack.c.bf16 %v2318_v4, %v2317_v3 }
 0x464   :  { %v1632_v8 = vmax.f32 %v1630_v7, 0.0 }
 0x466   :  { %2088 = vmatprep.mubr.f32.mxu1 %v1632_v8  ;;  %v2319_v8 = vld [vmem:[%s4296_s16 + $0x10] sm:$0xff] }
 0x467   :  { %2089 = vmatmul.mubr.f32.vlgmr.msra.gmra.mrb[6].mxu1 %v1631_v9  ;;  %v2320_v9 = vld [vmem:[%s4296_s16 + $0x18] sm:$0xff] }
 0x480   :  { %v1878_v10 = vpop.f32.mrb[12].mxu0 }
 0x481   :  { %v1879_v19 = vadd.f32 %v1878_v10, %v1807_v62  ;;  %v1880_v24 = vpop.f32.mrb[13].mxu0  ;;  %v3333_v10 = vpack.c.bf16 %v2320_v9, %v2319_v8 }
 0x482   :  { %v1881_v11 = vadd.f32 %v1880_v24, %v1809_v63  ;;  %v2435_v63 = vld [vmem:[#allocation21] ss:$0 sm:$0xff] }
 0x483   :  { %v2322_v24 = vld [vmem:[%s4296_s16 + $0x28] sm:$0xff] }
 0x53a   :  { %v2090_v12 = vpop.f32.mrb[6].mxu1 }
 0x53b   :  { %v3344_v37 = vadd.f32 %v2090_v12, %v1879_v19  ;;  %v2092_v39 = vpop.f32.mrb[7].mxu1  ;;  %v2321_v19 = vld [vmem:[%s4296_s16 + $0x20] sm:$0xff] }
 0x53c   :  { %v3346_v21 = vadd.f32 %v2092_v39, %v1881_v11  ;;  %v3336_v11 = vpack.c.bf16 %v2322_v24, %v2321_v19 }
 0x53d   :  { %v2109_v22 = vadd.f32 %v3344_v37, %v2102_v34 }
 0x53e   :  { %v2110_v40 = vadd.f32 %v3346_v21, %v2106_v36 }
 0x53f   :  { %v2111_v38 = vmax.f32 %v2109_v22, 0.0 }
 0x540   :  { %v2112_v42 = vmax.f32 %v2110_v40, 0.0 }
 0x542   :  { %2216 = vmatprep.mubr.f32.mxu0 %v2112_v42 }
 0x543   :  { %2217 = vmatmul.mubr.f32.vlgmr.msra.gmra.mrb[14].mxu0 %v2111_v38 }
 0x544   :  { %3307 = vmatpush3.bf16.msra.mxu0 %v3306_v43  ;;  %2637 = vmatprep.mubr.msk.f32.mxu0 %vm3757_vm4, %v3754_v0 }
 0x545   :  { %3308 = vmatprep.subr.bf16.mxu0 %v3756_v33 }
 0x548   :  { %3310 = vmatpush3.bf16.msra.mxu0 %v3309_v20 }
 0x549   :  { %3311 = vmatprep.subr.bf16.mxu0 %v3756_v33 }
 0x54c   :  { %3313 = vmatpush3.bf16.msra.mxu0 %v3312_v45 }
 0x54d   :  { %3314 = vmatprep.subr.bf16.mxu0 %v3756_v33 }
 0x550   :  { %3316 = vmatpush3.bf16.msra.mxu0 %v3315_v49 }
 0x551   :  { %3317 = vmatprep.subr.bf16.mxu0 %v3756_v33 }
 0x554   :  { %3319 = vmatpush3.bf16.msra.mxu0 %v3318_v52 }
 0x555   :  { %3320 = vmatprep.subr.bf16.mxu0 %v3756_v33 }
 0x558   :  { %3322 = vmatpush3.bf16.msra.mxu0 %v3321_v55 }
 0x559   :  { %3323 = vmatprep.subr.bf16.mxu0 %v3756_v33 }
 0x55c   :  { %3325 = vmatpush3.bf16.msra.mxu0 %v3324_v58 }
 0x55d   :  { %3326 = vmatprep.subr.bf16.mxu0 %v3756_v33 }
 0x560   :  { %3328 = vmatpush3.bf16.msra.mxu0 %v3327_v61 }
 0x561   :  { %3329 = vmatprep.subr.bf16.mxu0 %v3756_v33 }
 0x616   :  { %v2576_v62 = vpop.f32.mrb[14].mxu0 }
 0x617   :  { %v2577_v1 = vpop.f32.mrb[15].mxu0 }
 0x618   :  { %v2578_v2 = vadd.f32 %v2577_v1, %v2576_v62 }
 0x61a   :  { %v2219_v5 = vadd.f32 %v2578_v2, %v2435_v63 }
 0x61c   :  { %v2222_v7 = vmax.f32 %v2219_v5, 0.0 }
 0x61e   :  { %2638 = vmatmul.mubr.f32.vlgmr.msra.gmra.mrb[16].mxu0 %v2222_v7 }
 0x61f   :  { %3331 = vmatpush3.bf16.msra.mxu0 %v3330_v6  ;;  %2656 = vmatprep.mubr.msk.f32.mxu0 %vm3757_vm4, %v3754_v0  ;;  %v2323_v0 = vld [vmem:[%s4296_s16 + $0x30] sm:$0xff] }
 0x620   :  { %3332 = vmatprep.subr.bf16.mxu0 %v3756_v33  ;;  %v3339_v16 = vpack.c.bf16 %v2324_v15, %v2323_v0 }
 0x623   :  { %3334 = vmatpush3.bf16.msra.mxu0 %v3333_v10 }
 0x624   :  { %3335 = vmatprep.subr.bf16.mxu0 %v3756_v33 }
 0x627   :  { %3337 = vmatpush3.bf16.msra.mxu0 %v3336_v11 }
 0x628   :  { %3338 = vmatprep.subr.bf16.mxu0 %v3756_v33 }
 0x62b   :  { %3340 = vmatpush3.bf16.msra.mxu0 %v3339_v16 }
 0x6f1   :  { %v2312_v18 = vpop.f32.mrb[16].mxu0 }
 0x6f2   :  { %v2313_v26 = vadd.f32 %v2436_v17, %v2312_v18  ;;  %v2639_v27 = vpop.f32.mrb[17].mxu0 }
 0x6f4   :  { %v2316_v13 = vmax.f32 %v2313_v26, 0.0 }
 0x6f6   :  { %2657 = vmatmul.mubr.msk.f32.vlgmr.msra.gmra.mrb[18].mxu0 %vm2332_vm5, %v2316_v13 }
 0x7c9   :  { %v2402_v29 = vpop.f32.mrb[18].mxu0 }
 0x7ca   :  { %v2403_v30 = vadd.f32 %v2437_v28, %v2402_v29  ;;  %v2658_v31 = vpop.f32.mrb[19].mxu0 }
 0x7cc   :  { %2407 = vst.msk [vmem:[%s4298_s18] sm:$0xff] %vm2406_vm6, %v2403_v30 }
 0x7cd   :  { %2412 = vsyncpa [#allocation3], 1 }
 0x7ce   :  { %2413 = vsyncpa [#allocation5], 1 }
 0x7cf   :  { %2414 = vsyncpa [#allocation8], 1 }
 0x7d0   :  { %2415 = vsyncpa [#allocation11], 1 }
 0x7d1   :  { %2416 = vsyncpa [#allocation14], 1 }
 0x7d2   :  { %2417 = vsyncpa [#allocation17], 1 }
 0x7d3   :  { %2418 = vsyncpa [#allocation20], 1 }
 0x7d4   :  { %2419 = vsyncpa [#allocation23], 1 }

</bundles_post_ra>
